<compile_context>
chip_gen: v7x
topology: tpu7x:2x2x1
jax: 0.10.0
libtpu: 0.0.40
codegen_flags: <defaults>
</compile_context>

<pallas_src>
import functools

import jax
import jax.numpy as jnp
from jax import lax
from jax.experimental import pallas as pl
from jax.experimental.pallas import tpu as pltpu

LANE = 128


def _round_up(v, m):
    return (v + m - 1) // m * m


def _pick_tile(n, target):
    """Largest power-of-two-ish tile <= target that divides n (fallback: n)."""
    t = min(target, n)
    while t > 8 and n % t != 0:
        t //= 2
    return t if n % t == 0 else n


def _vmem_limit_bytes():
    """~3/4 of physical VMEM: ~96 MiB on v5e/v6e (128 MiB), ~48 MiB on v7x."""
    try:
        cap = pltpu.get_tpu_info().vmem_capacity_bytes
    except Exception:
        cap = 64 * 1024 * 1024  # conservative fallback (v7x physical size)
    return int(min(cap * 3 // 4, 110 * 1024 * 1024))


# ---------------------------------------------------------------------------
# Per-layer tiled kernel:  out[i] = sum_k adj[i, k] @ xw[k]  + b   (+ epilogue)
# ---------------------------------------------------------------------------
def gcn_layer_kernel(adj_ref, xw_ref, b_ref, o_ref, acc_ref, *, tk, out_channels):
    """adj_ref: (TM, TK) int8 tile.  xw_ref: (N, Fp) bf16, VMEM-resident.
    b_ref: (1, Fp) f32, resident.  o_ref: (TM, Fp) bf16 or (TM, C) f32.
    acc_ref: (TM, Fp) f32 scratch accumulator."""
    k = pl.program_id(1)

    @pl.when(k == 0)
    def _():
        acc_ref[...] = jnp.zeros_like(acc_ref)

    # int8 0/1 adjacency -> bf16 (exact); MXU matmul with f32 accumulation.
    adj = adj_ref[...].astype(jnp.bfloat16)
    start = pl.multiple_of(k * tk, tk)
    xw_k = xw_ref[pl.ds(start, tk), :]          # slab of the resident xw
    acc_ref[...] += jnp.dot(adj, xw_k, preferred_element_type=jnp.float32)

    # Epilogue only on the final reduction step.
    @pl.when(k == pl.num_programs(1) - 1)
    def _():
        out = acc_ref[...] + b_ref[...]
        if out_channels is None:
            # Hidden layer: ReLU, emit bf16 (feeds the next layer's h @ W).
            o_ref[...] = jnp.maximum(out, 0.0).astype(o_ref.dtype)
        else:
            # Last layer: log_softmax over the real (unpadded) class lanes,
            # written directly at width out_channels (no padded writeback).
            col = lax.broadcasted_iota(jnp.int32, out.shape, 1)
            valid = col < out_channels
            logits = jnp.where(valid, out, -jnp.inf)
            s = logits - jnp.max(logits, axis=-1, keepdims=True)
            lse = jnp.log(jnp.sum(jnp.exp(s), axis=-1, keepdims=True))
            o_ref[...] = (s - lse)[:, :out_channels].astype(o_ref.dtype)


# ---------------------------------------------------------------------------
# One-time (outside the jitted per-call path) preparation
# ---------------------------------------------------------------------------
def prepare_adjacency(adj_t):
    """Store the 0/1 adjacency as int8 in HBM (exact; half the DMA bytes)."""
    return adj_t.astype(jnp.int8)


def prepare_params(params, in_channels):
    """Zero-pad every layer to 128-lane-dense shapes; weights bf16, bias f32."""
    padded = []
    fin_p = _round_up(in_channels, LANE)
    for w, b in params:
        fout_p = _round_up(w.shape[1], LANE)
        w_p = jnp.pad(w, ((0, fin_p - w.shape[0]), (0, fout_p - w.shape[1])))
        b_p = jnp.pad(b, ((0, 0), (0, fout_p - b.shape[1])))
        padded.append((w_p.astype(jnp.bfloat16), b_p.astype(jnp.float32)))
        fin_p = fout_p
    return padded


# ---------------------------------------------------------------------------
# Forward: per-layer (hoisted h @ W) + tiled adj aggregation kernel
# ---------------------------------------------------------------------------
def _gcn_forward_pallas(x, adj_i8, padded_params, out_channels):
    n = adj_i8.shape[0]
    num_layers = len(padded_params)
    f0p = padded_params[0][0].shape[0]
    h = jnp.pad(x, ((0, 0), (0, f0p - x.shape[1]))).astype(jnp.bfloat16)

    tm = _pick_tile(n, 256)   # node-row tile ("parallel" axis)
    tk = _pick_tile(n, 256)   # adj-column / reduction tile ("arbitrary" axis)
    compiler_params = pltpu.CompilerParams(
        dimension_semantics=("parallel", "arbitrary"),
        vmem_limit_bytes=_vmem_limit_bytes())

    out = None
    for l, (w, b) in enumerate(padded_params):
        fp = w.shape[1]
        # h @ W computed ONCE per layer (hoisted out of the row-tiled loop).
        xw = jnp.dot(h, w, preferred_element_type=jnp.float32).astype(jnp.bfloat16)

        is_last = l == num_layers - 1
        if is_last:
            out_shape = jax.ShapeDtypeStruct((n, out_channels), jnp.float32)
            out_spec = pl.BlockSpec((tm, out_channels), lambda i, k: (i, 0))
        else:
            out_shape = jax.ShapeDtypeStruct((n, fp), jnp.bfloat16)
            out_spec = pl.BlockSpec((tm, fp), lambda i, k: (i, 0))

        out = pl.pallas_call(
            functools.partial(gcn_layer_kernel, tk=tk,
                              out_channels=out_channels if is_last else None),
            out_shape=out_shape,
            grid=(n // tm, n // tk),
            in_specs=[
                pl.BlockSpec((tm, tk), lambda i, k: (i, k)),   # adj int8 tile
                pl.BlockSpec((n, fp), lambda i, k: (0, 0)),    # xw: resident
                pl.BlockSpec((1, fp), lambda i, k: (0, 0)),    # bias: resident
            ],
            out_specs=out_spec,
            scratch_shapes=[pltpu.VMEM((tm, fp), jnp.float32)],
            compiler_params=compiler_params,
        )(adj_i8, xw, b)
        h = out
    return out


gcn_forward = jax.jit(_gcn_forward_pallas, static_argnums=(3,))


# ---------------------------------------------------------------------------
# Params + pure-JAX reference (mirrors kernel numerics: bf16 ops, f32 acc)
# ---------------------------------------------------------------------------
def init_gcn_params(key, in_channels, hidden_channels, out_channels, num_layers):
    dims = [in_channels] + [hidden_channels] * (num_layers - 1) + [out_channels]
    params = []
    for i in range(num_layers):
        key, wk = jax.random.split(key)
        fan_in, fan_out = dims[i], dims[i + 1]
        limit = jnp.sqrt(6.0 / (fan_in + fan_out))
        w = jax.random.uniform(wk, (fan_in, fan_out), jnp.float32, -limit, limit)
        b = jnp.zeros((1, fan_out), jnp.float32)
        params.append((w, b))
    return params


def gcn_reference(x, adj_t, params):
    adj = adj_t.astype(jnp.bfloat16)
    h = x.astype(jnp.bfloat16)
    num_layers = len(params)
    out = None
    for i, (w, b) in enumerate(params):
        xw = jnp.dot(h, w.astype(jnp.bfloat16), preferred_element_type=jnp.float32)
        out = jnp.dot(adj, xw.astype(jnp.bfloat16), preferred_element_type=jnp.float32)
        out = out + b
        if i < num_layers - 1:
            out = jnp.maximum(out, 0.0)
            h = out.astype(jnp.bfloat16)
    return jax.nn.log_softmax(out, axis=-1)


# ---------------------------------------------------------------------------
# Main
# ---------------------------------------------------------------------------
if __name__ == "__main__":
    key = jax.random.PRNGKey(0)
    k_x, k_adj, k_p = jax.random.split(key, 3)

    num_nodes = 512          # gives a (2, 2) grid with 256x256 tiles
    in_channels = 16
    hidden_channels = 32
    out_channels = 8
    num_layers = 3
    dropout = 0.5            # identity in eval mode

    x = jax.random.normal(k_x, (num_nodes, in_channels), jnp.float32)
    # Dense symmetric 0/1 "adjacency" (stand-in for the sparse adj_t).
    a = (jax.random.uniform(k_adj, (num_nodes, num_nodes)) < 0.05).astype(jnp.float32)
    adj_t = jnp.maximum(a, a.T)

    params = init_gcn_params(k_p, in_channels, hidden_channels, out_channels,
                             num_layers)

    # One-time preparation, OUTSIDE the per-call jitted forward.
    adj_i8 = prepare_adjacency(adj_t)
    padded_params = prepare_params(params, in_channels)

    out = gcn_forward(x, adj_i8, padded_params, out_channels)
    out = jax.block_until_ready(out)

    assert out.shape == (num_nodes, out_channels)
    # log_softmax rows must sum (in prob space) to ~1.
    row_sums = jnp.sum(jnp.exp(out), axis=-1)
    assert bool(jnp.all(jnp.abs(row_sums - 1.0) < 1e-4))
    # Match the pure-JAX reference that mirrors the kernel numerics.
    ref = gcn_reference(x, adj_t, params)
    assert bool(jnp.all(jnp.isfinite(out)))
    assert bool(jnp.all(jnp.abs(out - ref) < 2e-2))

    print("KERNEL_OK")
</pallas_src>

<mosaic_0001>
module attributes {stable_mosaic.version = 11 : i64} {
  func.func @gcn_layer_kernel(%arg0: i32, %arg1: i32, %arg2: memref<256x256xi8, #tpu.memory_space<vmem>>, %arg3: memref<512x128xbf16, #tpu.memory_space<vmem>>, %arg4: memref<1x128xf32, #tpu.memory_space<vmem>>, %arg5: memref<256x128xbf16, #tpu.memory_space<vmem>>, %arg6: memref<256x128xf32, #tpu.memory_space<vmem>>) attributes {dimension_semantics = [#tpu.dimension_semantics<parallel>, #tpu.dimension_semantics<arbitrary>], iteration_bounds = array<i64: 2, 2>, scalar_prefetch = 0 : i64, scratch_operands = 1 : i64, tpu.core_type = #tpu.core_type<tc>, window_params = [{transform_indices = @transform_0, window_bounds = array<i64: 256, 256>}, {pipeline_mode = #tpu.pipeline_mode<synchronous>, transform_indices = @transform_1, window_bounds = array<i64: 512, 128>}, {pipeline_mode = #tpu.pipeline_mode<synchronous>, transform_indices = @transform_2, window_bounds = array<i64: 1, 128>}, {transform_indices = @transform_3, window_bounds = array<i64: 256, 128>}]} {
    %c0_i32 = arith.constant 0 : i32
    %0 = arith.cmpi eq, %arg1, %c0_i32 : i32
    %1 = arith.extui %0 : i1 to i32
    %c0_i32_0 = arith.constant 0 : i32
    %2 = arith.cmpi ne, %1, %c0_i32_0 : i32
    scf.if %2 {
      %cst_8 = arith.constant 0.000000e+00 : f32
      %16 = vector.broadcast %cst_8 : f32 to vector<256x128xf32>
      %c0_9 = arith.constant 0 : index
      %c0_10 = arith.constant 0 : index
      %17 = vector.load %arg6[%c0_9, %c0_10] : memref<256x128xf32, #tpu.memory_space<vmem>>, vector<256x128xf32>
      tpu.vector_store %arg6[%c0_9, %c0_10], %16 {strides = array<i32>} : memref<256x128xf32, #tpu.memory_space<vmem>>, vector<256x128xf32>,
    } else {
    }
    %c0 = arith.constant 0 : index
    %c0_1 = arith.constant 0 : index
    %3 = vector.load %arg2[%c0, %c0_1] : memref<256x256xi8, #tpu.memory_space<vmem>>, vector<256x256xi8>
    %4 = arith.sitofp %3 : vector<256x256xi8> to vector<256x256xbf16>
    %c256_i32 = arith.constant 256 : i32
    %5 = arith.muli %arg1, %c256_i32 : i32
    %6 = tpu.assume_multiple %5, 256 : i32
    %7 = arith.index_cast %6 : i32 to index
    %c0_2 = arith.constant 0 : index
    %8 = vector.load %arg3[%7, %c0_2] : memref<512x128xbf16, #tpu.memory_space<vmem>>, vector<256x128xbf16>
    %c0_3 = arith.constant 0 : index
    %c0_4 = arith.constant 0 : index
    %9 = vector.load %arg6[%c0_3, %c0_4] : memref<256x128xf32, #tpu.memory_space<vmem>>, vector<256x128xf32>
    %cst = arith.constant dense<0.000000e+00> : vector<256x128xf32>
    %10 = tpu.matmul %4, %8, %cst {dimension_numbers = #tpu.dot_dimension_numbers<[1], [0], [0], [1], [0, 0, 1, 1], [], []>} : vector<256x256xbf16>, vector<256x128xbf16>, vector<256x128xf32> -> vector<256x128xf32>
    %11 = arith.addf %9, %10 : vector<256x128xf32>
    %c0_5 = arith.constant 0 : index
    %c0_6 = arith.constant 0 : index
    %12 = vector.load %arg6[%c0_5, %c0_6] : memref<256x128xf32, #tpu.memory_space<vmem>>, vector<256x128xf32>
    tpu.vector_store %arg6[%c0_5, %c0_6], %11 {strides = array<i32>} : memref<256x128xf32, #tpu.memory_space<vmem>>, vector<256x128xf32>,
    %c1_i32 = arith.constant 1 : i32
    %13 = arith.cmpi eq, %arg1, %c1_i32 : i32
    %14 = arith.extui %13 : i1 to i32
    %c0_i32_7 = arith.constant 0 : i32
    %15 = arith.cmpi ne, %14, %c0_i32_7 : i32
    scf.if %15 {
      %c0_8 = arith.constant 0 : index
      %c0_9 = arith.constant 0 : index
      %16 = vector.load %arg6[%c0_8, %c0_9] : memref<256x128xf32, #tpu.memory_space<vmem>>, vector<256x128xf32>
      %c0_10 = arith.constant 0 : index
      %c0_11 = arith.constant 0 : index
      %17 = vector.load %arg4[%c0_10, %c0_11] : memref<1x128xf32, #tpu.memory_space<vmem>>, vector<1x128xf32>
      %18 = vector.broadcast %17 : vector<1x128xf32> to vector<256x128xf32>
      %19 = arith.addf %16, %18 : vector<256x128xf32>
      %cst_12 = arith.constant 0.000000e+00 : f32
      %20 = vector.broadcast %cst_12 : f32 to vector<256x128xf32>
      %21 = arith.maximumf %19, %20 : vector<256x128xf32>
      %22 = arith.truncf %21 : vector<256x128xf32> to vector<256x128xbf16>
      %c0_13 = arith.constant 0 : index
      %c0_14 = arith.constant 0 : index
      %23 = vector.load %arg5[%c0_13, %c0_14] : memref<256x128xbf16, #tpu.memory_space<vmem>>, vector<256x128xbf16>
      tpu.vector_store %arg5[%c0_13, %c0_14], %22 {strides = array<i32>} : memref<256x128xbf16, #tpu.memory_space<vmem>>, vector<256x128xbf16>,
    } else {
    }
    return
  }
  func.func @transform_0(%arg0: i32, %arg1: i32) -> (i32, i32) {
    %c0_i32 = arith.constant 0 : i32
    return %arg0, %arg1 : i32, i32
  }
  func.func @transform_1(%arg0: i32, %arg1: i32) -> (i32, i32) {
    %c0_i32 = arith.constant 0 : i32
    %c0_i32_0 = arith.constant 0 : i32
    %c0_i32_1 = arith.constant 0 : i32
    return %c0_i32, %c0_i32_0 : i32, i32
  }
  func.func @transform_2(%arg0: i32, %arg1: i32) -> (i32, i32) {
    %c0_i32 = arith.constant 0 : i32
    %c0_i32_0 = arith.constant 0 : i32
    %c0_i32_1 = arith.constant 0 : i32
    return %c0_i32, %c0_i32_0 : i32, i32
  }
  func.func @transform_3(%arg0: i32, %arg1: i32) -> (i32, i32) {
    %c0_i32 = arith.constant 0 : i32
    %c0_i32_0 = arith.constant 0 : i32
    return %arg0, %c0_i32 : i32, i32
  }
}

module attributes {stable_mosaic.version = 11 : i64} {
  func.func @gcn_layer_kernel(%arg0: i32, %arg1: i32, %arg2: memref<256x256xi8, #tpu.memory_space<vmem>>, %arg3: memref<512x128xbf16, #tpu.memory_space<vmem>>, %arg4: memref<1x128xf32, #tpu.memory_space<vmem>>, %arg5: memref<256x128xbf16, #tpu.memory_space<vmem>>, %arg6: memref<256x128xf32, #tpu.memory_space<vmem>>) attributes {dimension_semantics = [#tpu.dimension_semantics<parallel>, #tpu.dimension_semantics<arbitrary>], iteration_bounds = array<i64: 2, 2>, scalar_prefetch = 0 : i64, scratch_operands = 1 : i64, tpu.core_type = #tpu.core_type<tc>, window_params = [{transform_indices = @transform_0, window_bounds = array<i64: 256, 256>}, {pipeline_mode = #tpu.pipeline_mode<synchronous>, transform_indices = @transform_1, window_bounds = array<i64: 512, 128>}, {pipeline_mode = #tpu.pipeline_mode<synchronous>, transform_indices = @transform_2, window_bounds = array<i64: 1, 128>}, {transform_indices = @transform_3, window_bounds = array<i64: 256, 128>}]} {
    %c0_i32 = arith.constant 0 : i32
    %0 = arith.cmpi eq, %arg1, %c0_i32 : i32
    %1 = arith.extui %0 : i1 to i32
    %c0_i32_0 = arith.constant 0 : i32
    %2 = arith.cmpi ne, %1, %c0_i32_0 : i32
    scf.if %2 {
      %cst_8 = arith.constant 0.000000e+00 : f32
      %16 = vector.broadcast %cst_8 : f32 to vector<256x128xf32>
      %c0_9 = arith.constant 0 : index
      %c0_10 = arith.constant 0 : index
      %17 = vector.load %arg6[%c0_9, %c0_10] : memref<256x128xf32, #tpu.memory_space<vmem>>, vector<256x128xf32>
      tpu.vector_store %arg6[%c0_9, %c0_10], %16 {strides = array<i32>} : memref<256x128xf32, #tpu.memory_space<vmem>>, vector<256x128xf32>,
    } else {
    }
    %c0 = arith.constant 0 : index
    %c0_1 = arith.constant 0 : index
    %3 = vector.load %arg2[%c0, %c0_1] : memref<256x256xi8, #tpu.memory_space<vmem>>, vector<256x256xi8>
    %4 = arith.sitofp %3 : vector<256x256xi8> to vector<256x256xbf16>
    %c256_i32 = arith.constant 256 : i32
    %5 = arith.muli %arg1, %c256_i32 : i32
    %6 = tpu.assume_multiple %5, 256 : i32
    %7 = arith.index_cast %6 : i32 to index
    %c0_2 = arith.constant 0 : index
    %8 = vector.load %arg3[%7, %c0_2] : memref<512x128xbf16, #tpu.memory_space<vmem>>, vector<256x128xbf16>
    %c0_3 = arith.constant 0 : index
    %c0_4 = arith.constant 0 : index
    %9 = vector.load %arg6[%c0_3, %c0_4] : memref<256x128xf32, #tpu.memory_space<vmem>>, vector<256x128xf32>
    %cst = arith.constant dense<0.000000e+00> : vector<256x128xf32>
    %10 = tpu.matmul %4, %8, %cst {dimension_numbers = #tpu.dot_dimension_numbers<[1], [0], [0], [1], [0, 0, 1, 1], [], []>} : vector<256x256xbf16>, vector<256x128xbf16>, vector<256x128xf32> -> vector<256x128xf32>
    %11 = arith.addf %9, %10 : vector<256x128xf32>
    %c0_5 = arith.constant 0 : index
    %c0_6 = arith.constant 0 : index
    %12 = vector.load %arg6[%c0_5, %c0_6] : memref<256x128xf32, #tpu.memory_space<vmem>>, vector<256x128xf32>
    tpu.vector_store %arg6[%c0_5, %c0_6], %11 {strides = array<i32>} : memref<256x128xf32, #tpu.memory_space<vmem>>, vector<256x128xf32>,
    %c1_i32 = arith.constant 1 : i32
    %13 = arith.cmpi eq, %arg1, %c1_i32 : i32
    %14 = arith.extui %13 : i1 to i32
    %c0_i32_7 = arith.constant 0 : i32
    %15 = arith.cmpi ne, %14, %c0_i32_7 : i32
    scf.if %15 {
      %c0_8 = arith.constant 0 : index
      %c0_9 = arith.constant 0 : index
      %16 = vector.load %arg6[%c0_8, %c0_9] : memref<256x128xf32, #tpu.memory_space<vmem>>, vector<256x128xf32>
      %c0_10 = arith.constant 0 : index
      %c0_11 = arith.constant 0 : index
      %17 = vector.load %arg4[%c0_10, %c0_11] : memref<1x128xf32, #tpu.memory_space<vmem>>, vector<1x128xf32>
      %18 = vector.broadcast %17 : vector<1x128xf32> to vector<256x128xf32>
      %19 = arith.addf %16, %18 : vector<256x128xf32>
      %cst_12 = arith.constant 0.000000e+00 : f32
      %20 = vector.broadcast %cst_12 : f32 to vector<256x128xf32>
      %21 = arith.maximumf %19, %20 : vector<256x128xf32>
      %22 = arith.truncf %21 : vector<256x128xf32> to vector<256x128xbf16>
      %c0_13 = arith.constant 0 : index
      %c0_14 = arith.constant 0 : index
      %23 = vector.load %arg5[%c0_13, %c0_14] : memref<256x128xbf16, #tpu.memory_space<vmem>>, vector<256x128xbf16>
      tpu.vector_store %arg5[%c0_13, %c0_14], %22 {strides = array<i32>} : memref<256x128xbf16, #tpu.memory_space<vmem>>, vector<256x128xbf16>,
    } else {
    }
    return
  }
  func.func @transform_0(%arg0: i32, %arg1: i32) -> (i32, i32) {
    %c0_i32 = arith.constant 0 : i32
    return %arg0, %arg1 : i32, i32
  }
  func.func @transform_1(%arg0: i32, %arg1: i32) -> (i32, i32) {
    %c0_i32 = arith.constant 0 : i32
    %c0_i32_0 = arith.constant 0 : i32
    %c0_i32_1 = arith.constant 0 : i32
    return %c0_i32, %c0_i32_0 : i32, i32
  }
  func.func @transform_2(%arg0: i32, %arg1: i32) -> (i32, i32) {
    %c0_i32 = arith.constant 0 : i32
    %c0_i32_0 = arith.constant 0 : i32
    %c0_i32_1 = arith.constant 0 : i32
    return %c0_i32, %c0_i32_0 : i32, i32
  }
  func.func @transform_3(%arg0: i32, %arg1: i32) -> (i32, i32) {
    %c0_i32 = arith.constant 0 : i32
    %c0_i32_0 = arith.constant 0 : i32
    return %arg0, %c0_i32 : i32, i32
  }
}

module attributes {stable_mosaic.version = 11 : i64} {
  func.func @gcn_layer_kernel(%arg0: i32, %arg1: i32, %arg2: memref<256x256xi8, #tpu.memory_space<vmem>>, %arg3: memref<512x128xbf16, #tpu.memory_space<vmem>>, %arg4: memref<1x128xf32, #tpu.memory_space<vmem>>, %arg5: memref<256x8xf32, #tpu.memory_space<vmem>>, %arg6: memref<256x128xf32, #tpu.memory_space<vmem>>) attributes {dimension_semantics = [#tpu.dimension_semantics<parallel>, #tpu.dimension_semantics<arbitrary>], iteration_bounds = array<i64: 2, 2>, scalar_prefetch = 0 : i64, scratch_operands = 1 : i64, tpu.core_type = #tpu.core_type<tc>, window_params = [{transform_indices = @transform_0, window_bounds = array<i64: 256, 256>}, {pipeline_mode = #tpu.pipeline_mode<synchronous>, transform_indices = @transform_1, window_bounds = array<i64: 512, 128>}, {pipeline_mode = #tpu.pipeline_mode<synchronous>, transform_indices = @transform_2, window_bounds = array<i64: 1, 128>}, {transform_indices = @transform_3, window_bounds = array<i64: 256, 8>}]} {
    %c0_i32 = arith.constant 0 : i32
    %0 = arith.cmpi eq, %arg1, %c0_i32 : i32
    %1 = arith.extui %0 : i1 to i32
    %c0_i32_0 = arith.constant 0 : i32
    %2 = arith.cmpi ne, %1, %c0_i32_0 : i32
    scf.if %2 {
      %cst_8 = arith.constant 0.000000e+00 : f32
      %16 = vector.broadcast %cst_8 : f32 to vector<256x128xf32>
      %c0_9 = arith.constant 0 : index
      %c0_10 = arith.constant 0 : index
      %17 = vector.load %arg6[%c0_9, %c0_10] : memref<256x128xf32, #tpu.memory_space<vmem>>, vector<256x128xf32>
      tpu.vector_store %arg6[%c0_9, %c0_10], %16 {strides = array<i32>} : memref<256x128xf32, #tpu.memory_space<vmem>>, vector<256x128xf32>,
    } else {
    }
    %c0 = arith.constant 0 : index
    %c0_1 = arith.constant 0 : index
    %3 = vector.load %arg2[%c0, %c0_1] : memref<256x256xi8, #tpu.memory_space<vmem>>, vector<256x256xi8>
    %4 = arith.sitofp %3 : vector<256x256xi8> to vector<256x256xbf16>
    %c256_i32 = arith.constant 256 : i32
    %5 = arith.muli %arg1, %c256_i32 : i32
    %6 = tpu.assume_multiple %5, 256 : i32
    %7 = arith.index_cast %6 : i32 to index
    %c0_2 = arith.constant 0 : index
    %8 = vector.load %arg3[%7, %c0_2] : memref<512x128xbf16, #tpu.memory_space<vmem>>, vector<256x128xbf16>
    %c0_3 = arith.constant 0 : index
    %c0_4 = arith.constant 0 : index
    %9 = vector.load %arg6[%c0_3, %c0_4] : memref<256x128xf32, #tpu.memory_space<vmem>>, vector<256x128xf32>
    %cst = arith.constant dense<0.000000e+00> : vector<256x128xf32>
    %10 = tpu.matmul %4, %8, %cst {dimension_numbers = #tpu.dot_dimension_numbers<[1], [0], [0], [1], [0, 0, 1, 1], [], []>} : vector<256x256xbf16>, vector<256x128xbf16>, vector<256x128xf32> -> vector<256x128xf32>
    %11 = arith.addf %9, %10 : vector<256x128xf32>
    %c0_5 = arith.constant 0 : index
    %c0_6 = arith.constant 0 : index
    %12 = vector.load %arg6[%c0_5, %c0_6] : memref<256x128xf32, #tpu.memory_space<vmem>>, vector<256x128xf32>
    tpu.vector_store %arg6[%c0_5, %c0_6], %11 {strides = array<i32>} : memref<256x128xf32, #tpu.memory_space<vmem>>, vector<256x128xf32>,
    %c1_i32 = arith.constant 1 : i32
    %13 = arith.cmpi eq, %arg1, %c1_i32 : i32
    %14 = arith.extui %13 : i1 to i32
    %c0_i32_7 = arith.constant 0 : i32
    %15 = arith.cmpi ne, %14, %c0_i32_7 : i32
    scf.if %15 {
      %c0_8 = arith.constant 0 : index
      %c0_9 = arith.constant 0 : index
      %16 = vector.load %arg6[%c0_8, %c0_9] : memref<256x128xf32, #tpu.memory_space<vmem>>, vector<256x128xf32>
      %c0_10 = arith.constant 0 : index
      %c0_11 = arith.constant 0 : index
      %17 = vector.load %arg4[%c0_10, %c0_11] : memref<1x128xf32, #tpu.memory_space<vmem>>, vector<1x128xf32>
      %18 = vector.broadcast %17 : vector<1x128xf32> to vector<256x128xf32>
      %19 = arith.addf %16, %18 : vector<256x128xf32>
      %20 = tpu.iota {dimensions = array<i32: 1>} : vector<256x128xi32>
      %c8_i32 = arith.constant 8 : i32
      %21 = vector.broadcast %c8_i32 : i32 to vector<256x128xi32>
      %22 = arith.cmpi slt, %20, %21 : vector<256x128xi32>
      %cst_12 = arith.constant 0xFF800000 : f32
      %23 = vector.broadcast %cst_12 : f32 to vector<256x128xf32>
      %24 = arith.select %22, %19, %23 : vector<256x128xi1>, vector<256x128xf32>
      %cst_13 = arith.constant dense<0xFF800000> : vector<256xf32>
      %25 = vector.multi_reduction <maximumf>, %24, %cst_13 [1] : vector<256x128xf32> to vector<256xf32>
      %26 = vector.shape_cast %25 : vector<256xf32> to vector<256x1xf32>
      %27 = vector.broadcast %26 : vector<256x1xf32> to vector<256x128xf32>
      %28 = arith.subf %24, %27 : vector<256x128xf32>
      %29 = math.exp %28 : vector<256x128xf32>
      %cst_14 = arith.constant dense<0.000000e+00> : vector<256xf32>
      %30 = vector.multi_reduction <add>, %29, %cst_14 [1] : vector<256x128xf32> to vector<256xf32>
      %31 = vector.shape_cast %30 : vector<256xf32> to vector<256x1xf32>
      %32 = math.log %31 : vector<256x1xf32>
      %33 = vector.broadcast %32 : vector<256x1xf32> to vector<256x128xf32>
      %34 = arith.subf %28, %33 : vector<256x128xf32>
      %35 = vector.extract_strided_slice %34 {offsets = [0, 0], sizes = [256, 8], strides = [1, 1]} : vector<256x128xf32> to vector<256x8xf32>
      %c0_15 = arith.constant 0 : index
      %c0_16 = arith.constant 0 : index
      %36 = vector.load %arg5[%c0_15, %c0_16] : memref<256x8xf32, #tpu.memory_space<vmem>>, vector<256x8xf32>
      tpu.vector_store %arg5[%c0_15, %c0_16], %35 {strides = array<i32>} : memref<256x8xf32, #tpu.memory_space<vmem>>, vector<256x8xf32>,
    } else {
    }
    return
  }
  func.func @transform_0(%arg0: i32, %arg1: i32) -> (i32, i32) {
    %c0_i32 = arith.constant 0 : i32
    return %arg0, %arg1 : i32, i32
  }
  func.func @transform_1(%arg0: i32, %arg1: i32) -> (i32, i32) {
    %c0_i32 = arith.constant 0 : i32
    %c0_i32_0 = arith.constant 0 : i32
    %c0_i32_1 = arith.constant 0 : i32
    return %c0_i32, %c0_i32_0 : i32, i32
  }
  func.func @transform_2(%arg0: i32, %arg1: i32) -> (i32, i32) {
    %c0_i32 = arith.constant 0 : i32
    %c0_i32_0 = arith.constant 0 : i32
    %c0_i32_1 = arith.constant 0 : i32
    return %c0_i32, %c0_i32_0 : i32, i32
  }
  func.func @transform_3(%arg0: i32, %arg1: i32) -> (i32, i32) {
    %c0_i32 = arith.constant 0 : i32
    %c0_i32_0 = arith.constant 0 : i32
    return %arg0, %c0_i32 : i32, i32
  }
}

</mosaic_0001>

<bundles_post_ra>
// kernel: _gcn_forward_pallas.3
= control target key start
LH: loop header
LB: loop body
LE: loop exit
PB: predicated region body
PF: predicated region fallthrough
CT: control target
= control target key end

     0   :  { %8 = vsyncpa [#allocation4], 0  ;;  %s1541_s0 = inlined_call_operand.hbm [shape: s8[512,512], index: 0, kind: input, shape index: {}]   ;;  %s1542_s1 = inlined_call_operand.vmem [shape: bf16[512,128], index: 1, kind: input, shape index: {}]   ;;  %s1543_s2 = inlined_call_operand.vmem [shape: f32[1,128], index: 2, kind: input, shape index: {}]   ;;  %s1544_s3 = inlined_call_operand.vmem [shape: bf16[512,128], index: 3, kind: output, shape index: {}]  }
   0x1   :  { %10 = vsyncpa [#allocation4 + $0x1], 0  ;;  %s1288_s12 = smov 0   ;;  %s1290_s13 = smov 0  }
   0x2   :  { %s1292_s14 = smov 0   ;;  %s1294_s15 = smov 0  }
   0x3   :  { %s1296_s16 = smov 0   ;;  %s1298_s17 = smov 0  }
   0x4   :  { %s1300_s18 = smov 0   ;;  %s1302_s19 = smov 0  }
   0x5 LB: > { %s909_s20 = sadd.s32 4294967295, %s1261_s19   ;;  %s25_s21 = sadd.s32 1, %s1253_s17  ;;  %s1261_s19 = sphi %s1302_s19, %s16_s19   ;;  %s1257_s18 = sphi %s1300_s18, %s1554_s18   ;;  %s1253_s17 = sphi %s1298_s17, %s1553_s17   ;;  %s1249_s16 = sphi %s1296_s16, %s1552_s16   ;;  %s1245_s15 = sphi %s1294_s15, %s1551_s15   ;;  %s1241_s14 = sphi %s1292_s14, %s1550_s14   ;;  %s1237_s13 = sphi %s1290_s13, %s1549_s13   ;;  %s1233_s12 = sphi %s1288_s12, %s1548_s12  }
   0x6   : > { %p26_p0 = scmp.ge.s32.totalorder %s25_s21, 2  ;;  %s28_s22 = sadd.s32 1, %s1257_s18 }
   0x7   : > { %s37_s23 = sadd.s32 1, %s1241_s14  ;;  %p44_p1 = scmp.ne.s32.totalorder %s1241_s14, %s1237_s13 }
   0x8   : > { %s1556_s21 = smov (%p26_p0, %s25_s21), 0  ;;  %s1558_s22 = smov (!%p26_p0, %s28_s22), %s1257_s18 }
   0x9   : > { %s33_s24 = ssub.s32 %s1253_s17, %s1556_s21  ;;  %p45_p2 = scmp.eq.s32.totalorder %s1261_s19, 0 }
   0xa   : > { %p30_p3 = scmp.ge.s32.totalorder %s1558_s22, 2  ;;  %p50_p4 = scmp.ne.s32.totalorder %s1237_s13, %s1233_s12 }
   0xb   : > { %p1339_p5 = por %p45_p2, %p44_p1  ;;  %p51_p6 = scmp.eq.s32.totalorder %s909_s20, 0 }
   0xc   : > { %s1560_s22 = smov (%p30_p3, %s1558_s22), 0  ;;  %p1080_p8 = scmp.lt.s32.totalorder %s1261_s19, 4 }
   0xd   : > { %p1345_p7 = por %p51_p6, %p50_p4  ;;  %s32_s27 = ssub.s32 %s1257_s18, %s1560_s22 }
   0xe   : > { %s34_s28 = sor.u32 %s33_s24, %s32_s27  ;;  %s148_s29 = sand.u32 1, %s1241_s14  }
   0xf   : > { %p35_p9 = scmp.eq.s32.totalorder %s34_s28, 0  ;;  %s913_s30 = sshll.u32 %s148_s29, 7 }
  0x10   : > { %s915_s4 = sshll.u32 %s1253_s17, 1  ;;  %s945_s6 = sshll.u32 %s1257_s18, 5 }
  0x11   : > { %s1355_s5 = scalar_select %p35_p9, %s1241_s14, %s37_s23  }
  0x12   : > { %s159_s7 = sadd.s32 %s945_s6, %s915_s4  ;;  %s152_s8 = scalar_lea.vmem [#allocation3], %s913_s30 }
  0x13   : > { %s162_s9 = sshll.u32 %s152_s8, 4  ;;  %s917_s10 = sshll.u32 %s159_s7, 7  ;;  %s1358_s9 = int_to_ptr.vmem [resolvable:$true] %s162_s9 }
  0x14   : > { %s1363_s20 = scalar_lea.hbm %s1541_s0, %s917_s10  ;;  %p1369_p10 = pnand %p1080_p8, %p1339_p5 }
  0x15   : > { %s1373_s24 = scalar_lea.sflag [#allocation4], %s148_s29  ;;  %s1165_s27 = scalar_lea.hbm %s1363_s20, 2048 }
  0x16   : > { %p1166_p11 = scmp.ne.s32.totalorder %s1363_s20, %s1165_s27  ;;  %p1167_p12 = pneg %p1369_p10 }
  0x17   : > { %s1170_s30 = scalar_lea.hbm %s1541_s0, 8192  ;;  %p1171_p1 = scmp.lt.u32.totalorder %s1363_s20, %s1541_s0 }
  0x18   : > { %p1168_p13 = pnand %p1167_p12, %p1166_p11  ;;  %p1172_p2 = scmp.lt.u32.totalorder %s1170_s30, %s1165_s27 }
  0x19   : > { %p1174_p4 = scmp.lt.u32.totalorder %s1165_s27, %s1363_s20 }
  0x1a   : > { %p1169_p0 = pneg %p1168_p13  ;;  %p1173_p3 = por %p1172_p2, %p1171_p1 }
  0x1c   : > { %p1175_p5 = por %p1174_p4, %p1173_p3 }
  0x1e   : > { %p1176_p6 = pnand %p1175_p5, %p1169_p0 }
  0x20   : > { %1179 = shalt.err (!%p1176_p6)
}
  0x21   : > { %s1180_s29 = scalar_lea.vmem %s1358_s9, 2048  ;;  %s1263_s7 = smov [#allocation3]  }
  0x22   : > { %p1181_p8 = scmp.ne.s32.totalorder %s1358_s9, %s1180_s29  ;;  %s1185_s8 = sshll.u32 %s1263_s7, 4  ;;  %s1186_s8 = int_to_ptr.vmem [resolvable:$false] %s1185_s8 }
  0x23   : > { %s1187_s10 = scalar_lea.vmem %s1186_s8, 4096  ;;  %p1188_p13 = scmp.lt.s32.totalorder %s1358_s9, %s1186_s8 }
  0x24   : > { %p1183_p9 = pnand %p1181_p8, %p1167_p12  ;;  %p1189_p1 = scmp.lt.s32.totalorder %s1187_s10, %s1180_s29 }
  0x26   : > { %p1184_p11 = pneg %p1183_p9  ;;  %p1190_p2 = por %p1189_p1, %p1188_p13 }
  0x28   : > { %p1191_p3 = pnand %p1190_p2, %p1184_p11 }
  0x2a   : > { %1194 = shalt.err (!%p1191_p3)
}
  0x2b   : > { %s1264_s11 = smov 512   ;;  %s1265_s12 = smov 256  }
  0x2c   : > { %s1266_s27 = smov 16   ;;  %p918_p12 = scmp.ge.s32.totalorder %s1261_s19, 1 }
  0x2d   : > { %1079 = dma.hbm_to_vmem [thread:$0]  (!%p1369_p10), %s1363_s20, 2048, %s1358_s9, %s1373_s24, %s1264_s11, %s1265_s12, %s1266_s27  }
  0x2e   : > { %p170_p0 = scmp.lt.s32.totalorder %s1261_s19, 5 }
  0x30   : > { %p171_p4 = pnand %p918_p12, %p170_p0 }
  0x31   : > { %s176_s25 = sand.u32 (!%p171_p4), 1, %s1237_s13  }
  0x32   : > { %174 = sbr.rel (%p171_p4) target bundleno = 404 (0x194), region = 32  ;;  %s919_s28 = sshll.u32 (!%p171_p4), %s176_s25, 7 }
  0x33   : > { %s177_s30 = scalar_lea.sflag (!%p171_p4), [#allocation4], %s176_s25  ;;  %s1404_s4 = scalar_lea.vmem (!%p171_p4), [#allocation3], %s919_s28 }
  0x39   : > { %1228 = dma.done.wait (%p1345_p7), %s177_s30, 2048  }
  0x3a   : > { %1230 = vsyncadd (%p1345_p7), %s177_s30, 4294965248  ;;  %s920_s6 = sshll.u32 %s1249_s16, 4  ;;  %p922_p10 = scmp.ne.s32.totalorder %s1245_s15, 0 }
  0x3b   : > { %p206_p5 = scmp.lt.s32.totalorder %s920_s6, 31  ;;  %v1267_v0 = vmov (!%p922_p10), 0.0  }
  0x3c   : > { %215 = sbr.rel (%p922_p10) target bundleno = 76 (0x4c), region = 40  ;;  %216 = vst [vmem:[#allocation2] sm:$0xff] (!%p922_p10), %v1267_v0  ;;  %217 = vst [vmem:[#allocation2 + $0x8] sm:$0xff] (!%p922_p10), %v1267_v0 }
  0x3d   : > { %s1562_s6 = smov (!%p206_p5, %s920_s6), 31  ;;  %218 = vst [vmem:[#allocation2 + $0x10] sm:$0xff] (!%p922_p10), %v1267_v0  ;;  %219 = vst [vmem:[#allocation2 + $0x18] sm:$0xff] (!%p922_p10), %v1267_v0 }
  0x3e   : > { %s921_s9 = sshll.u32 %s1562_s6, 3  ;;  %220 = vst [vmem:[#allocation2 + $0x20] sm:$0xff] (!%p922_p10), %v1267_v0  ;;  %221 = vst [vmem:[#allocation2 + $0x28] sm:$0xff] (!%p922_p10), %v1267_v0 }
  0x3f   : > { %s1414_s24 = scalar_lea.vmem %s1544_s3, %s921_s9  ;;  %222 = vst [vmem:[#allocation2 + $0x30] sm:$0xff] (!%p922_p10), %v1267_v0  ;;  %223 = vst [vmem:[#allocation2 + $0x38] sm:$0xff] (!%p922_p10), %v1267_v0 }
  0x40   : > { %224 = vst [vmem:[#allocation2 + $0x40] sm:$0xff] (!%p922_p10), %v1267_v0  ;;  %225 = vst [vmem:[#allocation2 + $0x48] sm:$0xff] (!%p922_p10), %v1267_v0 }
  0x41   : > { %226 = vst [vmem:[#allocation2 + $0x50] sm:$0xff] (!%p922_p10), %v1267_v0  ;;  %227 = vst [vmem:[#allocation2 + $0x58] sm:$0xff] (!%p922_p10), %v1267_v0 }
  0x42   : > { %228 = vst [vmem:[#allocation2 + $0x60] sm:$0xff] (!%p922_p10), %v1267_v0  ;;  %229 = vst [vmem:[#allocation2 + $0x68] sm:$0xff] (!%p922_p10), %v1267_v0 }
  0x43   : > { %230 = vst [vmem:[#allocation2 + $0x70] sm:$0xff] %v1267_v0  ;;  %231 = vst [vmem:[#allocation2 + $0x78] sm:$0xff] %v1267_v0 }
  0x44   : > { %232 = vst [vmem:[#allocation2 + $0x80] sm:$0xff] %v1267_v0  ;;  %233 = vst [vmem:[#allocation2 + $0x88] sm:$0xff] %v1267_v0 }
  0x45   : > { %234 = vst [vmem:[#allocation2 + $0x90] sm:$0xff] %v1267_v0  ;;  %235 = vst [vmem:[#allocation2 + $0x98] sm:$0xff] %v1267_v0 }
  0x46   : > { %236 = vst [vmem:[#allocation2 + $0xa0] sm:$0xff] %v1267_v0  ;;  %237 = vst [vmem:[#allocation2 + $0xa8] sm:$0xff] %v1267_v0 }
  0x47   : > { %238 = vst [vmem:[#allocation2 + $0xb0] sm:$0xff] %v1267_v0  ;;  %239 = vst [vmem:[#allocation2 + $0xb8] sm:$0xff] %v1267_v0 }
  0x48   : > { %240 = vst [vmem:[#allocation2 + $0xc0] sm:$0xff] %v1267_v0  ;;  %241 = vst [vmem:[#allocation2 + $0xc8] sm:$0xff] %v1267_v0 }
  0x49   : > { %242 = vst [vmem:[#allocation2 + $0xd0] sm:$0xff] %v1267_v0  ;;  %243 = vst [vmem:[#allocation2 + $0xd8] sm:$0xff] %v1267_v0 }
  0x4a   : > { %244 = vst [vmem:[#allocation2 + $0xe0] sm:$0xff] %v1267_v0  ;;  %245 = vst [vmem:[#allocation2 + $0xe8] sm:$0xff] %v1267_v0 }
  0x4b   : > { %246 = vst [vmem:[#allocation2 + $0xf0] sm:$0xff] %v1267_v0  ;;  %247 = vst [vmem:[#allocation2 + $0xf8] sm:$0xff] %v1267_v0 }
  0x4c PF: > { %s923_s16 = sshll.u32 %s1245_s15, 8  ;;  %v1419_v1 = vld [vmem:[%s1404_s4 + $0x8] sm:$0xff]  ;;  %v248_v21 = vld [vmem:[%s1404_s4] sm:$0xff]  ;;  %v251_v27 = vld [vmem:[%s1404_s4 + $0x18] sm:$0xff]  ;;  %p941_p7 = scmp.ne.s32.totalorder %s1245_s15, 1 }
  0x4d   : > { %v1422_v2 = vld [vmem:[%s1404_s4 + $0x48] sm:$0xff]  ;;  %s297_s26 = sshra.s32 %s923_s16, 3  ;;  %v265_v3 = vunpack.c.l.s8.bf16 %v1419_v1  ;;  %v256_v22 = vld [vmem:[%s1404_s4 + $0x40] sm:$0xff]  ;;  %v264_v23 = vunpack.c.l.s8.bf16 %v248_v21  ;;  %v267_v25 = vunpack.c.h.s8.bf16 %v1419_v1  ;;  %v259_v28 = vld [vmem:[%s1404_s4 + $0x58] sm:$0xff]  ;;  %v266_v29 = vunpack.c.h.s8.bf16 %v248_v21 }
  0x4e   : > { %v281_v4 = vunpack.c.l.s8.bf16 %v1422_v2  ;;  %s924_s29 = sshll.u32 %s297_s26, 2  ;;  %v280_v24 = vunpack.c.l.s8.bf16 %v256_v22  ;;  %v283_v26 = vunpack.c.h.s8.bf16 %v1422_v2  ;;  %v282_v30 = vunpack.c.h.s8.bf16 %v256_v22  ;;  %v250_v33 = vld [vmem:[%s1404_s4 + $0x10] sm:$0xff]  ;;  %v253_v39 = vld [vmem:[%s1404_s4 + $0x28] sm:$0xff]  ;;  %v252_v45 = vld [vmem:[%s1404_s4 + $0x20] sm:$0xff] }
  0x4f   : > { %s1429_s10 = scalar_lea.vmem %s1542_s1, %s924_s29  ;;  %493 = vmatprep.mubr.bf16.mxu0 %v265_v3  ;;  %v269_v31 = vunpack.c.l.s8.bf16 %v251_v27  ;;  %v285_v32 = vunpack.c.l.s8.bf16 %v259_v28  ;;  %v258_v34 = vld [vmem:[%s1404_s4 + $0x50] sm:$0xff]  ;;  %v268_v35 = vunpack.c.l.s8.bf16 %v250_v33  ;;  %v271_v37 = vunpack.c.h.s8.bf16 %v251_v27  ;;  %v261_v40 = vld [vmem:[%s1404_s4 + $0x68] sm:$0xff]  ;;  %v260_v46 = vld [vmem:[%s1404_s4 + $0x60] sm:$0xff] }
  0x50   : > { %557 = vmatprep.mubr.bf16.mxu1 %v281_v4  ;;  %v1149_v5 = vld [vmem:[%s1429_s10 + $0x40] sm:$0xff]   ;;  %v1151_v7 = vld [vmem:[%s1429_s10 + $0x48] sm:$0xff]   ;;  %v1153_v9 = vld [vmem:[%s1429_s10 + $0x50] sm:$0xff]   ;;  %v284_v36 = vunpack.c.l.s8.bf16 %v258_v34  ;;  %v287_v38 = vunpack.c.h.s8.bf16 %v259_v28  ;;  %v270_v41 = vunpack.c.h.s8.bf16 %v250_v33  ;;  %v286_v42 = vunpack.c.h.s8.bf16 %v258_v34 }
  0x51   : > { %v1150_v6 = vld [vmem:[%s1429_s10] sm:$0xff]   ;;  %946 = vmatprep.subr.bf16.mxu0 %v1149_v5  ;;  %1058 = vmatprep.subr.bf16.mxu1 %v1149_v5  ;;  %v1152_v8 = vld [vmem:[%s1429_s10 + $0x8] sm:$0xff]   ;;  %v1154_v10 = vld [vmem:[%s1429_s10 + $0x10] sm:$0xff]   ;;  %v273_v43 = vunpack.c.l.s8.bf16 %v253_v39  ;;  %v289_v44 = vunpack.c.l.s8.bf16 %v261_v40  ;;  %v272_v47 = vunpack.c.l.s8.bf16 %v252_v45  ;;  %v288_v48 = vunpack.c.l.s8.bf16 %v260_v46 }
  0x52   : > { %947 = vmatpush3.bf16.msra.mxu0 %v1150_v6  ;;  %1066 = vmatpush3.bf16.msra.mxu1 %v1150_v6  ;;  %v1155_v11 = vld [vmem:[%s1429_s10 + $0x58] sm:$0xff]   ;;  %v1157_v13 = vld [vmem:[%s1429_s10 + $0x60] sm:$0xff]   ;;  %v1159_v15 = vld [vmem:[%s1429_s10 + $0x68] sm:$0xff]   ;;  %v275_v49 = vunpack.c.h.s8.bf16 %v253_v39  ;;  %v291_v50 = vunpack.c.h.s8.bf16 %v261_v40  ;;  %v274_v53 = vunpack.c.h.s8.bf16 %v252_v45  ;;  %v290_v54 = vunpack.c.h.s8.bf16 %v260_v46 }
  0x53   : > { %948 = vmatprep.subr.bf16.mxu0 %v1151_v7  ;;  %1059 = vmatprep.subr.bf16.mxu1 %v1151_v7  ;;  %v1156_v12 = vld [vmem:[%s1429_s10 + $0x18] sm:$0xff]   ;;  %v1158_v14 = vld [vmem:[%s1429_s10 + $0x20] sm:$0xff]   ;;  %v1160_v16 = vld [vmem:[%s1429_s10 + $0x28] sm:$0xff]  }
  0x54   : > { %v1161_v17 = vld [vmem:[%s1429_s10 + $0x70] sm:$0xff]   ;;  %v1163_v19 = vld [vmem:[%s1429_s10 + $0x78] sm:$0xff]   ;;  %v333_v3 = vld [vmem:[#allocation2] sm:$0xff] }
  0x55   : > { %v1162_v18 = vld [vmem:[%s1429_s10 + $0x30] sm:$0xff]   ;;  %v1164_v20 = vld [vmem:[%s1429_s10 + $0x38] sm:$0xff]   ;;  %v349_v5 = vld [vmem:[#allocation2 + $0x80] sm:$0xff] }
  0x56   : > { %949 = vmatpush3.bf16.msra.mxu0 %v1152_v8  ;;  %1067 = vmatpush3.bf16.msra.mxu1 %v1152_v8  ;;  %v255_v51 = vld [vmem:[%s1404_s4 + $0x38] sm:$0xff]  ;;  %v254_v57 = vld [vmem:[%s1404_s4 + $0x30] sm:$0xff]  ;;  %v353_v45 = vld [vmem:[#allocation2 + $0xa0] sm:$0xff] }
  0x57   : > { %950 = vmatprep.subr.bf16.mxu0 %v1153_v9  ;;  %1060 = vmatprep.subr.bf16.mxu1 %v1153_v9  ;;  %v263_v52 = vld [vmem:[%s1404_s4 + $0x78] sm:$0xff]  ;;  %v277_v55 = vunpack.c.l.s8.bf16 %v255_v51  ;;  %v262_v58 = vld [vmem:[%s1404_s4 + $0x70] sm:$0xff]  ;;  %v276_v59 = vunpack.c.l.s8.bf16 %v254_v57  ;;  %v279_v61 = vunpack.c.h.s8.bf16 %v255_v51  ;;  %v278_v63 = vunpack.c.h.s8.bf16 %v254_v57  ;;  %v338_v51 = vld [vmem:[#allocation2 + $0x28] sm:$0xff] }
  0x58   : > { %v293_v56 = vunpack.c.l.s8.bf16 %v263_v52  ;;  %v292_v60 = vunpack.c.l.s8.bf16 %v262_v58  ;;  %v295_v62 = vunpack.c.h.s8.bf16 %v263_v52  ;;  %v294_v0 = vunpack.c.h.s8.bf16 %v262_v58  ;;  %v352_v33 = vld [vmem:[#allocation2 + $0x98] sm:$0xff] }
  0x5a   : > { %951 = vmatpush3.bf16.msra.mxu0 %v1154_v10  ;;  %1068 = vmatpush3.bf16.msra.mxu1 %v1154_v10 }
  0x5b   : > { %952 = vmatprep.subr.bf16.mxu0 %v1155_v11  ;;  %1061 = vmatprep.subr.bf16.mxu1 %v1155_v11  ;;  %v334_v11 = vld [vmem:[#allocation2 + $0x8] sm:$0xff] }
  0x5e   : > { %953 = vmatpush3.bf16.msra.mxu0 %v1156_v12  ;;  %1069 = vmatpush3.bf16.msra.mxu1 %v1156_v12 }
  0x5f   : > { %954 = vmatprep.subr.bf16.mxu0 %v1157_v13  ;;  %1062 = vmatprep.subr.bf16.mxu1 %v1157_v13  ;;  %v350_v13 = vld [vmem:[#allocation2 + $0x88] sm:$0xff] }
  0x62   : > { %955 = vmatpush3.bf16.msra.mxu0 %v1158_v14  ;;  %1070 = vmatpush3.bf16.msra.mxu1 %v1158_v14 }
  0x63   : > { %956 = vmatprep.subr.bf16.mxu0 %v1159_v15  ;;  %1063 = vmatprep.subr.bf16.mxu1 %v1159_v15 }
  0x66   : > { %957 = vmatpush3.bf16.msra.mxu0 %v1160_v16  ;;  %1071 = vmatpush3.bf16.msra.mxu1 %v1160_v16 }
  0x67   : > { %958 = vmatprep.subr.bf16.mxu0 %v1161_v17  ;;  %1064 = vmatprep.subr.bf16.mxu1 %v1161_v17 }
  0x6a   : > { %959 = vmatpush3.bf16.msra.mxu0 %v1162_v18  ;;  %1072 = vmatpush3.bf16.msra.mxu1 %v1162_v18 }
  0x6b   : > { %960 = vmatprep.subr.bf16.mxu0 %v1163_v19  ;;  %1065 = vmatprep.subr.bf16.mxu1 %v1163_v19 }
  0x6e   : > { %961 = vmatpush3.bf16.msra.mxu0 %v1164_v20  ;;  %1073 = vmatpush3.bf16.msra.mxu1 %v1164_v20 }
  0x71   : > { %494 = vmatmul.mubr.bf16.vlgmr.msra.gmra.mrb[0].mxu0 %v264_v23  ;;  %558 = vmatmul.mubr.bf16.vlgmr.msra.gmra.mrb[0].mxu1 %v280_v24  ;;  %v335_v23 = vld [vmem:[#allocation2 + $0x10] sm:$0xff] }
  0x72   : > { %501 = vmatprep.mubr.bf16.mxu0 %v267_v25  ;;  %565 = vmatprep.mubr.bf16.mxu1 %v283_v26  ;;  %v351_v25 = vld [vmem:[#allocation2 + $0x90] sm:$0xff] }
  0x79   : > { %502 = vmatmul.mubr.bf16.gmra.mrb[4].mxu0 %v266_v29  ;;  %566 = vmatmul.mubr.bf16.gmra.mrb[4].mxu1 %v282_v30 }
  0x7a   : > { %509 = vmatprep.mubr.bf16.mxu0 %v269_v31  ;;  %573 = vmatprep.mubr.bf16.mxu1 %v285_v32  ;;  %v336_v31 = vld [vmem:[#allocation2 + $0x18] sm:$0xff] }
  0x81   : > { %510 = vmatmul.mubr.bf16.gmra.mrb[8].mxu0 %v268_v35  ;;  %574 = vmatmul.mubr.bf16.gmra.mrb[8].mxu1 %v284_v36 }
  0x82   : > { %517 = vmatprep.mubr.bf16.mxu0 %v271_v37  ;;  %581 = vmatprep.mubr.bf16.mxu1 %v287_v38 }
  0x89   : > { %518 = vmatmul.mubr.bf16.gmra.mrb[12].mxu0 %v270_v41  ;;  %582 = vmatmul.mubr.bf16.gmra.mrb[12].mxu1 %v286_v42 }
  0x8a   : > { %525 = vmatprep.mubr.bf16.mxu0 %v273_v43  ;;  %589 = vmatprep.mubr.bf16.mxu1 %v289_v44  ;;  %v337_v43 = vld [vmem:[#allocation2 + $0x20] sm:$0xff] }
  0x91   : > { %526 = vmatmul.mubr.bf16.gmra.mrb[16].mxu0 %v272_v47  ;;  %590 = vmatmul.mubr.bf16.gmra.mrb[16].mxu1 %v288_v48 }
  0x92   : > { %533 = vmatprep.mubr.bf16.mxu0 %v275_v49  ;;  %597 = vmatprep.mubr.bf16.mxu1 %v291_v50 }
  0x99   : > { %534 = vmatmul.mubr.bf16.gmra.mrb[20].mxu0 %v274_v53  ;;  %598 = vmatmul.mubr.bf16.gmra.mrb[20].mxu1 %v290_v54  ;;  %v354_v53 = vld [vmem:[#allocation2 + $0xa8] sm:$0xff] }
  0x9a   : > { %541 = vmatprep.mubr.bf16.mxu0 %v277_v55  ;;  %605 = vmatprep.mubr.bf16.mxu1 %v293_v56 }
  0xa1   : > { %542 = vmatmul.mubr.bf16.gmra.mrb[24].mxu0 %v276_v59  ;;  %606 = vmatmul.mubr.bf16.gmra.mrb[24].mxu1 %v292_v60 }
  0xa2   : > { %549 = vmatprep.mubr.bf16.mxu0 %v279_v61  ;;  %613 = vmatprep.mubr.bf16.mxu1 %v295_v62 }
  0xa9   : > { %550 = vmatmul.mubr.bf16.gmra.mrb[28].mxu0 %v278_v63  ;;  %614 = vmatmul.mubr.bf16.gmra.mrb[28].mxu1 %v294_v0  ;;  %v339_v63 = vld [vmem:[#allocation2 + $0x30] sm:$0xff] }
 0x144   : > { %v962_v1 = vpop.f32.mrb[0].mxu0  ;;  %v1010_v2 = vpop.f32.mrb[0].mxu1 }
 0x145   : > { %v963_v4 = vpop.f32.mrb[1].mxu0  ;;  %v1011_v6 = vpop.f32.mrb[1].mxu1 }
 0x146   : > { %v964_v7 = vadd.f32 %v963_v4, %v962_v1  ;;  %v1012_v8 = vadd.f32 %v1011_v6, %v1010_v2  ;;  %v965_v9 = vpop.f32.mrb[2].mxu0  ;;  %v1013_v10 = vpop.f32.mrb[2].mxu1  ;;  %v355_v1 = vld [vmem:[#allocation2 + $0xb0] sm:$0xff] }
 0x147   : > { %v966_v12 = vpop.f32.mrb[3].mxu0  ;;  %v1014_v14 = vpop.f32.mrb[3].mxu1 }
 0x148   : > { %v622_v15 = vadd.f32 %v964_v7, %v333_v3  ;;  %v638_v16 = vadd.f32 %v1012_v8, %v349_v5  ;;  %v967_v17 = vadd.f32 %v966_v12, %v965_v9  ;;  %v1015_v18 = vadd.f32 %v1014_v14, %v1013_v10  ;;  %v340_v7 = vld [vmem:[#allocation2 + $0x38] sm:$0xff] }
 0x149   : > { %v356_v9 = vld [vmem:[#allocation2 + $0xb8] sm:$0xff] }
 0x14a   : > { %654 = vst [vmem:[#allocation2] sm:$0xff] %v622_v15  ;;  %670 = vst [vmem:[#allocation2 + $0x80] sm:$0xff] %v638_v16  ;;  %v623_v19 = vadd.f32 %v967_v17, %v334_v11  ;;  %v639_v20 = vadd.f32 %v1015_v18, %v350_v13 }
 0x14c   : > { %655 = vst [vmem:[#allocation2 + $0x8] sm:$0xff] %v623_v19  ;;  %671 = vst [vmem:[#allocation2 + $0x88] sm:$0xff] %v639_v20  ;;  %v968_v21 = vpop.f32.mrb[4].mxu0  ;;  %v1016_v22 = vpop.f32.mrb[4].mxu1  ;;  %v341_v19 = vld [vmem:[#allocation2 + $0x40] sm:$0xff] }
 0x14d   : > { %v969_v24 = vpop.f32.mrb[5].mxu0  ;;  %v1017_v26 = vpop.f32.mrb[5].mxu1 }
 0x14e   : > { %v970_v27 = vadd.f32 %v969_v24, %v968_v21  ;;  %v1018_v28 = vadd.f32 %v1017_v26, %v1016_v22  ;;  %v971_v29 = vpop.f32.mrb[6].mxu0  ;;  %v1019_v30 = vpop.f32.mrb[6].mxu1  ;;  %v357_v21 = vld [vmem:[#allocation2 + $0xc0] sm:$0xff] }
 0x14f   : > { %v972_v32 = vpop.f32.mrb[7].mxu0  ;;  %v1020_v34 = vpop.f32.mrb[7].mxu1 }
 0x150   : > { %v624_v35 = vadd.f32 %v970_v27, %v335_v23  ;;  %v640_v36 = vadd.f32 %v1018_v28, %v351_v25  ;;  %v973_v37 = vadd.f32 %v972_v32, %v971_v29  ;;  %v1021_v38 = vadd.f32 %v1020_v34, %v1019_v30  ;;  %v342_v27 = vld [vmem:[#allocation2 + $0x48] sm:$0xff] }
 0x151   : > { %v358_v29 = vld [vmem:[#allocation2 + $0xc8] sm:$0xff] }
 0x152   : > { %656 = vst [vmem:[#allocation2 + $0x10] sm:$0xff] %v624_v35  ;;  %672 = vst [vmem:[#allocation2 + $0x90] sm:$0xff] %v640_v36  ;;  %v625_v39 = vadd.f32 %v973_v37, %v336_v31  ;;  %v641_v40 = vadd.f32 %v1021_v38, %v352_v33 }
 0x154   : > { %657 = vst [vmem:[#allocation2 + $0x18] sm:$0xff] %v625_v39  ;;  %673 = vst [vmem:[#allocation2 + $0x98] sm:$0xff] %v641_v40  ;;  %v974_v41 = vpop.f32.mrb[8].mxu0  ;;  %v1022_v42 = vpop.f32.mrb[8].mxu1  ;;  %v343_v39 = vld [vmem:[#allocation2 + $0x50] sm:$0xff] }
 0x155   : > { %v975_v44 = vpop.f32.mrb[9].mxu0  ;;  %v1023_v46 = vpop.f32.mrb[9].mxu1 }
 0x156   : > { %v976_v47 = vadd.f32 %v975_v44, %v974_v41  ;;  %v1024_v48 = vadd.f32 %v1023_v46, %v1022_v42  ;;  %v977_v49 = vpop.f32.mrb[10].mxu0  ;;  %v1025_v50 = vpop.f32.mrb[10].mxu1  ;;  %v359_v41 = vld [vmem:[#allocation2 + $0xd0] sm:$0xff] }
 0x157   : > { %v978_v52 = vpop.f32.mrb[11].mxu0  ;;  %v1026_v54 = vpop.f32.mrb[11].mxu1 }
 0x158   : > { %v626_v55 = vadd.f32 %v976_v47, %v337_v43  ;;  %v642_v56 = vadd.f32 %v1024_v48, %v353_v45  ;;  %v979_v57 = vadd.f32 %v978_v52, %v977_v49  ;;  %v1027_v58 = vadd.f32 %v1026_v54, %v1025_v50  ;;  %v344_v47 = vld [vmem:[#allocation2 + $0x58] sm:$0xff] }
 0x159   : > { %v360_v49 = vld [vmem:[#allocation2 + $0xd8] sm:$0xff] }
 0x15a   : > { %658 = vst [vmem:[#allocation2 + $0x20] sm:$0xff] %v626_v55  ;;  %674 = vst [vmem:[#allocation2 + $0xa0] sm:$0xff] %v642_v56  ;;  %v627_v59 = vadd.f32 %v979_v57, %v338_v51  ;;  %v643_v60 = vadd.f32 %v1027_v58, %v354_v53 }
 0x15c   : > { %659 = vst [vmem:[#allocation2 + $0x28] sm:$0xff] %v627_v59  ;;  %675 = vst [vmem:[#allocation2 + $0xa8] sm:$0xff] %v643_v60  ;;  %v980_v61 = vpop.f32.mrb[12].mxu0  ;;  %v1028_v62 = vpop.f32.mrb[12].mxu1  ;;  %v345_v59 = vld [vmem:[#allocation2 + $0x60] sm:$0xff] }
 0x15d   : > { %v981_v0 = vpop.f32.mrb[13].mxu0  ;;  %v1029_v2 = vpop.f32.mrb[13].mxu1 }
 0x15e   : > { %v982_v3 = vadd.f32 %v981_v0, %v980_v61  ;;  %v1030_v4 = vadd.f32 %v1029_v2, %v1028_v62  ;;  %v983_v5 = vpop.f32.mrb[14].mxu0  ;;  %v1031_v6 = vpop.f32.mrb[14].mxu1  ;;  %v361_v61 = vld [vmem:[#allocation2 + $0xe0] sm:$0xff] }
 0x15f   : > { %v984_v8 = vpop.f32.mrb[15].mxu0  ;;  %v1032_v10 = vpop.f32.mrb[15].mxu1 }
 0x160   : > { %v628_v11 = vadd.f32 %v982_v3, %v339_v63  ;;  %v644_v12 = vadd.f32 %v1030_v4, %v355_v1  ;;  %v985_v13 = vadd.f32 %v984_v8, %v983_v5  ;;  %v1033_v14 = vadd.f32 %v1032_v10, %v1031_v6  ;;  %v346_v3 = vld [vmem:[#allocation2 + $0x68] sm:$0xff] }
 0x161   : > { %v362_v5 = vld [vmem:[#allocation2 + $0xe8] sm:$0xff] }
 0x162   : > { %660 = vst [vmem:[#allocation2 + $0x30] sm:$0xff] %v628_v11  ;;  %676 = vst [vmem:[#allocation2 + $0xb0] sm:$0xff] %v644_v12  ;;  %v629_v15 = vadd.f32 %v985_v13, %v340_v7  ;;  %v645_v16 = vadd.f32 %v1033_v14, %v356_v9 }
 0x164   : > { %661 = vst [vmem:[#allocation2 + $0x38] sm:$0xff] %v629_v15  ;;  %677 = vst [vmem:[#allocation2 + $0xb8] sm:$0xff] %v645_v16  ;;  %v986_v17 = vpop.f32.mrb[16].mxu0  ;;  %v1034_v18 = vpop.f32.mrb[16].mxu1  ;;  %v347_v15 = vld [vmem:[#allocation2 + $0x70] sm:$0xff] }
 0x165   : > { %v987_v20 = vpop.f32.mrb[17].mxu0  ;;  %v1035_v22 = vpop.f32.mrb[17].mxu1 }
 0x166   : > { %v988_v23 = vadd.f32 %v987_v20, %v986_v17  ;;  %v1036_v24 = vadd.f32 %v1035_v22, %v1034_v18  ;;  %v989_v25 = vpop.f32.mrb[18].mxu0  ;;  %v1037_v26 = vpop.f32.mrb[18].mxu1  ;;  %v363_v17 = vld [vmem:[#allocation2 + $0xf0] sm:$0xff] }
 0x167   : > { %v990_v28 = vpop.f32.mrb[19].mxu0  ;;  %v1038_v30 = vpop.f32.mrb[19].mxu1 }
 0x168   : > { %v630_v31 = vadd.f32 %v988_v23, %v341_v19  ;;  %v646_v32 = vadd.f32 %v1036_v24, %v357_v21  ;;  %v991_v33 = vadd.f32 %v990_v28, %v989_v25  ;;  %v1039_v34 = vadd.f32 %v1038_v30, %v1037_v26  ;;  %v348_v23 = vld [vmem:[#allocation2 + $0x78] sm:$0xff] }
 0x169   : > { %v364_v25 = vld [vmem:[#allocation2 + $0xf8] sm:$0xff] }
 0x16a   : > { %662 = vst [vmem:[#allocation2 + $0x40] sm:$0xff] %v630_v31  ;;  %678 = vst [vmem:[#allocation2 + $0xc0] sm:$0xff] %v646_v32  ;;  %v631_v35 = vadd.f32 %v991_v33, %v342_v27  ;;  %v647_v36 = vadd.f32 %v1039_v34, %v358_v29  ;;  %v690_v33 = vld [vmem:[#allocation2] sm:$0xff] (!%p941_p7)  ;;  %v691_v34 = vld [vmem:[#allocation2 + $0x8] sm:$0xff] (!%p941_p7) }
 0x16c   : > { %663 = vst [vmem:[#allocation2 + $0x48] sm:$0xff] %v631_v35  ;;  %679 = vst [vmem:[#allocation2 + $0xc8] sm:$0xff] %v647_v36  ;;  %v992_v37 = vpop.f32.mrb[20].mxu0  ;;  %v1040_v38 = vpop.f32.mrb[20].mxu1  ;;  %v1467_v35 = vld [vmem:[%s1543_s2] ss:$0 sm:$0xff] (!%p941_p7) }
 0x16d   : > { %v993_v40 = vpop.f32.mrb[21].mxu0  ;;  %v1041_v42 = vpop.f32.mrb[21].mxu1  ;;  %v729_v36 = vadd.f32 (!%p941_p7), %v1467_v35, %v690_v33  ;;  %v712_v33 = vld [vmem:[#allocation2 + $0xb0] sm:$0xff] (!%p941_p7) }
 0x16e   : > { %v994_v43 = vadd.f32 %v993_v40, %v992_v37  ;;  %v1042_v44 = vadd.f32 %v1041_v42, %v1040_v38  ;;  %v995_v45 = vpop.f32.mrb[22].mxu0  ;;  %v1043_v46 = vpop.f32.mrb[22].mxu1  ;;  %v730_v37 = vadd.f32 (!%p941_p7), %v1467_v35, %v691_v34  ;;  %v692_v38 = vld [vmem:[#allocation2 + $0x10] sm:$0xff] (!%p941_p7)  ;;  %v694_v40 = vld [vmem:[#allocation2 + $0x20] sm:$0xff] (!%p941_p7)  ;;  %v713_v34 = vld [vmem:[#allocation2 + $0xb8] sm:$0xff] (!%p941_p7) }
 0x16f   : > { %v996_v48 = vpop.f32.mrb[23].mxu0  ;;  %v1044_v50 = vpop.f32.mrb[23].mxu1 }
 0x170   : > { %v632_v51 = vadd.f32 %v994_v43, %v343_v39  ;;  %v648_v52 = vadd.f32 %v1042_v44, %v359_v41  ;;  %v997_v53 = vadd.f32 %v996_v48, %v995_v45  ;;  %v1045_v54 = vadd.f32 %v1044_v50, %v1043_v46  ;;  %v693_v39 = vld [vmem:[#allocation2 + $0x18] sm:$0xff] (!%p941_p7)  ;;  %v695_v43 = vld [vmem:[#allocation2 + $0x28] sm:$0xff] (!%p941_p7)  ;;  %v696_v45 = vld [vmem:[#allocation2 + $0x30] sm:$0xff] (!%p941_p7) }
 0x171   : > { %v731_v41 = vadd.f32 (!%p941_p7), %v1467_v35, %v692_v38  ;;  %v732_v42 = vadd.f32 (!%p941_p7), %v1467_v35, %v693_v39  ;;  %v733_v44 = vadd.f32 (!%p941_p7), %v1467_v35, %v694_v40  ;;  %v697_v46 = vld [vmem:[#allocation2 + $0x38] sm:$0xff] (!%p941_p7)  ;;  %v762_v48 = vmax.f32 (!%p941_p7), %v730_v37, 0.0  ;;  %v714_v40 = vld [vmem:[#allocation2 + $0xc0] sm:$0xff] (!%p941_p7) }
 0x172   : > { %664 = vst [vmem:[#allocation2 + $0x50] sm:$0xff] %v632_v51  ;;  %680 = vst [vmem:[#allocation2 + $0xd0] sm:$0xff] %v648_v52  ;;  %v633_v55 = vadd.f32 %v997_v53, %v344_v47  ;;  %v649_v56 = vadd.f32 %v1045_v54, %v360_v49  ;;  %v761_v47 = vmax.f32 (!%p941_p7), %v729_v36, 0.0  ;;  %v734_v49 = vadd.f32 (!%p941_p7), %v1467_v35, %v695_v43  ;;  %v698_v51 = vld [vmem:[#allocation2 + $0x40] sm:$0xff] (!%p941_p7) }
 0x173   : > { %v735_v50 = vadd.f32 (!%p941_p7), %v1467_v35, %v696_v45  ;;  %v699_v52 = vld [vmem:[#allocation2 + $0x48] sm:$0xff] (!%p941_p7)  ;;  %v763_v54 = vmax.f32 (!%p941_p7), %v731_v41, 0.0 }
 0x174   : > { %665 = vst [vmem:[#allocation2 + $0x58] sm:$0xff] %v633_v55  ;;  %681 = vst [vmem:[#allocation2 + $0xd8] sm:$0xff] %v649_v56  ;;  %v998_v57 = vpop.f32.mrb[24].mxu0  ;;  %v1046_v58 = vpop.f32.mrb[24].mxu1  ;;  %v764_v55 = vmax.f32 (!%p941_p7), %v732_v42, 0.0  ;;  %v765_v56 = vmax.f32 (!%p941_p7), %v733_v44, 0.0 }
 0x175   : > { %v999_v60 = vpop.f32.mrb[25].mxu0  ;;  %v1047_v62 = vpop.f32.mrb[25].mxu1  ;;  %v715_v41 = vld [vmem:[#allocation2 + $0xc8] sm:$0xff] (!%p941_p7) }
 0x176   : > { %v1000_v63 = vadd.f32 %v999_v60, %v998_v57  ;;  %v1048_v0 = vadd.f32 %v1047_v62, %v1046_v58  ;;  %v1001_v1 = vpop.f32.mrb[26].mxu0  ;;  %v1049_v2 = vpop.f32.mrb[26].mxu1  ;;  %v736_v57 = vadd.f32 (!%p941_p7), %v1467_v35, %v697_v46  ;;  %v793_v60 = vpack.c.bf16 (!%p941_p7), %v762_v48, %v761_v47 }
 0x177   : > { %v1002_v4 = vpop.f32.mrb[27].mxu0  ;;  %v1050_v6 = vpop.f32.mrb[27].mxu1  ;;  %v767_v62 = vmax.f32 (!%p941_p7), %v735_v50, 0.0  ;;  %v752_v50 = vadd.f32 (!%p941_p7), %v1467_v35, %v713_v34 }
 0x178   : > { %v634_v7 = vadd.f32 %v1000_v63, %v345_v59  ;;  %v650_v8 = vadd.f32 %v1048_v0, %v361_v61  ;;  %v1003_v9 = vadd.f32 %v1002_v4, %v1001_v1  ;;  %v1051_v10 = vadd.f32 %v1050_v6, %v1049_v2  ;;  %809 = vst [vmem:[%s1414_s24] sm:$0xff] (!%p941_p7), %v793_v60 }
 0x179   : > { %v700_v53 = vld [vmem:[#allocation2 + $0x50] sm:$0xff] (!%p941_p7)  ;;  %v766_v61 = vmax.f32 (!%p941_p7), %v734_v49, 0.0  ;;  %v737_v63 = vadd.f32 (!%p941_p7), %v1467_v35, %v698_v51  ;;  %v794_v1 = vpack.c.bf16 (!%p941_p7), %v764_v55, %v763_v54  ;;  %v768_v2 = vmax.f32 (!%p941_p7), %v736_v57, 0.0 }
 0x17a   : > { %666 = vst [vmem:[#allocation2 + $0x60] sm:$0xff] %v634_v7  ;;  %682 = vst [vmem:[#allocation2 + $0xe0] sm:$0xff] %v650_v8  ;;  %v635_v11 = vadd.f32 %v1003_v9, %v346_v3  ;;  %v651_v12 = vadd.f32 %v1051_v10, %v362_v5  ;;  %v738_v3 = vadd.f32 (!%p941_p7), %v1467_v35, %v699_v52  ;;  %v716_v46 = vld [vmem:[#allocation2 + $0xd0] sm:$0xff] (!%p941_p7)  ;;  %v784_v60 = vmax.f32 (!%p941_p7), %v752_v50, 0.0 }
 0x17b   : > { %v701_v58 = vld [vmem:[#allocation2 + $0x58] sm:$0xff] (!%p941_p7)  ;;  %v739_v4 = vadd.f32 (!%p941_p7), %v1467_v35, %v700_v53  ;;  %v795_v7 = vpack.c.bf16 (!%p941_p7), %v766_v61, %v765_v56  ;;  %v769_v8 = vmax.f32 (!%p941_p7), %v737_v63, 0.0  ;;  %810 = vst [vmem:[%s1414_s24 + $0x8] sm:$0xff] (!%p941_p7), %v794_v1  ;;  %v751_v49 = vadd.f32 (!%p941_p7), %v1467_v35, %v712_v33 }
 0x17c   : > { %667 = vst [vmem:[#allocation2 + $0x68] sm:$0xff] %v635_v11  ;;  %683 = vst [vmem:[#allocation2 + $0xe8] sm:$0xff] %v651_v12  ;;  %v1004_v13 = vpop.f32.mrb[28].mxu0  ;;  %v1052_v14 = vpop.f32.mrb[28].mxu1  ;;  %v740_v9 = vadd.f32 (!%p941_p7), %v1467_v35, %v701_v58  ;;  %v706_v11 = vld [vmem:[#allocation2 + $0x80] sm:$0xff] (!%p941_p7)  ;;  %v707_v12 = vld [vmem:[#allocation2 + $0x88] sm:$0xff] (!%p941_p7)  ;;  %v753_v54 = vadd.f32 (!%p941_p7), %v1467_v35, %v714_v40  ;;  %v754_v55 = vadd.f32 (!%p941_p7), %v1467_v35, %v715_v41 }
 0x17d   : > { %v1005_v16 = vpop.f32.mrb[29].mxu0  ;;  %v1053_v18 = vpop.f32.mrb[29].mxu1  ;;  %811 = vst [vmem:[%s1414_s24 + $0x10] sm:$0xff] (!%p941_p7), %v795_v7  ;;  %v717_v51 = vld [vmem:[#allocation2 + $0xd8] sm:$0xff] (!%p941_p7)  ;;  %v755_v61 = vadd.f32 (!%p941_p7), %v1467_v35, %v716_v46 }
 0x17e   : > { %v1006_v19 = vadd.f32 %v1005_v16, %v1004_v13  ;;  %v1054_v20 = vadd.f32 %v1053_v18, %v1052_v14  ;;  %v1007_v21 = vpop.f32.mrb[30].mxu0  ;;  %v1055_v22 = vpop.f32.mrb[30].mxu1  ;;  %689 = sbr.rel (%p941_p7) target bundleno = 404 (0x194), region = 44  ;;  %v796_v13 = vpack.c.bf16 (!%p941_p7), %v768_v2, %v767_v62  ;;  %v770_v14 = vmax.f32 (!%p941_p7), %v738_v3, 0.0 }
 0x17f   : > { %v1008_v24 = vpop.f32.mrb[31].mxu0  ;;  %v1056_v26 = vpop.f32.mrb[31].mxu1  ;;  %v772_v18 = vmax.f32 (!%p941_p7), %v740_v9, 0.0  ;;  %v785_v1 = vmax.f32 (!%p941_p7), %v753_v54, 0.0  ;;  %v786_v2 = vmax.f32 (!%p941_p7), %v754_v55, 0.0  ;;  %v756_v3 = vadd.f32 (!%p941_p7), %v1467_v35, %v717_v51 }
 0x180   : > { %v636_v27 = vadd.f32 %v1006_v19, %v347_v15  ;;  %v652_v28 = vadd.f32 %v1054_v20, %v363_v17  ;;  %v1009_v29 = vadd.f32 %v1008_v24, %v1007_v21  ;;  %v1057_v30 = vadd.f32 %v1056_v26, %v1055_v22  ;;  %v708_v17 = vld [vmem:[#allocation2 + $0x90] sm:$0xff] (!%p941_p7)  ;;  %v709_v22 = vld [vmem:[#allocation2 + $0x98] sm:$0xff] (!%p941_p7)  ;;  %812 = vst [vmem:[%s1414_s24 + $0x18] sm:$0xff] (!%p941_p7), %v796_v13 }
 0x181   : > { %v702_v59 = vld [vmem:[#allocation2 + $0x60] sm:$0xff] (!%p941_p7)  ;;  %v771_v15 = vmax.f32 (!%p941_p7), %v739_v4, 0.0  ;;  %v746_v26 = vadd.f32 (!%p941_p7), %v1467_v35, %v707_v12  ;;  %v748_v39 = vadd.f32 (!%p941_p7), %v1467_v35, %v709_v22  ;;  %v788_v9 = vmax.f32 (!%p941_p7), %v756_v3, 0.0 }
 0x182   : > { %668 = vst [vmem:[#allocation2 + $0x70] sm:$0xff] %v636_v27  ;;  %684 = vst [vmem:[#allocation2 + $0xf0] sm:$0xff] %v652_v28  ;;  %v637_v31 = vadd.f32 %v1009_v29, %v348_v23  ;;  %v653_v32 = vadd.f32 %v1057_v30, %v364_v25  ;;  %v741_v10 = vadd.f32 (!%p941_p7), %v1467_v35, %v702_v59  ;;  %v710_v27 = vld [vmem:[#allocation2 + $0xa0] sm:$0xff] (!%p941_p7)  ;;  %v711_v28 = vld [vmem:[#allocation2 + $0xa8] sm:$0xff] (!%p941_p7)  ;;  %v783_v59 = vmax.f32 (!%p941_p7), %v751_v49, 0.0 }
 0x183   : > { %v703_v0 = vld [vmem:[#allocation2 + $0x68] sm:$0xff] (!%p941_p7)  ;;  %v797_v23 = vpack.c.bf16 (!%p941_p7), %v770_v14, %v769_v8  ;;  %v745_v25 = vadd.f32 (!%p941_p7), %v1467_v35, %v706_v11  ;;  %v798_v29 = vpack.c.bf16 (!%p941_p7), %v772_v18, %v771_v15  ;;  %v778_v38 = vmax.f32 (!%p941_p7), %v746_v26, 0.0  ;;  %v718_v56 = vld [vmem:[#allocation2 + $0xe0] sm:$0xff] (!%p941_p7) }
 0x184   : > { %669 = vst [vmem:[#allocation2 + $0x78] sm:$0xff] %v637_v31  ;;  %685 = vst [vmem:[#allocation2 + $0xf8] sm:$0xff] %v653_v32  ;;  %v742_v16 = vadd.f32 (!%p941_p7), %v1467_v35, %v703_v0  ;;  %v773_v19 = vmax.f32 (!%p941_p7), %v741_v10, 0.0  ;;  %v747_v32 = vadd.f32 (!%p941_p7), %v1467_v35, %v708_v17  ;;  %v749_v44 = vadd.f32 (!%p941_p7), %v1467_v35, %v710_v27  ;;  %v719_v57 = vld [vmem:[#allocation2 + $0xe8] sm:$0xff] (!%p941_p7) }
 0x185   : > { %813 = vst [vmem:[%s1414_s24 + $0x20] sm:$0xff] %v797_v23  ;;  %v777_v37 = vmax.f32 %v745_v25, 0.0  ;;  %814 = vst [vmem:[%s1414_s24 + $0x28] sm:$0xff] %v798_v29  ;;  %v750_v45 = vadd.f32 %v1467_v35, %v711_v28  ;;  %v780_v48 = vmax.f32 %v748_v39, 0.0  ;;  %v804_v4 = vpack.c.bf16 %v784_v60, %v783_v59 }
 0x186   : > { %v774_v24 = vmax.f32 %v742_v16, 0.0  ;;  %v779_v43 = vmax.f32 %v747_v32, 0.0  ;;  %v781_v52 = vmax.f32 %v749_v44, 0.0  ;;  %v758_v7 = vadd.f32 %v1467_v35, %v719_v57 }
 0x187   : > { %v801_v47 = vpack.c.bf16 %v778_v38, %v777_v37  ;;  %v782_v53 = vmax.f32 %v750_v45, 0.0  ;;  %v805_v8 = vpack.c.bf16 %v786_v2, %v785_v1  ;;  %820 = vst [vmem:[%s1414_s24 + $0x58] sm:$0xff] %v804_v4 }
 0x188   : > { %v799_v36 = vpack.c.bf16 %v774_v24, %v773_v19  ;;  %v802_v58 = vpack.c.bf16 %v780_v48, %v779_v43  ;;  %v790_v13 = vmax.f32 %v758_v7, 0.0 }
 0x189   : > { %v704_v5 = vld [vmem:[#allocation2 + $0x70] sm:$0xff]  ;;  %817 = vst [vmem:[%s1414_s24 + $0x40] sm:$0xff] %v801_v47  ;;  %v803_v0 = vpack.c.bf16 %v782_v53, %v781_v52  ;;  %821 = vst [vmem:[%s1414_s24 + $0x60] sm:$0xff] %v805_v8 }
 0x18a   : > { %v743_v20 = vadd.f32 %v1467_v35, %v704_v5  ;;  %815 = vst [vmem:[%s1414_s24 + $0x30] sm:$0xff] %v799_v36  ;;  %v720_v62 = vld [vmem:[#allocation2 + $0xf0] sm:$0xff]  ;;  %818 = vst [vmem:[%s1414_s24 + $0x48] sm:$0xff] %v802_v58  ;;  %v787_v5 = vmax.f32 %v755_v61, 0.0 }
 0x18b   : > { %v705_v6 = vld [vmem:[#allocation2 + $0x78] sm:$0xff]  ;;  %819 = vst [vmem:[%s1414_s24 + $0x50] sm:$0xff] %v803_v0  ;;  %v759_v10 = vadd.f32 %v1467_v35, %v720_v62 }
 0x18c   : > { %v744_v21 = vadd.f32 %v1467_v35, %v705_v6  ;;  %v775_v30 = vmax.f32 %v743_v20, 0.0  ;;  %v721_v63 = vld [vmem:[#allocation2 + $0xf8] sm:$0xff]  ;;  %v757_v6 = vadd.f32 %v1467_v35, %v718_v56  ;;  %v806_v14 = vpack.c.bf16 %v788_v9, %v787_v5 }
 0x18d   : > { %v760_v11 = vadd.f32 %v1467_v35, %v721_v63  ;;  %v791_v15 = vmax.f32 %v759_v10, 0.0 }
 0x18e   : > { %v776_v31 = vmax.f32 %v744_v21, 0.0  ;;  %v789_v12 = vmax.f32 %v757_v6, 0.0  ;;  %822 = vst [vmem:[%s1414_s24 + $0x68] sm:$0xff] %v806_v14 }
 0x18f   : > { %v792_v16 = vmax.f32 %v760_v11, 0.0 }
 0x190   : > { %v800_v42 = vpack.c.bf16 %v776_v31, %v775_v30  ;;  %v807_v17 = vpack.c.bf16 %v790_v13, %v789_v12 }
 0x191   : > { %v808_v18 = vpack.c.bf16 %v792_v16, %v791_v15 }
 0x192   : > { %816 = vst [vmem:[%s1414_s24 + $0x38] sm:$0xff] %v800_v42  ;;  %823 = vst [vmem:[%s1414_s24 + $0x70] sm:$0xff] %v807_v17 }
 0x193   : > { %824 = vst [vmem:[%s1414_s24 + $0x78] sm:$0xff] %v808_v18 }
 0x194 PF: > { %s16_s19 = sadd.s32 1, %s1261_s19   ;;  %s1548_s12 = smov %s1237_s13 }
 0x195   : > { %p13_p6 = scmp.ge.s32.totalorder %s16_s19, 6   ;;  %s1549_s13 = smov %s1241_s14 }
 0x196   : > { %s1550_s14 = smov %s1355_s5  ;;  %s1551_s15 = smov %s1253_s17 }
 0x197   : > { %s1552_s16 = smov %s1257_s18  ;;  %s1553_s17 = smov %s1556_s21 }
 0x198   : > { %s1554_s18 = smov %s1560_s22  ;;  %15 = sbr.rel (!%p13_p6) target bundleno = 5 (0x5), region = 81 }
 0x19f   :  { %847 = vsyncpa [#allocation4], 1 }
 0x1a0   :  { %849 = vsyncpa [#allocation4 + $0x1], 1 }

// kernel: _gcn_forward_pallas.4
= control target key start
LH: loop header
LB: loop body
LE: loop exit
PB: predicated region body
PF: predicated region fallthrough
CT: control target
= control target key end

     0   :  { %s1249_s12 = smov 0   ;;  %s1251_s13 = smov 0   ;;  %s1460_s0 = inlined_call_operand.vmem [shape: s8[512,512], index: 0, kind: input, shape index: {}]   ;;  %s1461_s1 = inlined_call_operand.vmem [shape: bf16[512,128], index: 1, kind: input, shape index: {}]   ;;  %s1462_s2 = inlined_call_operand.vmem [shape: f32[1,128], index: 2, kind: input, shape index: {}]   ;;  %s1463_s3 = inlined_call_operand.vmem [shape: bf16[512,128], index: 3, kind: output, shape index: {}]  }
   0x1   :  { %s1253_s14 = smov 0   ;;  %s1255_s15 = smov 0  }
   0x2   :  { %s1257_s16 = smov 0   ;;  %s1259_s17 = smov 0  }
   0x3   :  { %s1261_s18 = smov 0  }
   0x4 LB: > { %s22_s19 = sadd.s32 1, %s1218_s16  ;;  %s25_s20 = sadd.s32 1, %s1222_s17  ;;  %s1226_s18 = sphi %s1261_s18, %s13_s18   ;;  %s1222_s17 = sphi %s1259_s17, %s1469_s17   ;;  %s1218_s16 = sphi %s1257_s16, %s1468_s16   ;;  %s1214_s15 = sphi %s1255_s15, %s1467_s15   ;;  %s1210_s14 = sphi %s1253_s14, %s1466_s14   ;;  %s1206_s13 = sphi %s1251_s13, %s1465_s13   ;;  %s1202_s12 = sphi %s1249_s12, %s1464_s12  }
   0x5   : > { %p23_p0 = scmp.ge.s32.totalorder %s22_s19, 2  ;;  %p41_p1 = scmp.ne.s32.totalorder %s1206_s13, %s1202_s12 }
   0x6   : > { %p42_p2 = scmp.eq.s32.totalorder %s1226_s18, 0  ;;  %s34_s24 = sadd.s32 1, %s1206_s13 }
   0x7   : > { %s1471_s19 = smov (%p23_p0, %s22_s19), 0  ;;  %s1473_s20 = smov (!%p23_p0, %s25_s20), %s1222_s17 }
   0x8   : > { %p43_p3 = por %p42_p2, %p41_p1  ;;  %p27_p4 = scmp.ge.s32.totalorder %s1473_s20, 2 }
   0x9   : > { %s30_s21 = ssub.s32 %s1218_s16, %s1471_s19  ;;  %p937_p6 = scmp.ge.s32.totalorder %s1226_s18, 4 }
   0xa   : > { %s1475_s20 = smov (%p27_p4, %s1473_s20), 0 }
   0xb   : > { %s29_s22 = ssub.s32 %s1222_s17, %s1475_s20  ;;  %141 = sbr.rel (%p937_p6) target bundleno = 33 (0x21), region = 24 }
   0xc   : > { %s31_s23 = sor.u32 %s30_s21, %s29_s22 }
   0xd   : > { %p32_p5 = scmp.eq.s32.totalorder %s31_s23, 0 }
   0xf   : > { %s1300_s25 = scalar_select %p32_p5, %s1206_s13, %s34_s24  }
  0x12   : > { %144 = sbr.rel (!%p43_p3) target bundleno = 33 (0x21), region = 28  ;;  %s146_s26 = sand.u32 (%p43_p3), 1, %s1206_s13  }
  0x13   : > { %s940_s27 = sshll.u32 (%p43_p3), %s1218_s16, 1  ;;  %s938_s28 = sshll.u32 (%p43_p3), %s146_s26, 7 }
  0x14   : > { %s970_s29 = sshll.u32 (%p43_p3), %s1222_s17, 5  ;;  %s148_s8 = scalar_lea.vmem (%p43_p3), [#allocation3], %s938_s28 }
  0x15   : > { %s152_s30 = sadd.s32 (%p43_p3), %s970_s29, %s940_s27 }
  0x16   : > { %s942_s4 = sshll.u32 (%p43_p3), %s152_s30, 3 }
  0x17   : > { %s1309_s7 = scalar_lea.vmem (%p43_p3), %s1460_s0, %s942_s4 }
  0x18   : > { %v167_v0 = vld [vmem:[%s1309_s7] sm:$0xff] (%p43_p3)  ;;  %v169_v1 = vld [vmem:[%s1309_s7 + $0x8] sm:$0xff] (%p43_p3) }
  0x19   : > { %v171_v2 = vld [vmem:[%s1309_s7 + $0x20] sm:$0xff]  ;;  %168 = vst [vmem:[%s148_s8] sm:$0xff] %v167_v0  ;;  %170 = vst [vmem:[%s148_s8 + $0x8] sm:$0xff] %v169_v1  ;;  %v173_v3 = vld [vmem:[%s1309_s7 + $0x28] sm:$0xff] }
  0x1a   : > { %172 = vst [vmem:[%s148_s8 + $0x10] sm:$0xff] %v171_v2  ;;  %v175_v4 = vld [vmem:[%s1309_s7 + $0x40] sm:$0xff]  ;;  %v177_v5 = vld [vmem:[%s1309_s7 + $0x48] sm:$0xff]  ;;  %174 = vst [vmem:[%s148_s8 + $0x18] sm:$0xff] %v173_v3 }
  0x1b   : > { %176 = vst [vmem:[%s148_s8 + $0x20] sm:$0xff] %v175_v4  ;;  %178 = vst [vmem:[%s148_s8 + $0x28] sm:$0xff] %v177_v5  ;;  %v179_v6 = vld [vmem:[%s1309_s7 + $0x60] sm:$0xff]  ;;  %v181_v7 = vld [vmem:[%s1309_s7 + $0x68] sm:$0xff] }
  0x1c   : > { %v183_v8 = vld [vmem:[%s1309_s7 + $0x80] sm:$0xff]  ;;  %180 = vst [vmem:[%s148_s8 + $0x30] sm:$0xff] %v179_v6  ;;  %182 = vst [vmem:[%s148_s8 + $0x38] sm:$0xff] %v181_v7  ;;  %v185_v9 = vld [vmem:[%s1309_s7 + $0x88] sm:$0xff] }
  0x1d   : > { %184 = vst [vmem:[%s148_s8 + $0x40] sm:$0xff] %v183_v8  ;;  %v187_v10 = vld [vmem:[%s1309_s7 + $0xa0] sm:$0xff]  ;;  %v189_v11 = vld [vmem:[%s1309_s7 + $0xa8] sm:$0xff]  ;;  %186 = vst [vmem:[%s148_s8 + $0x48] sm:$0xff] %v185_v9 }
  0x1e   : > { %188 = vst [vmem:[%s148_s8 + $0x50] sm:$0xff] %v187_v10  ;;  %190 = vst [vmem:[%s148_s8 + $0x58] sm:$0xff] %v189_v11  ;;  %v191_v12 = vld [vmem:[%s1309_s7 + $0xc0] sm:$0xff]  ;;  %v193_v13 = vld [vmem:[%s1309_s7 + $0xc8] sm:$0xff] }
  0x1f   : > { %v195_v14 = vld [vmem:[%s1309_s7 + $0xe0] sm:$0xff]  ;;  %192 = vst [vmem:[%s148_s8 + $0x60] sm:$0xff] %v191_v12  ;;  %194 = vst [vmem:[%s148_s8 + $0x68] sm:$0xff] %v193_v13  ;;  %v197_v15 = vld [vmem:[%s1309_s7 + $0xe8] sm:$0xff] }
  0x20   : > { %196 = vst [vmem:[%s148_s8 + $0x70] sm:$0xff] %v195_v14  ;;  %198 = vst [vmem:[%s148_s8 + $0x78] sm:$0xff] %v197_v15 }
  0x21 PF: > { %p943_p7 = scmp.ge.s32.totalorder %s1226_s18, 1  ;;  %p203_p8 = scmp.lt.s32.totalorder %s1226_s18, 5 }
  0x23   : > { %p204_p9 = pnand %p943_p7, %p203_p8 }
  0x24   : > { %s210_s9 = sand.u32 (!%p204_p9), 1, %s1202_s12   ;;  %s945_s10 = sshll.u32 (!%p204_p9), %s1214_s15, 4 }
  0x25   : > { %207 = sbr.rel (%p204_p9) target bundleno = 390 (0x186), region = 51  ;;  %s944_s11 = sshll.u32 (!%p204_p9), %s210_s9, 7 }
  0x26   : > { %p236_p10 = scmp.lt.s32.totalorder (!%p204_p9), %s945_s10, 31  ;;  %s1336_s26 = scalar_lea.vmem (!%p204_p9), [#allocation3], %s944_s11 }
  0x27   : > { %p947_p11 = scmp.ne.s32.totalorder (!%p204_p9), %s1210_s14, 0 }
  0x2c   : > { %s1477_s10 = smov (!%p236_p10, %s945_s10), 31  ;;  %245 = sbr.rel (%p947_p11) target bundleno = 62 (0x3e), region = 59 }
  0x2d   : > { %s946_s21 = sshll.u32 %s1477_s10, 3  ;;  %v1228_v16 = vmov (!%p947_p11), 0.0  }
  0x2e   : > { %s1334_s24 = scalar_lea.vmem %s1463_s3, %s946_s21  ;;  %246 = vst [vmem:[#allocation2] sm:$0xff] (!%p947_p11), %v1228_v16  ;;  %247 = vst [vmem:[#allocation2 + $0x8] sm:$0xff] (!%p947_p11), %v1228_v16 }
  0x2f   : > { %248 = vst [vmem:[#allocation2 + $0x10] sm:$0xff] (!%p947_p11), %v1228_v16  ;;  %249 = vst [vmem:[#allocation2 + $0x18] sm:$0xff] (!%p947_p11), %v1228_v16 }
  0x30   : > { %250 = vst [vmem:[#allocation2 + $0x20] sm:$0xff] (!%p947_p11), %v1228_v16  ;;  %251 = vst [vmem:[#allocation2 + $0x28] sm:$0xff] (!%p947_p11), %v1228_v16 }
  0x31   : > { %252 = vst [vmem:[#allocation2 + $0x30] sm:$0xff] (!%p947_p11), %v1228_v16  ;;  %253 = vst [vmem:[#allocation2 + $0x38] sm:$0xff] (!%p947_p11), %v1228_v16 }
  0x32   : > { %254 = vst [vmem:[#allocation2 + $0x40] sm:$0xff] (!%p947_p11), %v1228_v16  ;;  %255 = vst [vmem:[#allocation2 + $0x48] sm:$0xff] (!%p947_p11), %v1228_v16 }
  0x33   : > { %256 = vst [vmem:[#allocation2 + $0x50] sm:$0xff] %v1228_v16  ;;  %257 = vst [vmem:[#allocation2 + $0x58] sm:$0xff] %v1228_v16 }
  0x34   : > { %258 = vst [vmem:[#allocation2 + $0x60] sm:$0xff] %v1228_v16  ;;  %259 = vst [vmem:[#allocation2 + $0x68] sm:$0xff] %v1228_v16 }
  0x35   : > { %260 = vst [vmem:[#allocation2 + $0x70] sm:$0xff] %v1228_v16  ;;  %261 = vst [vmem:[#allocation2 + $0x78] sm:$0xff] %v1228_v16 }
  0x36   : > { %262 = vst [vmem:[#allocation2 + $0x80] sm:$0xff] %v1228_v16  ;;  %263 = vst [vmem:[#allocation2 + $0x88] sm:$0xff] %v1228_v16 }
  0x37   : > { %264 = vst [vmem:[#allocation2 + $0x90] sm:$0xff] %v1228_v16  ;;  %265 = vst [vmem:[#allocation2 + $0x98] sm:$0xff] %v1228_v16 }
  0x38   : > { %266 = vst [vmem:[#allocation2 + $0xa0] sm:$0xff] %v1228_v16  ;;  %267 = vst [vmem:[#allocation2 + $0xa8] sm:$0xff] %v1228_v16 }
  0x39   : > { %268 = vst [vmem:[#allocation2 + $0xb0] sm:$0xff] %v1228_v16  ;;  %269 = vst [vmem:[#allocation2 + $0xb8] sm:$0xff] %v1228_v16 }
  0x3a   : > { %270 = vst [vmem:[#allocation2 + $0xc0] sm:$0xff] %v1228_v16  ;;  %271 = vst [vmem:[#allocation2 + $0xc8] sm:$0xff] %v1228_v16 }
  0x3b   : > { %272 = vst [vmem:[#allocation2 + $0xd0] sm:$0xff] %v1228_v16  ;;  %273 = vst [vmem:[#allocation2 + $0xd8] sm:$0xff] %v1228_v16 }
  0x3c   : > { %274 = vst [vmem:[#allocation2 + $0xe0] sm:$0xff] %v1228_v16  ;;  %275 = vst [vmem:[#allocation2 + $0xe8] sm:$0xff] %v1228_v16 }
  0x3d   : > { %276 = vst [vmem:[#allocation2 + $0xf0] sm:$0xff] %v1228_v16  ;;  %277 = vst [vmem:[#allocation2 + $0xf8] sm:$0xff] %v1228_v16 }
  0x3e PF: > { %s948_s12 = sshll.u32 %s1210_s14, 8  ;;  %v1341_v17 = vld [vmem:[%s1336_s26 + $0x8] sm:$0xff]  ;;  %v278_v37 = vld [vmem:[%s1336_s26] sm:$0xff]  ;;  %v281_v43 = vld [vmem:[%s1336_s26 + $0x18] sm:$0xff]  ;;  %p966_p12 = scmp.ne.s32.totalorder %s1210_s14, 1 }
  0x3f   : > { %v1344_v18 = vld [vmem:[%s1336_s26 + $0x48] sm:$0xff]  ;;  %s327_s15 = sshra.s32 %s948_s12, 3  ;;  %v295_v19 = vunpack.c.l.s8.bf16 %v1341_v17  ;;  %v286_v38 = vld [vmem:[%s1336_s26 + $0x40] sm:$0xff]  ;;  %v294_v39 = vunpack.c.l.s8.bf16 %v278_v37  ;;  %v297_v41 = vunpack.c.h.s8.bf16 %v1341_v17  ;;  %v289_v44 = vld [vmem:[%s1336_s26 + $0x58] sm:$0xff]  ;;  %v296_v45 = vunpack.c.h.s8.bf16 %v278_v37 }
  0x40   : > { %v311_v20 = vunpack.c.l.s8.bf16 %v1344_v18  ;;  %s949_s27 = sshll.u32 %s327_s15, 2  ;;  %v310_v40 = vunpack.c.l.s8.bf16 %v286_v38  ;;  %v313_v42 = vunpack.c.h.s8.bf16 %v1344_v18  ;;  %v312_v46 = vunpack.c.h.s8.bf16 %v286_v38  ;;  %v280_v49 = vld [vmem:[%s1336_s26 + $0x10] sm:$0xff]  ;;  %v283_v55 = vld [vmem:[%s1336_s26 + $0x28] sm:$0xff]  ;;  %v282_v61 = vld [vmem:[%s1336_s26 + $0x20] sm:$0xff] }
  0x41   : > { %s1351_s30 = scalar_lea.vmem %s1461_s1, %s949_s27  ;;  %523 = vmatprep.mubr.bf16.mxu0 %v295_v19  ;;  %v299_v47 = vunpack.c.l.s8.bf16 %v281_v43  ;;  %v315_v48 = vunpack.c.l.s8.bf16 %v289_v44  ;;  %v288_v50 = vld [vmem:[%s1336_s26 + $0x50] sm:$0xff]  ;;  %v298_v51 = vunpack.c.l.s8.bf16 %v280_v49  ;;  %v301_v53 = vunpack.c.h.s8.bf16 %v281_v43  ;;  %v291_v56 = vld [vmem:[%s1336_s26 + $0x68] sm:$0xff]  ;;  %v290_v62 = vld [vmem:[%s1336_s26 + $0x60] sm:$0xff] }
  0x42   : > { %587 = vmatprep.mubr.bf16.mxu1 %v311_v20  ;;  %v1156_v21 = vld [vmem:[%s1351_s30 + $0x40] sm:$0xff]   ;;  %v1158_v23 = vld [vmem:[%s1351_s30 + $0x48] sm:$0xff]   ;;  %v1160_v25 = vld [vmem:[%s1351_s30 + $0x50] sm:$0xff]   ;;  %v314_v52 = vunpack.c.l.s8.bf16 %v288_v50  ;;  %v317_v54 = vunpack.c.h.s8.bf16 %v289_v44  ;;  %v300_v57 = vunpack.c.h.s8.bf16 %v280_v49  ;;  %v316_v58 = vunpack.c.h.s8.bf16 %v288_v50 }
  0x43   : > { %v1157_v22 = vld [vmem:[%s1351_s30] sm:$0xff]   ;;  %971 = vmatprep.subr.bf16.mxu0 %v1156_v21  ;;  %1083 = vmatprep.subr.bf16.mxu1 %v1156_v21  ;;  %v1159_v24 = vld [vmem:[%s1351_s30 + $0x8] sm:$0xff]   ;;  %v1161_v26 = vld [vmem:[%s1351_s30 + $0x10] sm:$0xff]   ;;  %v303_v59 = vunpack.c.l.s8.bf16 %v283_v55  ;;  %v319_v60 = vunpack.c.l.s8.bf16 %v291_v56  ;;  %v302_v63 = vunpack.c.l.s8.bf16 %v282_v61  ;;  %v318_v0 = vunpack.c.l.s8.bf16 %v290_v62 }
  0x44   : > { %972 = vmatpush3.bf16.msra.mxu0 %v1157_v22  ;;  %1091 = vmatpush3.bf16.msra.mxu1 %v1157_v22  ;;  %v1162_v27 = vld [vmem:[%s1351_s30 + $0x58] sm:$0xff]   ;;  %v1164_v29 = vld [vmem:[%s1351_s30 + $0x60] sm:$0xff]   ;;  %v1166_v31 = vld [vmem:[%s1351_s30 + $0x68] sm:$0xff]   ;;  %v305_v1 = vunpack.c.h.s8.bf16 %v283_v55  ;;  %v321_v2 = vunpack.c.h.s8.bf16 %v291_v56  ;;  %v304_v5 = vunpack.c.h.s8.bf16 %v282_v61  ;;  %v320_v6 = vunpack.c.h.s8.bf16 %v290_v62 }
  0x45   : > { %973 = vmatprep.subr.bf16.mxu0 %v1158_v23  ;;  %1084 = vmatprep.subr.bf16.mxu1 %v1158_v23  ;;  %v1163_v28 = vld [vmem:[%s1351_s30 + $0x18] sm:$0xff]   ;;  %v1165_v30 = vld [vmem:[%s1351_s30 + $0x20] sm:$0xff]   ;;  %v1167_v32 = vld [vmem:[%s1351_s30 + $0x28] sm:$0xff]  }
  0x46   : > { %v1168_v33 = vld [vmem:[%s1351_s30 + $0x70] sm:$0xff]   ;;  %v1170_v35 = vld [vmem:[%s1351_s30 + $0x78] sm:$0xff]   ;;  %v363_v19 = vld [vmem:[#allocation2] sm:$0xff] }
  0x47   : > { %v1169_v34 = vld [vmem:[%s1351_s30 + $0x30] sm:$0xff]   ;;  %v1171_v36 = vld [vmem:[%s1351_s30 + $0x38] sm:$0xff]   ;;  %v379_v21 = vld [vmem:[#allocation2 + $0x80] sm:$0xff] }
  0x48   : > { %974 = vmatpush3.bf16.msra.mxu0 %v1159_v24  ;;  %1092 = vmatpush3.bf16.msra.mxu1 %v1159_v24  ;;  %v285_v3 = vld [vmem:[%s1336_s26 + $0x38] sm:$0xff]  ;;  %v284_v9 = vld [vmem:[%s1336_s26 + $0x30] sm:$0xff]  ;;  %v383_v61 = vld [vmem:[#allocation2 + $0xa0] sm:$0xff] }
  0x49   : > { %975 = vmatprep.subr.bf16.mxu0 %v1160_v25  ;;  %1085 = vmatprep.subr.bf16.mxu1 %v1160_v25  ;;  %v293_v4 = vld [vmem:[%s1336_s26 + $0x78] sm:$0xff]  ;;  %v307_v7 = vunpack.c.l.s8.bf16 %v285_v3  ;;  %v292_v10 = vld [vmem:[%s1336_s26 + $0x70] sm:$0xff]  ;;  %v306_v11 = vunpack.c.l.s8.bf16 %v284_v9  ;;  %v309_v13 = vunpack.c.h.s8.bf16 %v285_v3  ;;  %v308_v15 = vunpack.c.h.s8.bf16 %v284_v9  ;;  %v368_v3 = vld [vmem:[#allocation2 + $0x28] sm:$0xff] }
  0x4a   : > { %v323_v8 = vunpack.c.l.s8.bf16 %v293_v4  ;;  %v322_v12 = vunpack.c.l.s8.bf16 %v292_v10  ;;  %v325_v14 = vunpack.c.h.s8.bf16 %v293_v4  ;;  %v324_v16 = vunpack.c.h.s8.bf16 %v292_v10  ;;  %v382_v49 = vld [vmem:[#allocation2 + $0x98] sm:$0xff] }
  0x4c   : > { %976 = vmatpush3.bf16.msra.mxu0 %v1161_v26  ;;  %1093 = vmatpush3.bf16.msra.mxu1 %v1161_v26 }
  0x4d   : > { %977 = vmatprep.subr.bf16.mxu0 %v1162_v27  ;;  %1086 = vmatprep.subr.bf16.mxu1 %v1162_v27  ;;  %v364_v27 = vld [vmem:[#allocation2 + $0x8] sm:$0xff] }
  0x50   : > { %978 = vmatpush3.bf16.msra.mxu0 %v1163_v28  ;;  %1094 = vmatpush3.bf16.msra.mxu1 %v1163_v28 }
  0x51   : > { %979 = vmatprep.subr.bf16.mxu0 %v1164_v29  ;;  %1087 = vmatprep.subr.bf16.mxu1 %v1164_v29  ;;  %v380_v29 = vld [vmem:[#allocation2 + $0x88] sm:$0xff] }
  0x54   : > { %980 = vmatpush3.bf16.msra.mxu0 %v1165_v30  ;;  %1095 = vmatpush3.bf16.msra.mxu1 %v1165_v30 }
  0x55   : > { %981 = vmatprep.subr.bf16.mxu0 %v1166_v31  ;;  %1088 = vmatprep.subr.bf16.mxu1 %v1166_v31 }
  0x58   : > { %982 = vmatpush3.bf16.msra.mxu0 %v1167_v32  ;;  %1096 = vmatpush3.bf16.msra.mxu1 %v1167_v32 }
  0x59   : > { %983 = vmatprep.subr.bf16.mxu0 %v1168_v33  ;;  %1089 = vmatprep.subr.bf16.mxu1 %v1168_v33 }
  0x5c   : > { %984 = vmatpush3.bf16.msra.mxu0 %v1169_v34  ;;  %1097 = vmatpush3.bf16.msra.mxu1 %v1169_v34 }
  0x5d   : > { %985 = vmatprep.subr.bf16.mxu0 %v1170_v35  ;;  %1090 = vmatprep.subr.bf16.mxu1 %v1170_v35 }
  0x60   : > { %986 = vmatpush3.bf16.msra.mxu0 %v1171_v36  ;;  %1098 = vmatpush3.bf16.msra.mxu1 %v1171_v36 }
  0x63   : > { %524 = vmatmul.mubr.bf16.vlgmr.msra.gmra.mrb[0].mxu0 %v294_v39  ;;  %588 = vmatmul.mubr.bf16.vlgmr.msra.gmra.mrb[0].mxu1 %v310_v40  ;;  %v365_v39 = vld [vmem:[#allocation2 + $0x10] sm:$0xff] }
  0x64   : > { %531 = vmatprep.mubr.bf16.mxu0 %v297_v41  ;;  %595 = vmatprep.mubr.bf16.mxu1 %v313_v42  ;;  %v381_v41 = vld [vmem:[#allocation2 + $0x90] sm:$0xff] }
  0x6b   : > { %532 = vmatmul.mubr.bf16.gmra.mrb[4].mxu0 %v296_v45  ;;  %596 = vmatmul.mubr.bf16.gmra.mrb[4].mxu1 %v312_v46 }
  0x6c   : > { %539 = vmatprep.mubr.bf16.mxu0 %v299_v47  ;;  %603 = vmatprep.mubr.bf16.mxu1 %v315_v48  ;;  %v366_v47 = vld [vmem:[#allocation2 + $0x18] sm:$0xff] }
  0x73   : > { %540 = vmatmul.mubr.bf16.gmra.mrb[8].mxu0 %v298_v51  ;;  %604 = vmatmul.mubr.bf16.gmra.mrb[8].mxu1 %v314_v52 }
  0x74   : > { %547 = vmatprep.mubr.bf16.mxu0 %v301_v53  ;;  %611 = vmatprep.mubr.bf16.mxu1 %v317_v54 }
  0x7b   : > { %548 = vmatmul.mubr.bf16.gmra.mrb[12].mxu0 %v300_v57  ;;  %612 = vmatmul.mubr.bf16.gmra.mrb[12].mxu1 %v316_v58 }
  0x7c   : > { %555 = vmatprep.mubr.bf16.mxu0 %v303_v59  ;;  %619 = vmatprep.mubr.bf16.mxu1 %v319_v60  ;;  %v367_v59 = vld [vmem:[#allocation2 + $0x20] sm:$0xff] }
  0x83   : > { %556 = vmatmul.mubr.bf16.gmra.mrb[16].mxu0 %v302_v63  ;;  %620 = vmatmul.mubr.bf16.gmra.mrb[16].mxu1 %v318_v0 }
  0x84   : > { %563 = vmatprep.mubr.bf16.mxu0 %v305_v1  ;;  %627 = vmatprep.mubr.bf16.mxu1 %v321_v2 }
  0x8b   : > { %564 = vmatmul.mubr.bf16.gmra.mrb[20].mxu0 %v304_v5  ;;  %628 = vmatmul.mubr.bf16.gmra.mrb[20].mxu1 %v320_v6  ;;  %v384_v5 = vld [vmem:[#allocation2 + $0xa8] sm:$0xff] }
  0x8c   : > { %571 = vmatprep.mubr.bf16.mxu0 %v307_v7  ;;  %635 = vmatprep.mubr.bf16.mxu1 %v323_v8 }
  0x93   : > { %572 = vmatmul.mubr.bf16.gmra.mrb[24].mxu0 %v306_v11  ;;  %636 = vmatmul.mubr.bf16.gmra.mrb[24].mxu1 %v322_v12 }
  0x94   : > { %579 = vmatprep.mubr.bf16.mxu0 %v309_v13  ;;  %643 = vmatprep.mubr.bf16.mxu1 %v325_v14 }
  0x9b   : > { %580 = vmatmul.mubr.bf16.gmra.mrb[28].mxu0 %v308_v15  ;;  %644 = vmatmul.mubr.bf16.gmra.mrb[28].mxu1 %v324_v16  ;;  %v369_v15 = vld [vmem:[#allocation2 + $0x30] sm:$0xff] }
 0x136   : > { %v987_v17 = vpop.f32.mrb[0].mxu0  ;;  %v1035_v18 = vpop.f32.mrb[0].mxu1 }
 0x137   : > { %v988_v20 = vpop.f32.mrb[1].mxu0  ;;  %v1036_v22 = vpop.f32.mrb[1].mxu1 }
 0x138   : > { %v989_v23 = vadd.f32 %v988_v20, %v987_v17  ;;  %v1037_v24 = vadd.f32 %v1036_v22, %v1035_v18  ;;  %v990_v25 = vpop.f32.mrb[2].mxu0  ;;  %v1038_v26 = vpop.f32.mrb[2].mxu1  ;;  %v385_v17 = vld [vmem:[#allocation2 + $0xb0] sm:$0xff] }
 0x139   : > { %v991_v28 = vpop.f32.mrb[3].mxu0  ;;  %v1039_v30 = vpop.f32.mrb[3].mxu1 }
 0x13a   : > { %v652_v31 = vadd.f32 %v989_v23, %v363_v19  ;;  %v668_v32 = vadd.f32 %v1037_v24, %v379_v21  ;;  %v992_v33 = vadd.f32 %v991_v28, %v990_v25  ;;  %v1040_v34 = vadd.f32 %v1039_v30, %v1038_v26  ;;  %v370_v23 = vld [vmem:[#allocation2 + $0x38] sm:$0xff] }
 0x13b   : > { %v386_v25 = vld [vmem:[#allocation2 + $0xb8] sm:$0xff] }
 0x13c   : > { %684 = vst [vmem:[#allocation2] sm:$0xff] %v652_v31  ;;  %700 = vst [vmem:[#allocation2 + $0x80] sm:$0xff] %v668_v32  ;;  %v653_v35 = vadd.f32 %v992_v33, %v364_v27  ;;  %v669_v36 = vadd.f32 %v1040_v34, %v380_v29 }
 0x13e   : > { %685 = vst [vmem:[#allocation2 + $0x8] sm:$0xff] %v653_v35  ;;  %701 = vst [vmem:[#allocation2 + $0x88] sm:$0xff] %v669_v36  ;;  %v993_v37 = vpop.f32.mrb[4].mxu0  ;;  %v1041_v38 = vpop.f32.mrb[4].mxu1  ;;  %v371_v35 = vld [vmem:[#allocation2 + $0x40] sm:$0xff] }
 0x13f   : > { %v994_v40 = vpop.f32.mrb[5].mxu0  ;;  %v1042_v42 = vpop.f32.mrb[5].mxu1 }
 0x140   : > { %v995_v43 = vadd.f32 %v994_v40, %v993_v37  ;;  %v1043_v44 = vadd.f32 %v1042_v42, %v1041_v38  ;;  %v996_v45 = vpop.f32.mrb[6].mxu0  ;;  %v1044_v46 = vpop.f32.mrb[6].mxu1  ;;  %v387_v37 = vld [vmem:[#allocation2 + $0xc0] sm:$0xff] }
 0x141   : > { %v997_v48 = vpop.f32.mrb[7].mxu0  ;;  %v1045_v50 = vpop.f32.mrb[7].mxu1 }
 0x142   : > { %v654_v51 = vadd.f32 %v995_v43, %v365_v39  ;;  %v670_v52 = vadd.f32 %v1043_v44, %v381_v41  ;;  %v998_v53 = vadd.f32 %v997_v48, %v996_v45  ;;  %v1046_v54 = vadd.f32 %v1045_v50, %v1044_v46  ;;  %v372_v43 = vld [vmem:[#allocation2 + $0x48] sm:$0xff] }
 0x143   : > { %v388_v45 = vld [vmem:[#allocation2 + $0xc8] sm:$0xff] }
 0x144   : > { %686 = vst [vmem:[#allocation2 + $0x10] sm:$0xff] %v654_v51  ;;  %702 = vst [vmem:[#allocation2 + $0x90] sm:$0xff] %v670_v52  ;;  %v655_v55 = vadd.f32 %v998_v53, %v366_v47  ;;  %v671_v56 = vadd.f32 %v1046_v54, %v382_v49 }
 0x146   : > { %687 = vst [vmem:[#allocation2 + $0x18] sm:$0xff] %v655_v55  ;;  %703 = vst [vmem:[#allocation2 + $0x98] sm:$0xff] %v671_v56  ;;  %v999_v57 = vpop.f32.mrb[8].mxu0  ;;  %v1047_v58 = vpop.f32.mrb[8].mxu1  ;;  %v373_v55 = vld [vmem:[#allocation2 + $0x50] sm:$0xff] }
 0x147   : > { %v1000_v60 = vpop.f32.mrb[9].mxu0  ;;  %v1048_v62 = vpop.f32.mrb[9].mxu1 }
 0x148   : > { %v1001_v63 = vadd.f32 %v1000_v60, %v999_v57  ;;  %v1049_v0 = vadd.f32 %v1048_v62, %v1047_v58  ;;  %v1002_v1 = vpop.f32.mrb[10].mxu0  ;;  %v1050_v2 = vpop.f32.mrb[10].mxu1  ;;  %v389_v57 = vld [vmem:[#allocation2 + $0xd0] sm:$0xff] }
 0x149   : > { %v1003_v4 = vpop.f32.mrb[11].mxu0  ;;  %v1051_v6 = vpop.f32.mrb[11].mxu1 }
 0x14a   : > { %v656_v7 = vadd.f32 %v1001_v63, %v367_v59  ;;  %v672_v8 = vadd.f32 %v1049_v0, %v383_v61  ;;  %v1004_v9 = vadd.f32 %v1003_v4, %v1002_v1  ;;  %v1052_v10 = vadd.f32 %v1051_v6, %v1050_v2  ;;  %v374_v63 = vld [vmem:[#allocation2 + $0x58] sm:$0xff] }
 0x14b   : > { %v390_v1 = vld [vmem:[#allocation2 + $0xd8] sm:$0xff] }
 0x14c   : > { %688 = vst [vmem:[#allocation2 + $0x20] sm:$0xff] %v656_v7  ;;  %704 = vst [vmem:[#allocation2 + $0xa0] sm:$0xff] %v672_v8  ;;  %v657_v11 = vadd.f32 %v1004_v9, %v368_v3  ;;  %v673_v12 = vadd.f32 %v1052_v10, %v384_v5 }
 0x14e   : > { %689 = vst [vmem:[#allocation2 + $0x28] sm:$0xff] %v657_v11  ;;  %705 = vst [vmem:[#allocation2 + $0xa8] sm:$0xff] %v673_v12  ;;  %v1005_v13 = vpop.f32.mrb[12].mxu0  ;;  %v1053_v14 = vpop.f32.mrb[12].mxu1  ;;  %v375_v11 = vld [vmem:[#allocation2 + $0x60] sm:$0xff] }
 0x14f   : > { %v1006_v16 = vpop.f32.mrb[13].mxu0  ;;  %v1054_v18 = vpop.f32.mrb[13].mxu1 }
 0x150   : > { %v1007_v19 = vadd.f32 %v1006_v16, %v1005_v13  ;;  %v1055_v20 = vadd.f32 %v1054_v18, %v1053_v14  ;;  %v1008_v21 = vpop.f32.mrb[14].mxu0  ;;  %v1056_v22 = vpop.f32.mrb[14].mxu1  ;;  %v391_v13 = vld [vmem:[#allocation2 + $0xe0] sm:$0xff] }
 0x151   : > { %v1009_v24 = vpop.f32.mrb[15].mxu0  ;;  %v1057_v26 = vpop.f32.mrb[15].mxu1 }
 0x152   : > { %v658_v27 = vadd.f32 %v1007_v19, %v369_v15  ;;  %v674_v28 = vadd.f32 %v1055_v20, %v385_v17  ;;  %v1010_v29 = vadd.f32 %v1009_v24, %v1008_v21  ;;  %v1058_v30 = vadd.f32 %v1057_v26, %v1056_v22  ;;  %v376_v19 = vld [vmem:[#allocation2 + $0x68] sm:$0xff] }
 0x153   : > { %v392_v21 = vld [vmem:[#allocation2 + $0xe8] sm:$0xff] }
 0x154   : > { %690 = vst [vmem:[#allocation2 + $0x30] sm:$0xff] %v658_v27  ;;  %706 = vst [vmem:[#allocation2 + $0xb0] sm:$0xff] %v674_v28  ;;  %v659_v31 = vadd.f32 %v1010_v29, %v370_v23  ;;  %v675_v32 = vadd.f32 %v1058_v30, %v386_v25 }
 0x156   : > { %691 = vst [vmem:[#allocation2 + $0x38] sm:$0xff] %v659_v31  ;;  %707 = vst [vmem:[#allocation2 + $0xb8] sm:$0xff] %v675_v32  ;;  %v1011_v33 = vpop.f32.mrb[16].mxu0  ;;  %v1059_v34 = vpop.f32.mrb[16].mxu1  ;;  %v377_v31 = vld [vmem:[#allocation2 + $0x70] sm:$0xff] }
 0x157   : > { %v1012_v36 = vpop.f32.mrb[17].mxu0  ;;  %v1060_v38 = vpop.f32.mrb[17].mxu1 }
 0x158   : > { %v1013_v39 = vadd.f32 %v1012_v36, %v1011_v33  ;;  %v1061_v40 = vadd.f32 %v1060_v38, %v1059_v34  ;;  %v1014_v41 = vpop.f32.mrb[18].mxu0  ;;  %v1062_v42 = vpop.f32.mrb[18].mxu1  ;;  %v393_v33 = vld [vmem:[#allocation2 + $0xf0] sm:$0xff] }
 0x159   : > { %v1015_v44 = vpop.f32.mrb[19].mxu0  ;;  %v1063_v46 = vpop.f32.mrb[19].mxu1 }
 0x15a   : > { %v660_v47 = vadd.f32 %v1013_v39, %v371_v35  ;;  %v676_v48 = vadd.f32 %v1061_v40, %v387_v37  ;;  %v1016_v49 = vadd.f32 %v1015_v44, %v1014_v41  ;;  %v1064_v50 = vadd.f32 %v1063_v46, %v1062_v42  ;;  %v378_v39 = vld [vmem:[#allocation2 + $0x78] sm:$0xff] }
 0x15b   : > { %v394_v41 = vld [vmem:[#allocation2 + $0xf8] sm:$0xff] }
 0x15c   : > { %692 = vst [vmem:[#allocation2 + $0x40] sm:$0xff] %v660_v47  ;;  %708 = vst [vmem:[#allocation2 + $0xc0] sm:$0xff] %v676_v48  ;;  %v661_v51 = vadd.f32 %v1016_v49, %v372_v43  ;;  %v677_v52 = vadd.f32 %v1064_v50, %v388_v45  ;;  %v720_v49 = vld [vmem:[#allocation2] sm:$0xff] (!%p966_p12)  ;;  %v721_v50 = vld [vmem:[#allocation2 + $0x8] sm:$0xff] (!%p966_p12) }
 0x15e   : > { %693 = vst [vmem:[#allocation2 + $0x48] sm:$0xff] %v661_v51  ;;  %709 = vst [vmem:[#allocation2 + $0xc8] sm:$0xff] %v677_v52  ;;  %v1017_v53 = vpop.f32.mrb[20].mxu0  ;;  %v1065_v54 = vpop.f32.mrb[20].mxu1  ;;  %v1389_v51 = vld [vmem:[%s1462_s2] ss:$0 sm:$0xff] (!%p966_p12) }
 0x15f   : > { %v1018_v56 = vpop.f32.mrb[21].mxu0  ;;  %v1066_v58 = vpop.f32.mrb[21].mxu1  ;;  %v759_v52 = vadd.f32 (!%p966_p12), %v1389_v51, %v720_v49  ;;  %v742_v49 = vld [vmem:[#allocation2 + $0xb0] sm:$0xff] (!%p966_p12) }
 0x160   : > { %v1019_v59 = vadd.f32 %v1018_v56, %v1017_v53  ;;  %v1067_v60 = vadd.f32 %v1066_v58, %v1065_v54  ;;  %v1020_v61 = vpop.f32.mrb[22].mxu0  ;;  %v1068_v62 = vpop.f32.mrb[22].mxu1  ;;  %v760_v53 = vadd.f32 (!%p966_p12), %v1389_v51, %v721_v50  ;;  %v722_v54 = vld [vmem:[#allocation2 + $0x10] sm:$0xff] (!%p966_p12)  ;;  %v724_v56 = vld [vmem:[#allocation2 + $0x20] sm:$0xff] (!%p966_p12)  ;;  %v743_v50 = vld [vmem:[#allocation2 + $0xb8] sm:$0xff] (!%p966_p12) }
 0x161   : > { %v1021_v0 = vpop.f32.mrb[23].mxu0  ;;  %v1069_v2 = vpop.f32.mrb[23].mxu1 }
 0x162   : > { %v662_v3 = vadd.f32 %v1019_v59, %v373_v55  ;;  %v678_v4 = vadd.f32 %v1067_v60, %v389_v57  ;;  %v1022_v5 = vadd.f32 %v1021_v0, %v1020_v61  ;;  %v1070_v6 = vadd.f32 %v1069_v2, %v1068_v62  ;;  %v723_v55 = vld [vmem:[#allocation2 + $0x18] sm:$0xff] (!%p966_p12)  ;;  %v725_v59 = vld [vmem:[#allocation2 + $0x28] sm:$0xff] (!%p966_p12)  ;;  %v726_v61 = vld [vmem:[#allocation2 + $0x30] sm:$0xff] (!%p966_p12) }
 0x163   : > { %v761_v57 = vadd.f32 (!%p966_p12), %v1389_v51, %v722_v54  ;;  %v762_v58 = vadd.f32 (!%p966_p12), %v1389_v51, %v723_v55  ;;  %v763_v60 = vadd.f32 (!%p966_p12), %v1389_v51, %v724_v56  ;;  %v727_v62 = vld [vmem:[#allocation2 + $0x38] sm:$0xff] (!%p966_p12)  ;;  %v792_v0 = vmax.f32 (!%p966_p12), %v760_v53, 0.0  ;;  %v744_v56 = vld [vmem:[#allocation2 + $0xc0] sm:$0xff] (!%p966_p12) }
 0x164   : > { %694 = vst [vmem:[#allocation2 + $0x50] sm:$0xff] %v662_v3  ;;  %710 = vst [vmem:[#allocation2 + $0xd0] sm:$0xff] %v678_v4  ;;  %v663_v7 = vadd.f32 %v1022_v5, %v374_v63  ;;  %v679_v8 = vadd.f32 %v1070_v6, %v390_v1  ;;  %v791_v63 = vmax.f32 (!%p966_p12), %v759_v52, 0.0  ;;  %v764_v1 = vadd.f32 (!%p966_p12), %v1389_v51, %v725_v59  ;;  %v728_v3 = vld [vmem:[#allocation2 + $0x40] sm:$0xff] (!%p966_p12) }
 0x165   : > { %v765_v2 = vadd.f32 (!%p966_p12), %v1389_v51, %v726_v61  ;;  %v729_v4 = vld [vmem:[#allocation2 + $0x48] sm:$0xff] (!%p966_p12)  ;;  %v793_v6 = vmax.f32 (!%p966_p12), %v761_v57, 0.0 }
 0x166   : > { %695 = vst [vmem:[#allocation2 + $0x58] sm:$0xff] %v663_v7  ;;  %711 = vst [vmem:[#allocation2 + $0xd8] sm:$0xff] %v679_v8  ;;  %v1023_v9 = vpop.f32.mrb[24].mxu0  ;;  %v1071_v10 = vpop.f32.mrb[24].mxu1  ;;  %v794_v7 = vmax.f32 (!%p966_p12), %v762_v58, 0.0  ;;  %v795_v8 = vmax.f32 (!%p966_p12), %v763_v60, 0.0 }
 0x167   : > { %v1024_v12 = vpop.f32.mrb[25].mxu0  ;;  %v1072_v14 = vpop.f32.mrb[25].mxu1  ;;  %v745_v57 = vld [vmem:[#allocation2 + $0xc8] sm:$0xff] (!%p966_p12) }
 0x168   : > { %v1025_v15 = vadd.f32 %v1024_v12, %v1023_v9  ;;  %v1073_v16 = vadd.f32 %v1072_v14, %v1071_v10  ;;  %v1026_v17 = vpop.f32.mrb[26].mxu0  ;;  %v1074_v18 = vpop.f32.mrb[26].mxu1  ;;  %v766_v9 = vadd.f32 (!%p966_p12), %v1389_v51, %v727_v62  ;;  %v823_v12 = vpack.c.bf16 (!%p966_p12), %v792_v0, %v791_v63 }
 0x169   : > { %v1027_v20 = vpop.f32.mrb[27].mxu0  ;;  %v1075_v22 = vpop.f32.mrb[27].mxu1  ;;  %v797_v14 = vmax.f32 (!%p966_p12), %v765_v2, 0.0  ;;  %v782_v2 = vadd.f32 (!%p966_p12), %v1389_v51, %v743_v50 }
 0x16a   : > { %v664_v23 = vadd.f32 %v1025_v15, %v375_v11  ;;  %v680_v24 = vadd.f32 %v1073_v16, %v391_v13  ;;  %v1028_v25 = vadd.f32 %v1027_v20, %v1026_v17  ;;  %v1076_v26 = vadd.f32 %v1075_v22, %v1074_v18  ;;  %839 = vst [vmem:[%s1334_s24] sm:$0xff] (!%p966_p12), %v823_v12 }
 0x16b   : > { %v730_v5 = vld [vmem:[#allocation2 + $0x50] sm:$0xff] (!%p966_p12)  ;;  %v796_v13 = vmax.f32 (!%p966_p12), %v764_v1, 0.0  ;;  %v767_v15 = vadd.f32 (!%p966_p12), %v1389_v51, %v728_v3  ;;  %v824_v17 = vpack.c.bf16 (!%p966_p12), %v794_v7, %v793_v6  ;;  %v798_v18 = vmax.f32 (!%p966_p12), %v766_v9, 0.0 }
 0x16c   : > { %696 = vst [vmem:[#allocation2 + $0x60] sm:$0xff] %v664_v23  ;;  %712 = vst [vmem:[#allocation2 + $0xe0] sm:$0xff] %v680_v24  ;;  %v665_v27 = vadd.f32 %v1028_v25, %v376_v19  ;;  %v681_v28 = vadd.f32 %v1076_v26, %v392_v21  ;;  %v768_v19 = vadd.f32 (!%p966_p12), %v1389_v51, %v729_v4  ;;  %v746_v62 = vld [vmem:[#allocation2 + $0xd0] sm:$0xff] (!%p966_p12)  ;;  %v814_v12 = vmax.f32 (!%p966_p12), %v782_v2, 0.0 }
 0x16d   : > { %v731_v10 = vld [vmem:[#allocation2 + $0x58] sm:$0xff] (!%p966_p12)  ;;  %v769_v20 = vadd.f32 (!%p966_p12), %v1389_v51, %v730_v5  ;;  %v825_v23 = vpack.c.bf16 (!%p966_p12), %v796_v13, %v795_v8  ;;  %v799_v24 = vmax.f32 (!%p966_p12), %v767_v15, 0.0  ;;  %840 = vst [vmem:[%s1334_s24 + $0x8] sm:$0xff] (!%p966_p12), %v824_v17  ;;  %v781_v1 = vadd.f32 (!%p966_p12), %v1389_v51, %v742_v49 }
 0x16e   : > { %697 = vst [vmem:[#allocation2 + $0x68] sm:$0xff] %v665_v27  ;;  %713 = vst [vmem:[#allocation2 + $0xe8] sm:$0xff] %v681_v28  ;;  %v1029_v29 = vpop.f32.mrb[28].mxu0  ;;  %v1077_v30 = vpop.f32.mrb[28].mxu1  ;;  %v770_v25 = vadd.f32 (!%p966_p12), %v1389_v51, %v731_v10  ;;  %v736_v27 = vld [vmem:[#allocation2 + $0x80] sm:$0xff] (!%p966_p12)  ;;  %v737_v28 = vld [vmem:[#allocation2 + $0x88] sm:$0xff] (!%p966_p12)  ;;  %v783_v6 = vadd.f32 (!%p966_p12), %v1389_v51, %v744_v56  ;;  %v784_v7 = vadd.f32 (!%p966_p12), %v1389_v51, %v745_v57 }
 0x16f   : > { %v1030_v32 = vpop.f32.mrb[29].mxu0  ;;  %v1078_v34 = vpop.f32.mrb[29].mxu1  ;;  %841 = vst [vmem:[%s1334_s24 + $0x10] sm:$0xff] (!%p966_p12), %v825_v23  ;;  %v747_v3 = vld [vmem:[#allocation2 + $0xd8] sm:$0xff] (!%p966_p12)  ;;  %v785_v13 = vadd.f32 (!%p966_p12), %v1389_v51, %v746_v62 }
 0x170   : > { %v1031_v35 = vadd.f32 %v1030_v32, %v1029_v29  ;;  %v1079_v36 = vadd.f32 %v1078_v34, %v1077_v30  ;;  %v1032_v37 = vpop.f32.mrb[30].mxu0  ;;  %v1080_v38 = vpop.f32.mrb[30].mxu1  ;;  %719 = sbr.rel (%p966_p12) target bundleno = 390 (0x186), region = 63  ;;  %v826_v29 = vpack.c.bf16 (!%p966_p12), %v798_v18, %v797_v14  ;;  %v800_v30 = vmax.f32 (!%p966_p12), %v768_v19, 0.0 }
 0x171   : > { %v1033_v40 = vpop.f32.mrb[31].mxu0  ;;  %v1081_v42 = vpop.f32.mrb[31].mxu1  ;;  %v802_v34 = vmax.f32 (!%p966_p12), %v770_v25, 0.0  ;;  %v815_v17 = vmax.f32 (!%p966_p12), %v783_v6, 0.0  ;;  %v816_v18 = vmax.f32 (!%p966_p12), %v784_v7, 0.0  ;;  %v786_v19 = vadd.f32 (!%p966_p12), %v1389_v51, %v747_v3 }
 0x172   : > { %v666_v43 = vadd.f32 %v1031_v35, %v377_v31  ;;  %v682_v44 = vadd.f32 %v1079_v36, %v393_v33  ;;  %v1034_v45 = vadd.f32 %v1033_v40, %v1032_v37  ;;  %v1082_v46 = vadd.f32 %v1081_v42, %v1080_v38  ;;  %v738_v33 = vld [vmem:[#allocation2 + $0x90] sm:$0xff] (!%p966_p12)  ;;  %v739_v38 = vld [vmem:[#allocation2 + $0x98] sm:$0xff] (!%p966_p12)  ;;  %842 = vst [vmem:[%s1334_s24 + $0x18] sm:$0xff] (!%p966_p12), %v826_v29 }
 0x173   : > { %v732_v11 = vld [vmem:[#allocation2 + $0x60] sm:$0xff] (!%p966_p12)  ;;  %v801_v31 = vmax.f32 (!%p966_p12), %v769_v20, 0.0  ;;  %v776_v42 = vadd.f32 (!%p966_p12), %v1389_v51, %v737_v28  ;;  %v778_v55 = vadd.f32 (!%p966_p12), %v1389_v51, %v739_v38  ;;  %v818_v25 = vmax.f32 (!%p966_p12), %v786_v19, 0.0 }
 0x174   : > { %698 = vst [vmem:[#allocation2 + $0x70] sm:$0xff] %v666_v43  ;;  %714 = vst [vmem:[#allocation2 + $0xf0] sm:$0xff] %v682_v44  ;;  %v667_v47 = vadd.f32 %v1034_v45, %v378_v39  ;;  %v683_v48 = vadd.f32 %v1082_v46, %v394_v41  ;;  %v771_v26 = vadd.f32 (!%p966_p12), %v1389_v51, %v732_v11  ;;  %v740_v43 = vld [vmem:[#allocation2 + $0xa0] sm:$0xff] (!%p966_p12)  ;;  %v741_v44 = vld [vmem:[#allocation2 + $0xa8] sm:$0xff] (!%p966_p12)  ;;  %v813_v11 = vmax.f32 (!%p966_p12), %v781_v1, 0.0 }
 0x175   : > { %v733_v16 = vld [vmem:[#allocation2 + $0x68] sm:$0xff] (!%p966_p12)  ;;  %v827_v39 = vpack.c.bf16 (!%p966_p12), %v800_v30, %v799_v24  ;;  %v775_v41 = vadd.f32 (!%p966_p12), %v1389_v51, %v736_v27  ;;  %v828_v45 = vpack.c.bf16 (!%p966_p12), %v802_v34, %v801_v31  ;;  %v808_v54 = vmax.f32 (!%p966_p12), %v776_v42, 0.0  ;;  %v748_v8 = vld [vmem:[#allocation2 + $0xe0] sm:$0xff] (!%p966_p12) }
 0x176   : > { %699 = vst [vmem:[#allocation2 + $0x78] sm:$0xff] %v667_v47  ;;  %715 = vst [vmem:[#allocation2 + $0xf8] sm:$0xff] %v683_v48  ;;  %v772_v32 = vadd.f32 (!%p966_p12), %v1389_v51, %v733_v16  ;;  %v803_v35 = vmax.f32 (!%p966_p12), %v771_v26, 0.0  ;;  %v777_v48 = vadd.f32 (!%p966_p12), %v1389_v51, %v738_v33  ;;  %v779_v60 = vadd.f32 (!%p966_p12), %v1389_v51, %v740_v43  ;;  %v749_v9 = vld [vmem:[#allocation2 + $0xe8] sm:$0xff] (!%p966_p12) }
 0x177   : > { %843 = vst [vmem:[%s1334_s24 + $0x20] sm:$0xff] %v827_v39  ;;  %v807_v53 = vmax.f32 %v775_v41, 0.0  ;;  %844 = vst [vmem:[%s1334_s24 + $0x28] sm:$0xff] %v828_v45  ;;  %v780_v61 = vadd.f32 %v1389_v51, %v741_v44  ;;  %v810_v0 = vmax.f32 %v778_v55, 0.0  ;;  %v834_v20 = vpack.c.bf16 %v814_v12, %v813_v11 }
 0x178   : > { %v804_v40 = vmax.f32 %v772_v32, 0.0  ;;  %v809_v59 = vmax.f32 %v777_v48, 0.0  ;;  %v811_v4 = vmax.f32 %v779_v60, 0.0  ;;  %v788_v23 = vadd.f32 %v1389_v51, %v749_v9 }
 0x179   : > { %v831_v63 = vpack.c.bf16 %v808_v54, %v807_v53  ;;  %v812_v5 = vmax.f32 %v780_v61, 0.0  ;;  %v835_v24 = vpack.c.bf16 %v816_v18, %v815_v17  ;;  %850 = vst [vmem:[%s1334_s24 + $0x58] sm:$0xff] %v834_v20 }
 0x17a   : > { %v829_v52 = vpack.c.bf16 %v804_v40, %v803_v35  ;;  %v832_v10 = vpack.c.bf16 %v810_v0, %v809_v59  ;;  %v820_v29 = vmax.f32 %v788_v23, 0.0 }
 0x17b   : > { %v734_v21 = vld [vmem:[#allocation2 + $0x70] sm:$0xff]  ;;  %847 = vst [vmem:[%s1334_s24 + $0x40] sm:$0xff] %v831_v63  ;;  %v833_v16 = vpack.c.bf16 %v812_v5, %v811_v4  ;;  %851 = vst [vmem:[%s1334_s24 + $0x60] sm:$0xff] %v835_v24 }
 0x17c   : > { %v773_v36 = vadd.f32 %v1389_v51, %v734_v21  ;;  %845 = vst [vmem:[%s1334_s24 + $0x30] sm:$0xff] %v829_v52  ;;  %v750_v14 = vld [vmem:[#allocation2 + $0xf0] sm:$0xff]  ;;  %848 = vst [vmem:[%s1334_s24 + $0x48] sm:$0xff] %v832_v10  ;;  %v817_v21 = vmax.f32 %v785_v13, 0.0 }
 0x17d   : > { %v735_v22 = vld [vmem:[#allocation2 + $0x78] sm:$0xff]  ;;  %849 = vst [vmem:[%s1334_s24 + $0x50] sm:$0xff] %v833_v16  ;;  %v789_v26 = vadd.f32 %v1389_v51, %v750_v14 }
 0x17e   : > { %v774_v37 = vadd.f32 %v1389_v51, %v735_v22  ;;  %v805_v46 = vmax.f32 %v773_v36, 0.0  ;;  %v751_v15 = vld [vmem:[#allocation2 + $0xf8] sm:$0xff]  ;;  %v787_v22 = vadd.f32 %v1389_v51, %v748_v8  ;;  %v836_v30 = vpack.c.bf16 %v818_v25, %v817_v21 }
 0x17f   : > { %v790_v27 = vadd.f32 %v1389_v51, %v751_v15  ;;  %v821_v31 = vmax.f32 %v789_v26, 0.0 }
 0x180   : > { %v806_v47 = vmax.f32 %v774_v37, 0.0  ;;  %v819_v28 = vmax.f32 %v787_v22, 0.0  ;;  %852 = vst [vmem:[%s1334_s24 + $0x68] sm:$0xff] %v836_v30 }
 0x181   : > { %v822_v32 = vmax.f32 %v790_v27, 0.0 }
 0x182   : > { %v830_v58 = vpack.c.bf16 %v806_v47, %v805_v46  ;;  %v837_v33 = vpack.c.bf16 %v820_v29, %v819_v28 }
 0x183   : > { %v838_v34 = vpack.c.bf16 %v822_v32, %v821_v31 }
 0x184   : > { %846 = vst [vmem:[%s1334_s24 + $0x38] sm:$0xff] %v830_v58  ;;  %853 = vst [vmem:[%s1334_s24 + $0x70] sm:$0xff] %v837_v33 }
 0x185   : > { %854 = vst [vmem:[%s1334_s24 + $0x78] sm:$0xff] %v838_v34 }
 0x186 PF: > { %s13_s18 = sadd.s32 1, %s1226_s18   ;;  %s1464_s12 = smov %s1206_s13 }
 0x187   : > { %p10_p13 = scmp.ge.s32.totalorder %s13_s18, 6   ;;  %s1465_s13 = smov %s1300_s25 }
 0x188   : > { %s1466_s14 = smov %s1218_s16  ;;  %s1467_s15 = smov %s1222_s17 }
 0x189   : > { %s1468_s16 = smov %s1471_s19  ;;  %s1469_s17 = smov %s1475_s20 }
 0x18a   :  { %12 = sbr.rel (!%p10_p13) target bundleno = 4 (0x4), region = 99 }

// kernel: _gcn_forward_pallas.5
= control target key start
LH: loop header
LB: loop body
LE: loop exit
PB: predicated region body
PF: predicated region fallthrough
CT: control target
= control target key end

     0   :  { %s1701_s12 = smov 0   ;;  %s1703_s13 = smov 0   ;;  %s2283_s0 = inlined_call_operand.vmem [shape: s8[512,512], index: 0, kind: input, shape index: {}]   ;;  %s2284_s1 = inlined_call_operand.vmem [shape: bf16[512,128], index: 1, kind: input, shape index: {}]   ;;  %s2285_s2 = inlined_call_operand.vmem [shape: f32[1,128], index: 2, kind: input, shape index: {}]   ;;  %s2286_s3 = inlined_call_operand.vmem [shape: f32[512,8], index: 3, kind: output, shape index: {}]  }
   0x1   :  { %s1705_s14 = smov 0   ;;  %s1707_s15 = smov 0  }
   0x2   :  { %s1709_s16 = smov 0   ;;  %s1711_s17 = smov 0  }
   0x3   :  { %s1713_s18 = smov 0  }
   0x4 LB: > { %s22_s19 = sadd.s32 1, %s1670_s16  ;;  %s25_s20 = sadd.s32 1, %s1674_s17  ;;  %s1678_s18 = sphi %s1713_s18, %s13_s18   ;;  %s1674_s17 = sphi %s1711_s17, %s2292_s17   ;;  %s1670_s16 = sphi %s1709_s16, %s2291_s16   ;;  %s1666_s15 = sphi %s1707_s15, %s2290_s15   ;;  %s1662_s14 = sphi %s1705_s14, %s2289_s14   ;;  %s1658_s13 = sphi %s1703_s13, %s2288_s13   ;;  %s1654_s12 = sphi %s1701_s12, %s2287_s12  }
   0x5   : > { %p23_p0 = scmp.ge.s32.totalorder %s22_s19, 2  ;;  %p41_p1 = scmp.ne.s32.totalorder %s1658_s13, %s1654_s12 }
   0x6   : > { %p42_p2 = scmp.eq.s32.totalorder %s1678_s18, 0  ;;  %s34_s24 = sadd.s32 1, %s1658_s13 }
   0x7   : > { %s2294_s19 = smov (%p23_p0, %s22_s19), 0  ;;  %s2296_s20 = smov (!%p23_p0, %s25_s20), %s1674_s17 }
   0x8   : > { %p43_p3 = por %p42_p2, %p41_p1  ;;  %p27_p4 = scmp.ge.s32.totalorder %s2296_s20, 2 }
   0x9   : > { %s30_s21 = ssub.s32 %s1670_s16, %s2294_s19  ;;  %p1261_p6 = scmp.ge.s32.totalorder %s1678_s18, 4 }
   0xa   : > { %s2298_s20 = smov (%p27_p4, %s2296_s20), 0 }
   0xb   : > { %s29_s22 = ssub.s32 %s1674_s17, %s2298_s20  ;;  %141 = sbr.rel (%p1261_p6) target bundleno = 33 (0x21), region = 24 }
   0xc   : > { %s31_s23 = sor.u32 %s30_s21, %s29_s22 }
   0xd   : > { %p32_p5 = scmp.eq.s32.totalorder %s31_s23, 0 }
   0xf   : > { %s1752_s25 = scalar_select %p32_p5, %s1658_s13, %s34_s24  }
  0x12   : > { %144 = sbr.rel (!%p43_p3) target bundleno = 33 (0x21), region = 28  ;;  %s146_s26 = sand.u32 (%p43_p3), 1, %s1658_s13  }
  0x13   : > { %s1264_s27 = sshll.u32 (%p43_p3), %s1670_s16, 1  ;;  %s1262_s28 = sshll.u32 (%p43_p3), %s146_s26, 7 }
  0x14   : > { %s1294_s29 = sshll.u32 (%p43_p3), %s1674_s17, 5  ;;  %s148_s8 = scalar_lea.vmem (%p43_p3), [#allocation3], %s1262_s28 }
  0x15   : > { %s152_s30 = sadd.s32 (%p43_p3), %s1294_s29, %s1264_s27 }
  0x16   : > { %s1266_s4 = sshll.u32 (%p43_p3), %s152_s30, 3 }
  0x17   : > { %s1761_s7 = scalar_lea.vmem (%p43_p3), %s2283_s0, %s1266_s4 }
  0x18   : > { %v167_v0 = vld [vmem:[%s1761_s7] sm:$0xff] (%p43_p3)  ;;  %v169_v1 = vld [vmem:[%s1761_s7 + $0x8] sm:$0xff] (%p43_p3) }
  0x19   : > { %v171_v2 = vld [vmem:[%s1761_s7 + $0x20] sm:$0xff]  ;;  %168 = vst [vmem:[%s148_s8] sm:$0xff] %v167_v0  ;;  %170 = vst [vmem:[%s148_s8 + $0x8] sm:$0xff] %v169_v1  ;;  %v173_v3 = vld [vmem:[%s1761_s7 + $0x28] sm:$0xff] }
  0x1a   : > { %172 = vst [vmem:[%s148_s8 + $0x10] sm:$0xff] %v171_v2  ;;  %v175_v4 = vld [vmem:[%s1761_s7 + $0x40] sm:$0xff]  ;;  %v177_v5 = vld [vmem:[%s1761_s7 + $0x48] sm:$0xff]  ;;  %174 = vst [vmem:[%s148_s8 + $0x18] sm:$0xff] %v173_v3 }
  0x1b   : > { %176 = vst [vmem:[%s148_s8 + $0x20] sm:$0xff] %v175_v4  ;;  %178 = vst [vmem:[%s148_s8 + $0x28] sm:$0xff] %v177_v5  ;;  %v179_v6 = vld [vmem:[%s1761_s7 + $0x60] sm:$0xff]  ;;  %v181_v7 = vld [vmem:[%s1761_s7 + $0x68] sm:$0xff] }
  0x1c   : > { %v183_v8 = vld [vmem:[%s1761_s7 + $0x80] sm:$0xff]  ;;  %180 = vst [vmem:[%s148_s8 + $0x30] sm:$0xff] %v179_v6  ;;  %182 = vst [vmem:[%s148_s8 + $0x38] sm:$0xff] %v181_v7  ;;  %v185_v9 = vld [vmem:[%s1761_s7 + $0x88] sm:$0xff] }
  0x1d   : > { %184 = vst [vmem:[%s148_s8 + $0x40] sm:$0xff] %v183_v8  ;;  %v187_v10 = vld [vmem:[%s1761_s7 + $0xa0] sm:$0xff]  ;;  %v189_v11 = vld [vmem:[%s1761_s7 + $0xa8] sm:$0xff]  ;;  %186 = vst [vmem:[%s148_s8 + $0x48] sm:$0xff] %v185_v9 }
  0x1e   : > { %188 = vst [vmem:[%s148_s8 + $0x50] sm:$0xff] %v187_v10  ;;  %190 = vst [vmem:[%s148_s8 + $0x58] sm:$0xff] %v189_v11  ;;  %v191_v12 = vld [vmem:[%s1761_s7 + $0xc0] sm:$0xff]  ;;  %v193_v13 = vld [vmem:[%s1761_s7 + $0xc8] sm:$0xff] }
  0x1f   : > { %v195_v14 = vld [vmem:[%s1761_s7 + $0xe0] sm:$0xff]  ;;  %192 = vst [vmem:[%s148_s8 + $0x60] sm:$0xff] %v191_v12  ;;  %194 = vst [vmem:[%s148_s8 + $0x68] sm:$0xff] %v193_v13  ;;  %v197_v15 = vld [vmem:[%s1761_s7 + $0xe8] sm:$0xff] }
  0x20   : > { %196 = vst [vmem:[%s148_s8 + $0x70] sm:$0xff] %v195_v14  ;;  %198 = vst [vmem:[%s148_s8 + $0x78] sm:$0xff] %v197_v15 }
  0x21 PF: > { %p1267_p7 = scmp.ge.s32.totalorder %s1678_s18, 1  ;;  %p203_p8 = scmp.lt.s32.totalorder %s1678_s18, 5 }
  0x23   : > { %p204_p9 = pnand %p1267_p7, %p203_p8 }
  0x24   : > { %s210_s9 = sand.u32 (!%p204_p9), 1, %s1654_s12   ;;  %s1269_s10 = sshll.u32 (!%p204_p9), %s1666_s15, 5 }
  0x25   : > { %207 = sbr.rel (%p204_p9) target bundleno = 738 (0x2e2), region = 51  ;;  %s1268_s11 = sshll.u32 (!%p204_p9), %s210_s9, 7 }
  0x26   : > { %p236_p10 = scmp.lt.s32.totalorder (!%p204_p9), %s1269_s10, 63  ;;  %s1788_s26 = scalar_lea.vmem (!%p204_p9), [#allocation3], %s1268_s11 }
  0x27   : > { %p1271_p11 = scmp.ne.s32.totalorder (!%p204_p9), %s1662_s14, 0 }
  0x2c   : > { %s2300_s10 = smov (!%p236_p10, %s1269_s10), 63  ;;  %245 = sbr.rel (%p1271_p11) target bundleno = 62 (0x3e), region = 59 }
  0x2d   : > { %s1270_s21 = sshll.u32 %s2300_s10, 3  ;;  %v1680_v16 = vmov (!%p1271_p11), 0.0  }
  0x2e   : > { %s1786_s24 = scalar_lea.vmem %s2286_s3, %s1270_s21  ;;  %246 = vst [vmem:[#allocation2] sm:$0xff] (!%p1271_p11), %v1680_v16  ;;  %247 = vst [vmem:[#allocation2 + $0x8] sm:$0xff] (!%p1271_p11), %v1680_v16 }
  0x2f   : > { %248 = vst [vmem:[#allocation2 + $0x10] sm:$0xff] (!%p1271_p11), %v1680_v16  ;;  %249 = vst [vmem:[#allocation2 + $0x18] sm:$0xff] (!%p1271_p11), %v1680_v16 }
  0x30   : > { %250 = vst [vmem:[#allocation2 + $0x20] sm:$0xff] (!%p1271_p11), %v1680_v16  ;;  %251 = vst [vmem:[#allocation2 + $0x28] sm:$0xff] (!%p1271_p11), %v1680_v16 }
  0x31   : > { %252 = vst [vmem:[#allocation2 + $0x30] sm:$0xff] (!%p1271_p11), %v1680_v16  ;;  %253 = vst [vmem:[#allocation2 + $0x38] sm:$0xff] (!%p1271_p11), %v1680_v16 }
  0x32   : > { %254 = vst [vmem:[#allocation2 + $0x40] sm:$0xff] (!%p1271_p11), %v1680_v16  ;;  %255 = vst [vmem:[#allocation2 + $0x48] sm:$0xff] (!%p1271_p11), %v1680_v16 }
  0x33   : > { %256 = vst [vmem:[#allocation2 + $0x50] sm:$0xff] %v1680_v16  ;;  %257 = vst [vmem:[#allocation2 + $0x58] sm:$0xff] %v1680_v16 }
  0x34   : > { %258 = vst [vmem:[#allocation2 + $0x60] sm:$0xff] %v1680_v16  ;;  %259 = vst [vmem:[#allocation2 + $0x68] sm:$0xff] %v1680_v16 }
  0x35   : > { %260 = vst [vmem:[#allocation2 + $0x70] sm:$0xff] %v1680_v16  ;;  %261 = vst [vmem:[#allocation2 + $0x78] sm:$0xff] %v1680_v16 }
  0x36   : > { %262 = vst [vmem:[#allocation2 + $0x80] sm:$0xff] %v1680_v16  ;;  %263 = vst [vmem:[#allocation2 + $0x88] sm:$0xff] %v1680_v16 }
  0x37   : > { %264 = vst [vmem:[#allocation2 + $0x90] sm:$0xff] %v1680_v16  ;;  %265 = vst [vmem:[#allocation2 + $0x98] sm:$0xff] %v1680_v16 }
  0x38   : > { %266 = vst [vmem:[#allocation2 + $0xa0] sm:$0xff] %v1680_v16  ;;  %267 = vst [vmem:[#allocation2 + $0xa8] sm:$0xff] %v1680_v16 }
  0x39   : > { %268 = vst [vmem:[#allocation2 + $0xb0] sm:$0xff] %v1680_v16  ;;  %269 = vst [vmem:[#allocation2 + $0xb8] sm:$0xff] %v1680_v16 }
  0x3a   : > { %270 = vst [vmem:[#allocation2 + $0xc0] sm:$0xff] %v1680_v16  ;;  %271 = vst [vmem:[#allocation2 + $0xc8] sm:$0xff] %v1680_v16 }
  0x3b   : > { %272 = vst [vmem:[#allocation2 + $0xd0] sm:$0xff] %v1680_v16  ;;  %273 = vst [vmem:[#allocation2 + $0xd8] sm:$0xff] %v1680_v16 }
  0x3c   : > { %274 = vst [vmem:[#allocation2 + $0xe0] sm:$0xff] %v1680_v16  ;;  %275 = vst [vmem:[#allocation2 + $0xe8] sm:$0xff] %v1680_v16 }
  0x3d   : > { %276 = vst [vmem:[#allocation2 + $0xf0] sm:$0xff] %v1680_v16  ;;  %277 = vst [vmem:[#allocation2 + $0xf8] sm:$0xff] %v1680_v16 }
  0x3e PF: > { %s1272_s12 = sshll.u32 %s1662_s14, 8  ;;  %v1793_v17 = vld [vmem:[%s1788_s26 + $0x8] sm:$0xff]  ;;  %v278_v37 = vld [vmem:[%s1788_s26] sm:$0xff]  ;;  %v281_v43 = vld [vmem:[%s1788_s26 + $0x18] sm:$0xff]  ;;  %p1290_p12 = scmp.ne.s32.totalorder %s1662_s14, 1 }
  0x3f   : > { %v1796_v18 = vld [vmem:[%s1788_s26 + $0x48] sm:$0xff]  ;;  %s327_s15 = sshra.s32 %s1272_s12, 3  ;;  %v295_v19 = vunpack.c.l.s8.bf16 %v1793_v17  ;;  %v286_v38 = vld [vmem:[%s1788_s26 + $0x40] sm:$0xff]  ;;  %v294_v39 = vunpack.c.l.s8.bf16 %v278_v37  ;;  %v297_v41 = vunpack.c.h.s8.bf16 %v1793_v17  ;;  %v289_v44 = vld [vmem:[%s1788_s26 + $0x58] sm:$0xff]  ;;  %v296_v45 = vunpack.c.h.s8.bf16 %v278_v37 }
  0x40   : > { %v311_v20 = vunpack.c.l.s8.bf16 %v1796_v18  ;;  %s1273_s27 = sshll.u32 %s327_s15, 2  ;;  %v310_v40 = vunpack.c.l.s8.bf16 %v286_v38  ;;  %v313_v42 = vunpack.c.h.s8.bf16 %v1796_v18  ;;  %v312_v46 = vunpack.c.h.s8.bf16 %v286_v38  ;;  %v280_v49 = vld [vmem:[%s1788_s26 + $0x10] sm:$0xff]  ;;  %v283_v55 = vld [vmem:[%s1788_s26 + $0x28] sm:$0xff]  ;;  %v282_v61 = vld [vmem:[%s1788_s26 + $0x20] sm:$0xff] }
  0x41   : > { %s1803_s30 = scalar_lea.vmem %s2284_s1, %s1273_s27  ;;  %523 = vmatprep.mubr.bf16.mxu0 %v295_v19  ;;  %v299_v47 = vunpack.c.l.s8.bf16 %v281_v43  ;;  %v315_v48 = vunpack.c.l.s8.bf16 %v289_v44  ;;  %v288_v50 = vld [vmem:[%s1788_s26 + $0x50] sm:$0xff]  ;;  %v298_v51 = vunpack.c.l.s8.bf16 %v280_v49  ;;  %v301_v53 = vunpack.c.h.s8.bf16 %v281_v43  ;;  %v291_v56 = vld [vmem:[%s1788_s26 + $0x68] sm:$0xff]  ;;  %v290_v62 = vld [vmem:[%s1788_s26 + $0x60] sm:$0xff] }
  0x42   : > { %587 = vmatprep.mubr.bf16.mxu1 %v311_v20  ;;  %v1480_v21 = vld [vmem:[%s1803_s30 + $0x40] sm:$0xff]   ;;  %v1482_v23 = vld [vmem:[%s1803_s30 + $0x48] sm:$0xff]   ;;  %v1484_v25 = vld [vmem:[%s1803_s30 + $0x50] sm:$0xff]   ;;  %v314_v52 = vunpack.c.l.s8.bf16 %v288_v50  ;;  %v317_v54 = vunpack.c.h.s8.bf16 %v289_v44  ;;  %v300_v57 = vunpack.c.h.s8.bf16 %v280_v49  ;;  %v316_v58 = vunpack.c.h.s8.bf16 %v288_v50 }
  0x43   : > { %v1481_v22 = vld [vmem:[%s1803_s30] sm:$0xff]   ;;  %1295 = vmatprep.subr.bf16.mxu0 %v1480_v21  ;;  %1407 = vmatprep.subr.bf16.mxu1 %v1480_v21  ;;  %v1483_v24 = vld [vmem:[%s1803_s30 + $0x8] sm:$0xff]   ;;  %v1485_v26 = vld [vmem:[%s1803_s30 + $0x10] sm:$0xff]   ;;  %v303_v59 = vunpack.c.l.s8.bf16 %v283_v55  ;;  %v319_v60 = vunpack.c.l.s8.bf16 %v291_v56  ;;  %v302_v63 = vunpack.c.l.s8.bf16 %v282_v61  ;;  %v318_v0 = vunpack.c.l.s8.bf16 %v290_v62 }
  0x44   : > { %1296 = vmatpush3.bf16.msra.mxu0 %v1481_v22  ;;  %1415 = vmatpush3.bf16.msra.mxu1 %v1481_v22  ;;  %v1486_v27 = vld [vmem:[%s1803_s30 + $0x58] sm:$0xff]   ;;  %v1488_v29 = vld [vmem:[%s1803_s30 + $0x60] sm:$0xff]   ;;  %v1490_v31 = vld [vmem:[%s1803_s30 + $0x68] sm:$0xff]   ;;  %v305_v1 = vunpack.c.h.s8.bf16 %v283_v55  ;;  %v321_v2 = vunpack.c.h.s8.bf16 %v291_v56  ;;  %v304_v5 = vunpack.c.h.s8.bf16 %v282_v61  ;;  %v320_v6 = vunpack.c.h.s8.bf16 %v290_v62 }
  0x45   : > { %1297 = vmatprep.subr.bf16.mxu0 %v1482_v23  ;;  %1408 = vmatprep.subr.bf16.mxu1 %v1482_v23  ;;  %v1487_v28 = vld [vmem:[%s1803_s30 + $0x18] sm:$0xff]   ;;  %v1489_v30 = vld [vmem:[%s1803_s30 + $0x20] sm:$0xff]   ;;  %v1491_v32 = vld [vmem:[%s1803_s30 + $0x28] sm:$0xff]   ;;  %vm1146_vm1 = vcmask (!%p1290_p12), 64512  }
  0x46   : > { %v1492_v33 = vld [vmem:[%s1803_s30 + $0x70] sm:$0xff]   ;;  %v1494_v35 = vld [vmem:[%s1803_s30 + $0x78] sm:$0xff]   ;;  %v363_v19 = vld [vmem:[#allocation2] sm:$0xff] }
  0x47   : > { %v1493_v34 = vld [vmem:[%s1803_s30 + $0x30] sm:$0xff]   ;;  %v1495_v36 = vld [vmem:[%s1803_s30 + $0x38] sm:$0xff]   ;;  %v379_v21 = vld [vmem:[#allocation2 + $0x80] sm:$0xff] }
  0x48   : > { %1298 = vmatpush3.bf16.msra.mxu0 %v1483_v24  ;;  %1416 = vmatpush3.bf16.msra.mxu1 %v1483_v24  ;;  %v285_v3 = vld [vmem:[%s1788_s26 + $0x38] sm:$0xff]  ;;  %v284_v9 = vld [vmem:[%s1788_s26 + $0x30] sm:$0xff]  ;;  %v383_v61 = vld [vmem:[#allocation2 + $0xa0] sm:$0xff] }
  0x49   : > { %1299 = vmatprep.subr.bf16.mxu0 %v1484_v25  ;;  %1409 = vmatprep.subr.bf16.mxu1 %v1484_v25  ;;  %v293_v4 = vld [vmem:[%s1788_s26 + $0x78] sm:$0xff]  ;;  %v307_v7 = vunpack.c.l.s8.bf16 %v285_v3  ;;  %v292_v10 = vld [vmem:[%s1788_s26 + $0x70] sm:$0xff]  ;;  %v306_v11 = vunpack.c.l.s8.bf16 %v284_v9  ;;  %v309_v13 = vunpack.c.h.s8.bf16 %v285_v3  ;;  %v308_v15 = vunpack.c.h.s8.bf16 %v284_v9  ;;  %v368_v3 = vld [vmem:[#allocation2 + $0x28] sm:$0xff] }
  0x4a   : > { %v323_v8 = vunpack.c.l.s8.bf16 %v293_v4  ;;  %v322_v12 = vunpack.c.l.s8.bf16 %v292_v10  ;;  %v325_v14 = vunpack.c.h.s8.bf16 %v293_v4  ;;  %v324_v16 = vunpack.c.h.s8.bf16 %v292_v10  ;;  %v382_v49 = vld [vmem:[#allocation2 + $0x98] sm:$0xff] }
  0x4c   : > { %1300 = vmatpush3.bf16.msra.mxu0 %v1485_v26  ;;  %1417 = vmatpush3.bf16.msra.mxu1 %v1485_v26 }
  0x4d   : > { %1301 = vmatprep.subr.bf16.mxu0 %v1486_v27  ;;  %1410 = vmatprep.subr.bf16.mxu1 %v1486_v27  ;;  %v364_v27 = vld [vmem:[#allocation2 + $0x8] sm:$0xff] }
  0x50   : > { %1302 = vmatpush3.bf16.msra.mxu0 %v1487_v28  ;;  %1418 = vmatpush3.bf16.msra.mxu1 %v1487_v28 }
  0x51   : > { %1303 = vmatprep.subr.bf16.mxu0 %v1488_v29  ;;  %1411 = vmatprep.subr.bf16.mxu1 %v1488_v29  ;;  %v380_v29 = vld [vmem:[#allocation2 + $0x88] sm:$0xff] }
  0x54   : > { %1304 = vmatpush3.bf16.msra.mxu0 %v1489_v30  ;;  %1419 = vmatpush3.bf16.msra.mxu1 %v1489_v30 }
  0x55   : > { %1305 = vmatprep.subr.bf16.mxu0 %v1490_v31  ;;  %1412 = vmatprep.subr.bf16.mxu1 %v1490_v31 }
  0x58   : > { %1306 = vmatpush3.bf16.msra.mxu0 %v1491_v32  ;;  %1420 = vmatpush3.bf16.msra.mxu1 %v1491_v32 }
  0x59   : > { %1307 = vmatprep.subr.bf16.mxu0 %v1492_v33  ;;  %1413 = vmatprep.subr.bf16.mxu1 %v1492_v33 }
  0x5c   : > { %1308 = vmatpush3.bf16.msra.mxu0 %v1493_v34  ;;  %1421 = vmatpush3.bf16.msra.mxu1 %v1493_v34 }
  0x5d   : > { %1309 = vmatprep.subr.bf16.mxu0 %v1494_v35  ;;  %1414 = vmatprep.subr.bf16.mxu1 %v1494_v35 }
  0x60   : > { %1310 = vmatpush3.bf16.msra.mxu0 %v1495_v36  ;;  %1422 = vmatpush3.bf16.msra.mxu1 %v1495_v36 }
  0x63   : > { %524 = vmatmul.mubr.bf16.vlgmr.msra.gmra.mrb[0].mxu0 %v294_v39  ;;  %588 = vmatmul.mubr.bf16.vlgmr.msra.gmra.mrb[0].mxu1 %v310_v40  ;;  %v365_v39 = vld [vmem:[#allocation2 + $0x10] sm:$0xff] }
  0x64   : > { %531 = vmatprep.mubr.bf16.mxu0 %v297_v41  ;;  %595 = vmatprep.mubr.bf16.mxu1 %v313_v42  ;;  %v381_v41 = vld [vmem:[#allocation2 + $0x90] sm:$0xff] }
  0x6b   : > { %532 = vmatmul.mubr.bf16.gmra.mrb[4].mxu0 %v296_v45  ;;  %596 = vmatmul.mubr.bf16.gmra.mrb[4].mxu1 %v312_v46 }
  0x6c   : > { %539 = vmatprep.mubr.bf16.mxu0 %v299_v47  ;;  %603 = vmatprep.mubr.bf16.mxu1 %v315_v48  ;;  %v366_v47 = vld [vmem:[#allocation2 + $0x18] sm:$0xff] }
  0x73   : > { %540 = vmatmul.mubr.bf16.gmra.mrb[8].mxu0 %v298_v51  ;;  %604 = vmatmul.mubr.bf16.gmra.mrb[8].mxu1 %v314_v52 }
  0x74   : > { %547 = vmatprep.mubr.bf16.mxu0 %v301_v53  ;;  %611 = vmatprep.mubr.bf16.mxu1 %v317_v54 }
  0x7b   : > { %548 = vmatmul.mubr.bf16.gmra.mrb[12].mxu0 %v300_v57  ;;  %612 = vmatmul.mubr.bf16.gmra.mrb[12].mxu1 %v316_v58 }
  0x7c   : > { %555 = vmatprep.mubr.bf16.mxu0 %v303_v59  ;;  %619 = vmatprep.mubr.bf16.mxu1 %v319_v60  ;;  %v367_v59 = vld [vmem:[#allocation2 + $0x20] sm:$0xff] }
  0x83   : > { %556 = vmatmul.mubr.bf16.gmra.mrb[16].mxu0 %v302_v63  ;;  %620 = vmatmul.mubr.bf16.gmra.mrb[16].mxu1 %v318_v0 }
  0x84   : > { %563 = vmatprep.mubr.bf16.mxu0 %v305_v1  ;;  %627 = vmatprep.mubr.bf16.mxu1 %v321_v2 }
  0x8b   : > { %564 = vmatmul.mubr.bf16.gmra.mrb[20].mxu0 %v304_v5  ;;  %628 = vmatmul.mubr.bf16.gmra.mrb[20].mxu1 %v320_v6  ;;  %v384_v5 = vld [vmem:[#allocation2 + $0xa8] sm:$0xff] }
  0x8c   : > { %571 = vmatprep.mubr.bf16.mxu0 %v307_v7  ;;  %635 = vmatprep.mubr.bf16.mxu1 %v323_v8 }
  0x93   : > { %572 = vmatmul.mubr.bf16.gmra.mrb[24].mxu0 %v306_v11  ;;  %636 = vmatmul.mubr.bf16.gmra.mrb[24].mxu1 %v322_v12 }
  0x94   : > { %579 = vmatprep.mubr.bf16.mxu0 %v309_v13  ;;  %643 = vmatprep.mubr.bf16.mxu1 %v325_v14 }
  0x9b   : > { %580 = vmatmul.mubr.bf16.gmra.mrb[28].mxu0 %v308_v15  ;;  %644 = vmatmul.mubr.bf16.gmra.mrb[28].mxu1 %v324_v16  ;;  %v369_v15 = vld [vmem:[#allocation2 + $0x30] sm:$0xff] }
 0x136   : > { %v1311_v17 = vpop.f32.mrb[0].mxu0  ;;  %v1359_v18 = vpop.f32.mrb[0].mxu1 }
 0x137   : > { %v1312_v20 = vpop.f32.mrb[1].mxu0  ;;  %v1360_v22 = vpop.f32.mrb[1].mxu1 }
 0x138   : > { %v1313_v23 = vadd.f32 %v1312_v20, %v1311_v17  ;;  %v1361_v24 = vadd.f32 %v1360_v22, %v1359_v18  ;;  %v1314_v25 = vpop.f32.mrb[2].mxu0  ;;  %v1362_v26 = vpop.f32.mrb[2].mxu1  ;;  %v385_v17 = vld [vmem:[#allocation2 + $0xb0] sm:$0xff] }
 0x139   : > { %v1315_v28 = vpop.f32.mrb[3].mxu0  ;;  %v1363_v30 = vpop.f32.mrb[3].mxu1 }
 0x13a   : > { %v652_v31 = vadd.f32 %v1313_v23, %v363_v19  ;;  %v668_v32 = vadd.f32 %v1361_v24, %v379_v21  ;;  %v1316_v33 = vadd.f32 %v1315_v28, %v1314_v25  ;;  %v1364_v34 = vadd.f32 %v1363_v30, %v1362_v26  ;;  %v370_v23 = vld [vmem:[#allocation2 + $0x38] sm:$0xff] }
 0x13b   : > { %v386_v25 = vld [vmem:[#allocation2 + $0xb8] sm:$0xff] }
 0x13c   : > { %684 = vst [vmem:[#allocation2] sm:$0xff] %v652_v31  ;;  %700 = vst [vmem:[#allocation2 + $0x80] sm:$0xff] %v668_v32  ;;  %v653_v35 = vadd.f32 %v1316_v33, %v364_v27  ;;  %v669_v36 = vadd.f32 %v1364_v34, %v380_v29 }
 0x13e   : > { %685 = vst [vmem:[#allocation2 + $0x8] sm:$0xff] %v653_v35  ;;  %701 = vst [vmem:[#allocation2 + $0x88] sm:$0xff] %v669_v36  ;;  %v1317_v37 = vpop.f32.mrb[4].mxu0  ;;  %v1365_v38 = vpop.f32.mrb[4].mxu1  ;;  %v371_v35 = vld [vmem:[#allocation2 + $0x40] sm:$0xff] }
 0x13f   : > { %v1318_v40 = vpop.f32.mrb[5].mxu0  ;;  %v1366_v42 = vpop.f32.mrb[5].mxu1 }
 0x140   : > { %v1319_v43 = vadd.f32 %v1318_v40, %v1317_v37  ;;  %v1367_v44 = vadd.f32 %v1366_v42, %v1365_v38  ;;  %v1320_v45 = vpop.f32.mrb[6].mxu0  ;;  %v1368_v46 = vpop.f32.mrb[6].mxu1  ;;  %v387_v37 = vld [vmem:[#allocation2 + $0xc0] sm:$0xff] }
 0x141   : > { %v1321_v48 = vpop.f32.mrb[7].mxu0  ;;  %v1369_v50 = vpop.f32.mrb[7].mxu1 }
 0x142   : > { %v654_v51 = vadd.f32 %v1319_v43, %v365_v39  ;;  %v670_v52 = vadd.f32 %v1367_v44, %v381_v41  ;;  %v1322_v53 = vadd.f32 %v1321_v48, %v1320_v45  ;;  %v1370_v54 = vadd.f32 %v1369_v50, %v1368_v46  ;;  %v372_v43 = vld [vmem:[#allocation2 + $0x48] sm:$0xff] }
 0x143   : > { %v388_v45 = vld [vmem:[#allocation2 + $0xc8] sm:$0xff] }
 0x144   : > { %686 = vst [vmem:[#allocation2 + $0x10] sm:$0xff] %v654_v51  ;;  %702 = vst [vmem:[#allocation2 + $0x90] sm:$0xff] %v670_v52  ;;  %v655_v55 = vadd.f32 %v1322_v53, %v366_v47  ;;  %v671_v56 = vadd.f32 %v1370_v54, %v382_v49 }
 0x146   : > { %687 = vst [vmem:[#allocation2 + $0x18] sm:$0xff] %v655_v55  ;;  %703 = vst [vmem:[#allocation2 + $0x98] sm:$0xff] %v671_v56  ;;  %v1323_v57 = vpop.f32.mrb[8].mxu0  ;;  %v1371_v58 = vpop.f32.mrb[8].mxu1  ;;  %v373_v55 = vld [vmem:[#allocation2 + $0x50] sm:$0xff] }
 0x147   : > { %v1324_v60 = vpop.f32.mrb[9].mxu0  ;;  %v1372_v62 = vpop.f32.mrb[9].mxu1 }
 0x148   : > { %v1325_v63 = vadd.f32 %v1324_v60, %v1323_v57  ;;  %v1373_v0 = vadd.f32 %v1372_v62, %v1371_v58  ;;  %v1326_v1 = vpop.f32.mrb[10].mxu0  ;;  %v1374_v2 = vpop.f32.mrb[10].mxu1  ;;  %v389_v57 = vld [vmem:[#allocation2 + $0xd0] sm:$0xff] }
 0x149   : > { %v1327_v4 = vpop.f32.mrb[11].mxu0  ;;  %v1375_v6 = vpop.f32.mrb[11].mxu1 }
 0x14a   : > { %v656_v7 = vadd.f32 %v1325_v63, %v367_v59  ;;  %v672_v8 = vadd.f32 %v1373_v0, %v383_v61  ;;  %v1328_v9 = vadd.f32 %v1327_v4, %v1326_v1  ;;  %v1376_v10 = vadd.f32 %v1375_v6, %v1374_v2  ;;  %v374_v63 = vld [vmem:[#allocation2 + $0x58] sm:$0xff] }
 0x14b   : > { %v390_v1 = vld [vmem:[#allocation2 + $0xd8] sm:$0xff] }
 0x14c   : > { %688 = vst [vmem:[#allocation2 + $0x20] sm:$0xff] %v656_v7  ;;  %704 = vst [vmem:[#allocation2 + $0xa0] sm:$0xff] %v672_v8  ;;  %v657_v11 = vadd.f32 %v1328_v9, %v368_v3  ;;  %v673_v12 = vadd.f32 %v1376_v10, %v384_v5 }
 0x14e   : > { %689 = vst [vmem:[#allocation2 + $0x28] sm:$0xff] %v657_v11  ;;  %705 = vst [vmem:[#allocation2 + $0xa8] sm:$0xff] %v673_v12  ;;  %v1329_v13 = vpop.f32.mrb[12].mxu0  ;;  %v1377_v14 = vpop.f32.mrb[12].mxu1  ;;  %v375_v11 = vld [vmem:[#allocation2 + $0x60] sm:$0xff] }
 0x14f   : > { %v1330_v16 = vpop.f32.mrb[13].mxu0  ;;  %v1378_v18 = vpop.f32.mrb[13].mxu1 }
 0x150   : > { %v1331_v19 = vadd.f32 %v1330_v16, %v1329_v13  ;;  %v1379_v20 = vadd.f32 %v1378_v18, %v1377_v14  ;;  %v1332_v21 = vpop.f32.mrb[14].mxu0  ;;  %v1380_v22 = vpop.f32.mrb[14].mxu1  ;;  %v391_v13 = vld [vmem:[#allocation2 + $0xe0] sm:$0xff] }
 0x151   : > { %v1333_v24 = vpop.f32.mrb[15].mxu0  ;;  %v1381_v26 = vpop.f32.mrb[15].mxu1 }
 0x152   : > { %v658_v27 = vadd.f32 %v1331_v19, %v369_v15  ;;  %v674_v28 = vadd.f32 %v1379_v20, %v385_v17  ;;  %v1334_v29 = vadd.f32 %v1333_v24, %v1332_v21  ;;  %v1382_v30 = vadd.f32 %v1381_v26, %v1380_v22  ;;  %v376_v19 = vld [vmem:[#allocation2 + $0x68] sm:$0xff] }
 0x153   : > { %v392_v21 = vld [vmem:[#allocation2 + $0xe8] sm:$0xff] }
 0x154   : > { %690 = vst [vmem:[#allocation2 + $0x30] sm:$0xff] %v658_v27  ;;  %706 = vst [vmem:[#allocation2 + $0xb0] sm:$0xff] %v674_v28  ;;  %v659_v31 = vadd.f32 %v1334_v29, %v370_v23  ;;  %v675_v32 = vadd.f32 %v1382_v30, %v386_v25 }
 0x156   : > { %691 = vst [vmem:[#allocation2 + $0x38] sm:$0xff] %v659_v31  ;;  %707 = vst [vmem:[#allocation2 + $0xb8] sm:$0xff] %v675_v32  ;;  %v1335_v33 = vpop.f32.mrb[16].mxu0  ;;  %v1383_v34 = vpop.f32.mrb[16].mxu1  ;;  %v377_v31 = vld [vmem:[#allocation2 + $0x70] sm:$0xff] }
 0x157   : > { %v1336_v36 = vpop.f32.mrb[17].mxu0  ;;  %v1384_v38 = vpop.f32.mrb[17].mxu1 }
 0x158   : > { %v1337_v39 = vadd.f32 %v1336_v36, %v1335_v33  ;;  %v1385_v40 = vadd.f32 %v1384_v38, %v1383_v34  ;;  %v1338_v41 = vpop.f32.mrb[18].mxu0  ;;  %v1386_v42 = vpop.f32.mrb[18].mxu1  ;;  %v393_v33 = vld [vmem:[#allocation2 + $0xf0] sm:$0xff] }
 0x159   : > { %v1339_v44 = vpop.f32.mrb[19].mxu0  ;;  %v1387_v46 = vpop.f32.mrb[19].mxu1 }
 0x15a   : > { %v660_v47 = vadd.f32 %v1337_v39, %v371_v35  ;;  %v676_v48 = vadd.f32 %v1385_v40, %v387_v37  ;;  %v1340_v49 = vadd.f32 %v1339_v44, %v1338_v41  ;;  %v1388_v50 = vadd.f32 %v1387_v46, %v1386_v42  ;;  %v378_v39 = vld [vmem:[#allocation2 + $0x78] sm:$0xff] }
 0x15b   : > { %v394_v41 = vld [vmem:[#allocation2 + $0xf8] sm:$0xff] }
 0x15c   : > { %692 = vst [vmem:[#allocation2 + $0x40] sm:$0xff] %v660_v47  ;;  %708 = vst [vmem:[#allocation2 + $0xc0] sm:$0xff] %v676_v48  ;;  %v661_v51 = vadd.f32 %v1340_v49, %v372_v43  ;;  %v677_v52 = vadd.f32 %v1388_v50, %v388_v45  ;;  %v720_v49 = vld [vmem:[#allocation2] sm:$0xff] (!%p1290_p12) }
 0x15d   : > { %v1841_v50 = vld [vmem:[%s2285_s2] ss:$0 sm:$0xff] (!%p1290_p12) }
 0x15e   : > { %693 = vst [vmem:[#allocation2 + $0x48] sm:$0xff] %v661_v51  ;;  %709 = vst [vmem:[#allocation2 + $0xc8] sm:$0xff] %v677_v52  ;;  %v1341_v53 = vpop.f32.mrb[20].mxu0  ;;  %v1389_v54 = vpop.f32.mrb[20].mxu1  ;;  %v791_v51 = vlaneseq (!%p1290_p12)  ;;  %v722_v52 = vld [vmem:[#allocation2 + $0x10] sm:$0xff] (!%p1290_p12) }
 0x15f   : > { %v1342_v56 = vpop.f32.mrb[21].mxu0  ;;  %v1390_v58 = vpop.f32.mrb[21].mxu1 }
 0x160   : > { %v1343_v59 = vadd.f32 %v1342_v56, %v1341_v53  ;;  %v1391_v60 = vadd.f32 %v1390_v58, %v1389_v54  ;;  %v1344_v61 = vpop.f32.mrb[22].mxu0  ;;  %v1392_v62 = vpop.f32.mrb[22].mxu1  ;;  %v759_v53 = vadd.f32 (!%p1290_p12), %v1841_v50, %v720_v49  ;;  %v761_v54 = vadd.f32 (!%p1290_p12), %v1841_v50, %v722_v52  ;;  %v723_v56 = vld [vmem:[#allocation2 + $0x18] sm:$0xff] (!%p1290_p12) }
 0x161   : > { %v1345_v0 = vpop.f32.mrb[23].mxu0  ;;  %v1393_v2 = vpop.f32.mrb[23].mxu1 }
 0x162   : > { %v662_v3 = vadd.f32 %v1343_v59, %v373_v55  ;;  %v678_v4 = vadd.f32 %v1391_v60, %v389_v57  ;;  %v1346_v5 = vadd.f32 %v1345_v0, %v1344_v61  ;;  %v1394_v6 = vadd.f32 %v1393_v2, %v1392_v62  ;;  %v721_v55 = vld [vmem:[#allocation2 + $0x8] sm:$0xff] (!%p1290_p12)  ;;  %v724_v60 = vld [vmem:[#allocation2 + $0x20] sm:$0xff] (!%p1290_p12) }
 0x163   : > { %v1845_v57 = vand.u32 (!%p1290_p12), 127, %v791_v51  ;;  %v760_v58 = vadd.f32 (!%p1290_p12), %v1841_v50, %v721_v55  ;;  %v762_v59 = vadd.f32 (!%p1290_p12), %v1841_v50, %v723_v56  ;;  %v725_v61 = vld [vmem:[#allocation2 + $0x28] sm:$0xff] (!%p1290_p12)  ;;  %v763_v2 = vadd.f32 (!%p1290_p12), %v1841_v50, %v724_v60  ;;  %v744_v60 = vld [vmem:[#allocation2 + $0xc0] sm:$0xff] (!%p1290_p12) }
 0x164   : > { %694 = vst [vmem:[#allocation2 + $0x50] sm:$0xff] %v662_v3  ;;  %710 = vst [vmem:[#allocation2 + $0xd0] sm:$0xff] %v678_v4  ;;  %v663_v7 = vadd.f32 %v1346_v5, %v374_v63  ;;  %v679_v8 = vadd.f32 %v1394_v6, %v390_v1  ;;  %v764_v3 = vadd.f32 (!%p1290_p12), %v1841_v50, %v725_v61  ;;  %v726_v4 = vld [vmem:[#allocation2 + $0x30] sm:$0xff] (!%p1290_p12)  ;;  %v727_v5 = vld [vmem:[#allocation2 + $0x38] sm:$0xff] (!%p1290_p12) }
 0x165   : > { %vm793_vm0 = vcmp.lt.s32.totalorder (!%p1290_p12), %v1845_v57, 8  ;;  %v745_v61 = vld [vmem:[#allocation2 + $0xc8] sm:$0xff] (!%p1290_p12) }
 0x166   : > { %695 = vst [vmem:[#allocation2 + $0x58] sm:$0xff] %v663_v7  ;;  %711 = vst [vmem:[#allocation2 + $0xd8] sm:$0xff] %v679_v8  ;;  %v1347_v9 = vpop.f32.mrb[24].mxu0  ;;  %v1395_v10 = vpop.f32.mrb[24].mxu1  ;;  %v1852_v62 = vsel (!%p1290_p12), %vm793_vm0, %v759_v53, -inf  ;;  %v1856_v63 = vsel (!%p1290_p12), %vm793_vm0, %v761_v54, -inf  ;;  %v765_v8 = vadd.f32 (!%p1290_p12), %v1841_v50, %v726_v4  ;;  %v783_v4 = vadd.f32 (!%p1290_p12), %v1841_v50, %v744_v60 }
 0x167   : > { %v1348_v12 = vpop.f32.mrb[25].mxu0  ;;  %v1396_v14 = vpop.f32.mrb[25].mxu1  ;;  %826 = vmax.xlane.f32.xlu0 (!%p1290_p12), %v1852_v62  ;;  %830 = vmax.xlane.f32.xlu1 (!%p1290_p12), %v1856_v63  ;;  %v1862_v0 = vsel (!%p1290_p12), %vm793_vm0, %v760_v58, -inf  ;;  %v1866_v1 = vsel (!%p1290_p12), %vm793_vm0, %v762_v59, -inf  ;;  %v1874_v6 = vsel (!%p1290_p12), %vm793_vm0, %v763_v2, -inf  ;;  %v1878_v7 = vsel (!%p1290_p12), %vm793_vm0, %v764_v3, -inf }
 0x168   : > { %v1349_v15 = vadd.f32 %v1348_v12, %v1347_v9  ;;  %v1397_v16 = vadd.f32 %v1396_v14, %v1395_v10  ;;  %v1350_v17 = vpop.f32.mrb[26].mxu0  ;;  %v1398_v18 = vpop.f32.mrb[26].mxu1  ;;  %v766_v9 = vadd.f32 (!%p1290_p12), %v1841_v50, %v727_v5  ;;  %v728_v10 = vld [vmem:[#allocation2 + $0x40] sm:$0xff] (!%p1290_p12)  ;;  %v1886_v12 = vsel (!%p1290_p12), %vm793_vm0, %v765_v8, -inf  ;;  %v742_v53 = vld [vmem:[#allocation2 + $0xb0] sm:$0xff] (!%p1290_p12)  ;;  %v743_v54 = vld [vmem:[#allocation2 + $0xb8] sm:$0xff] (!%p1290_p12) }
 0x169   : > { %v1351_v20 = vpop.f32.mrb[27].mxu0  ;;  %v1399_v22 = vpop.f32.mrb[27].mxu1  ;;  %v767_v14 = vadd.f32 (!%p1290_p12), %v1841_v50, %v728_v10  ;;  %v781_v58 = vadd.f32 (!%p1290_p12), %v1841_v50, %v742_v53  ;;  %v782_v59 = vadd.f32 (!%p1290_p12), %v1841_v50, %v743_v54  ;;  %v784_v5 = vadd.f32 (!%p1290_p12), %v1841_v50, %v745_v61 }
 0x16a   : > { %v664_v23 = vadd.f32 %v1349_v15, %v375_v11  ;;  %v680_v24 = vadd.f32 %v1397_v16, %v391_v13  ;;  %v1352_v25 = vadd.f32 %v1351_v20, %v1350_v17  ;;  %v1400_v26 = vadd.f32 %v1399_v22, %v1398_v18  ;;  %v729_v11 = vld [vmem:[#allocation2 + $0x48] sm:$0xff] (!%p1290_p12) }
 0x16b   : > { %828 = vmax.xlane.f32.xlu0 (!%p1290_p12), %v1862_v0  ;;  %832 = vmax.xlane.f32.xlu1 (!%p1290_p12), %v1866_v1  ;;  %v1890_v13 = vsel (!%p1290_p12), %vm793_vm0, %v766_v9, -inf  ;;  %v768_v15 = vadd.f32 (!%p1290_p12), %v1841_v50, %v729_v11  ;;  %v730_v16 = vld [vmem:[#allocation2 + $0x50] sm:$0xff] (!%p1290_p12)  ;;  %v1898_v18 = vsel (!%p1290_p12), %vm793_vm0, %v767_v14, -inf  ;;  %v1982_v2 = vsel (!%p1290_p12), %vm793_vm0, %v781_v58, -inf }
 0x16c   : > { %696 = vst [vmem:[#allocation2 + $0x60] sm:$0xff] %v664_v23  ;;  %712 = vst [vmem:[#allocation2 + $0xe0] sm:$0xff] %v680_v24  ;;  %v665_v27 = vadd.f32 %v1352_v25, %v376_v19  ;;  %v681_v28 = vadd.f32 %v1400_v26, %v392_v21  ;;  %v769_v20 = vadd.f32 (!%p1290_p12), %v1841_v50, %v730_v16  ;;  %v1986_v3 = vsel (!%p1290_p12), %vm793_vm0, %v782_v59, -inf  ;;  %v746_v8 = vld [vmem:[#allocation2 + $0xd0] sm:$0xff] (!%p1290_p12) }
 0x16d   : > { %v731_v17 = vld [vmem:[#allocation2 + $0x58] sm:$0xff] (!%p1290_p12)  ;;  %v1902_v19 = vsel (!%p1290_p12), %vm793_vm0, %v768_v15, -inf  ;;  %v1994_v10 = vsel (!%p1290_p12), %vm793_vm0, %v783_v4, -inf  ;;  %v1998_v11 = vsel (!%p1290_p12), %vm793_vm0, %v784_v5, -inf  ;;  %v785_v14 = vadd.f32 (!%p1290_p12), %v1841_v50, %v746_v8 }
 0x16e   : > { %697 = vst [vmem:[#allocation2 + $0x68] sm:$0xff] %v665_v27  ;;  %713 = vst [vmem:[#allocation2 + $0xe8] sm:$0xff] %v681_v28  ;;  %v1353_v29 = vpop.f32.mrb[28].mxu0  ;;  %v1401_v30 = vpop.f32.mrb[28].mxu1  ;;  %v770_v21 = vadd.f32 (!%p1290_p12), %v1841_v50, %v731_v17  ;;  %v1910_v24 = vsel (!%p1290_p12), %vm793_vm0, %v769_v20, -inf  ;;  %v747_v9 = vld [vmem:[#allocation2 + $0xd8] sm:$0xff] (!%p1290_p12) }
 0x16f   : > { %v1354_v32 = vpop.f32.mrb[29].mxu0  ;;  %v1402_v34 = vpop.f32.mrb[29].mxu1  ;;  %834 = vmax.xlane.f32.xlu0 (!%p1290_p12), %v1874_v6  ;;  %836 = vmax.xlane.f32.xlu1 (!%p1290_p12), %v1878_v7  ;;  %v786_v15 = vadd.f32 (!%p1290_p12), %v1841_v50, %v747_v9  ;;  %v2006_v20 = vsel (!%p1290_p12), %vm793_vm0, %v785_v14, -inf }
 0x170   : > { %v1355_v35 = vadd.f32 %v1354_v32, %v1353_v29  ;;  %v1403_v36 = vadd.f32 %v1402_v34, %v1401_v30  ;;  %v1356_v37 = vpop.f32.mrb[30].mxu0  ;;  %v1404_v38 = vpop.f32.mrb[30].mxu1  ;;  %719 = sbr.rel (%p1290_p12) target bundleno = 738 (0x2e2), region = 63  ;;  %v1914_v25 = vsel (!%p1290_p12), %vm793_vm0, %v770_v21, -inf  ;;  %v736_v34 = vld [vmem:[#allocation2 + $0x80] sm:$0xff] (!%p1290_p12) }
 0x171   : > { %v1357_v40 = vpop.f32.mrb[31].mxu0  ;;  %v1405_v42 = vpop.f32.mrb[31].mxu1  ;;  %v2010_v21 = vsel (!%p1290_p12), %vm793_vm0, %v786_v15, -inf }
 0x172   : > { %v666_v43 = vadd.f32 %v1355_v35, %v377_v31  ;;  %v682_v44 = vadd.f32 %v1403_v36, %v393_v33  ;;  %v1358_v45 = vadd.f32 %v1357_v40, %v1356_v37  ;;  %v1406_v46 = vadd.f32 %v1405_v42, %v1404_v38  ;;  %v737_v35 = vld [vmem:[#allocation2 + $0x88] sm:$0xff] (!%p1290_p12)  ;;  %v738_v40 = vld [vmem:[#allocation2 + $0x90] sm:$0xff] (!%p1290_p12) }
 0x173   : > { %838 = vmax.xlane.f32.xlu0 (!%p1290_p12), %v1886_v12  ;;  %840 = vmax.xlane.f32.xlu1 (!%p1290_p12), %v1890_v13  ;;  %v732_v22 = vld [vmem:[#allocation2 + $0x60] sm:$0xff] (!%p1290_p12)  ;;  %v775_v38 = vadd.f32 (!%p1290_p12), %v1841_v50, %v736_v34 }
 0x174   : > { %698 = vst [vmem:[#allocation2 + $0x70] sm:$0xff] %v666_v43  ;;  %714 = vst [vmem:[#allocation2 + $0xf0] sm:$0xff] %v682_v44  ;;  %v667_v47 = vadd.f32 %v1358_v45, %v378_v39  ;;  %v683_v48 = vadd.f32 %v1406_v46, %v394_v41  ;;  %v771_v26 = vadd.f32 (!%p1290_p12), %v1841_v50, %v732_v22  ;;  %v739_v41 = vld [vmem:[#allocation2 + $0x98] sm:$0xff] (!%p1290_p12)  ;;  %v740_v46 = vld [vmem:[#allocation2 + $0xa0] sm:$0xff] (!%p1290_p12) }
 0x175   : > { %v733_v23 = vld [vmem:[#allocation2 + $0x68] sm:$0xff] (!%p1290_p12)  ;;  %v776_v39 = vadd.f32 (!%p1290_p12), %v1841_v50, %v737_v35  ;;  %v1946_v42 = vsel (!%p1290_p12), %vm793_vm0, %v775_v38, -inf  ;;  %v777_v44 = vadd.f32 (!%p1290_p12), %v1841_v50, %v738_v40  ;;  %v778_v45 = vadd.f32 (!%p1290_p12), %v1841_v50, %v739_v41  ;;  %v748_v16 = vld [vmem:[#allocation2 + $0xe0] sm:$0xff] (!%p1290_p12) }
 0x176   : > { %699 = vst [vmem:[#allocation2 + $0x78] sm:$0xff] %v667_v47  ;;  %715 = vst [vmem:[#allocation2 + $0xf8] sm:$0xff] %v683_v48  ;;  %v772_v27 = vadd.f32 (!%p1290_p12), %v1841_v50, %v733_v23  ;;  %v1922_v30 = vsel (!%p1290_p12), %vm793_vm0, %v771_v26, -inf  ;;  %v741_v47 = vld [vmem:[#allocation2 + $0xa8] sm:$0xff] (!%p1290_p12)  ;;  %v779_v51 = vadd.f32 (!%p1290_p12), %v1841_v50, %v740_v46  ;;  %v787_v22 = vadd.f32 (!%p1290_p12), %v1841_v50, %v748_v16 }
 0x177   : > { %842 = vmax.xlane.f32.xlu0 %v1898_v18  ;;  %844 = vmax.xlane.f32.xlu1 %v1902_v19  ;;  %v1950_v43 = vsel %vm793_vm0, %v776_v39, -inf  ;;  %v1958_v48 = vsel %vm793_vm0, %v777_v44, -inf  ;;  %v1962_v49 = vsel %vm793_vm0, %v778_v45, -inf  ;;  %v780_v52 = vadd.f32 %v1841_v50, %v741_v47  ;;  %v749_v17 = vld [vmem:[#allocation2 + $0xe8] sm:$0xff] }
 0x178   : > { %v1926_v31 = vsel %vm793_vm0, %v772_v27, -inf  ;;  %v1970_v55 = vsel %vm793_vm0, %v779_v51, -inf  ;;  %v788_v23 = vadd.f32 %v1841_v50, %v749_v17 }
 0x179   : > { %v1974_v56 = vsel %vm793_vm0, %v780_v52, -inf }
 0x17b   : > { %v734_v28 = vld [vmem:[#allocation2 + $0x70] sm:$0xff]  ;;  %846 = vmax.xlane.f32.xlu0 %v1910_v24  ;;  %848 = vmax.xlane.f32.xlu1 %v1914_v25 }
 0x17c   : > { %v773_v32 = vadd.f32 %v1841_v50, %v734_v28  ;;  %v750_v26 = vld [vmem:[#allocation2 + $0xf0] sm:$0xff]  ;;  %v2018_v28 = vsel %vm793_vm0, %v787_v22, -inf }
 0x17d   : > { %v735_v29 = vld [vmem:[#allocation2 + $0x78] sm:$0xff] }
 0x17e   : > { %v774_v33 = vadd.f32 %v1841_v50, %v735_v29  ;;  %v1934_v36 = vsel %vm793_vm0, %v773_v32, -inf  ;;  %v751_v27 = vld [vmem:[#allocation2 + $0xf8] sm:$0xff]  ;;  %v2022_v29 = vsel %vm793_vm0, %v788_v23, -inf  ;;  %v789_v32 = vadd.f32 %v1841_v50, %v750_v26 }
 0x17f   : > { %850 = vmax.xlane.f32.xlu0 %v1922_v30  ;;  %852 = vmax.xlane.f32.xlu1 %v1926_v31 }
 0x180   : > { %v1938_v37 = vsel %vm793_vm0, %v774_v33, -inf  ;;  %v790_v33 = vadd.f32 %v1841_v50, %v751_v27  ;;  %v2030_v34 = vsel %vm793_vm0, %v789_v32, -inf }
 0x182   : > { %v2034_v35 = vsel %vm793_vm0, %v790_v33, -inf }
 0x183   : > { %854 = vmax.xlane.f32.xlu0 %v1934_v36  ;;  %856 = vmax.xlane.f32.xlu1 %v1938_v37 }
 0x187   : > { %858 = vmax.xlane.f32.xlu0 %v1946_v42  ;;  %860 = vmax.xlane.f32.xlu1 %v1950_v43 }
 0x18b   : > { %862 = vmax.xlane.f32.xlu0 %v1958_v48  ;;  %864 = vmax.xlane.f32.xlu1 %v1962_v49 }
 0x18f   : > { %866 = vmax.xlane.f32.xlu0 %v1970_v55  ;;  %868 = vmax.xlane.f32.xlu1 %v1974_v56 }
 0x193   : > { %870 = vmax.xlane.f32.xlu0 %v1982_v2  ;;  %872 = vmax.xlane.f32.xlu1 %v1986_v3 }
 0x197   : > { %874 = vmax.xlane.f32.xlu0 %v1994_v10  ;;  %876 = vmax.xlane.f32.xlu1 %v1998_v11 }
 0x19b   : > { %878 = vmax.xlane.f32.xlu0 %v2006_v20  ;;  %880 = vmax.xlane.f32.xlu1 %v2010_v21 }
 0x19f   : > { %882 = vmax.xlane.f32.xlu0 %v2018_v28  ;;  %884 = vmax.xlane.f32.xlu1 %v2022_v29 }
 0x1a3   : > { %886 = vmax.xlane.f32.xlu0 %v2030_v34  ;;  %888 = vmax.xlane.f32.xlu1 %v2034_v35 }
 0x1f4   : > { %v827_v38 = vpop.xlane.xlu0 %826  ;;  %v831_v39 = vpop.xlane.xlu1 %830 }
 0x1f5   : > { %v2039_v50 = vsub.f32 %v1852_v62, %v827_v38  ;;  %v2042_v40 = vsub.f32 %v1856_v63, %v831_v39 }
 0x1f7   : > { %v922_v41 = vmul.f32 1.442695, %v2039_v50  ;;  %v926_v44 = vmul.f32 1.442695, %v2042_v40 }
 0x1f8   : > { %v829_v45 = vpop.xlane.xlu0 %828  ;;  %v833_v57 = vpop.xlane.xlu1 %832 }
 0x1f9   : > { %1496 = vpow2.f32 %v922_v41  ;;  %v2047_v46 = vsub.f32 %v1862_v0, %v829_v45  ;;  %v2050_v47 = vsub.f32 %v1866_v1, %v833_v57 }
 0x1fa   : > { %1498 = vpow2.f32 %v926_v44 }
 0x1fb   : > { %v924_v62 = vmul.f32 1.442695, %v2047_v46  ;;  %v928_v51 = vmul.f32 1.442695, %v2050_v47 }
 0x1fc   : > { %v835_v63 = vpop.xlane.xlu0 %834  ;;  %v837_v52 = vpop.xlane.xlu1 %836 }
 0x1fd   : > { %1500 = vpow2.f32 %v924_v62  ;;  %v2055_v53 = vsub.f32 %v1874_v6, %v835_v63  ;;  %v2058_v54 = vsub.f32 %v1878_v7, %v837_v52 }
 0x1fe   : > { %1502 = vpow2.f32 %v928_v51 }
 0x1ff   : > { %v930_v0 = vmul.f32 1.442695, %v2055_v53  ;;  %v932_v1 = vmul.f32 1.442695, %v2058_v54 }
 0x200   : > { %v839_v58 = vpop.xlane.xlu0 %838  ;;  %v841_v59 = vpop.xlane.xlu1 %840 }
 0x201   : > { %1504 = vpow2.f32 %v930_v0  ;;  %v2063_v60 = vsub.f32 %v1886_v12, %v839_v58  ;;  %v2066_v61 = vsub.f32 %v1890_v13, %v841_v59 }
 0x202   : > { %1506 = vpow2.f32 %v932_v1 }
 0x203   : > { %v1497_v4 = vpop.eup %1496  ;;  %v934_v6 = vmul.f32 1.442695, %v2063_v60  ;;  %v936_v7 = vmul.f32 1.442695, %v2066_v61 }
 0x204   : > { %986 = vadd.xlane.f32.xlu0 %v1497_v4  ;;  %v843_v5 = vpop.xlane.xlu0 %842  ;;  %v845_v8 = vpop.xlane.xlu1 %844 }
 0x205   : > { %v1499_v9 = vpop.eup %1498  ;;  %1508 = vpow2.f32 %v934_v6  ;;  %v2071_v14 = vsub.f32 %v1898_v18, %v843_v5  ;;  %v2074_v12 = vsub.f32 %v1902_v19, %v845_v8 }
 0x206   : > { %1510 = vpow2.f32 %v936_v7 }
 0x207   : > { %v1501_v15 = vpop.eup %1500  ;;  %v938_v13 = vmul.f32 1.442695, %v2071_v14  ;;  %v940_v16 = vmul.f32 1.442695, %v2074_v12 }
 0x208   : > { %990 = vadd.xlane.f32.xlu0 %v1499_v9  ;;  %988 = vadd.xlane.f32.xlu1 %v1501_v15  ;;  %v847_v17 = vpop.xlane.xlu0 %846  ;;  %v849_v22 = vpop.xlane.xlu1 %848 }
 0x209   : > { %v1503_v23 = vpop.eup %1502  ;;  %1512 = vpow2.f32 %v938_v13  ;;  %v2079_v26 = vsub.f32 %v1910_v24, %v847_v17  ;;  %v2082_v18 = vsub.f32 %v1914_v25, %v849_v22 }
 0x20a   : > { %1514 = vpow2.f32 %v940_v16 }
 0x20b   : > { %v1505_v19 = vpop.eup %1504  ;;  %v942_v27 = vmul.f32 1.442695, %v2079_v26  ;;  %v944_v32 = vmul.f32 1.442695, %v2082_v18 }
 0x20c   : > { %992 = vadd.xlane.f32.xlu1 %v1503_v23  ;;  %994 = vadd.xlane.f32.xlu0 %v1505_v19  ;;  %v851_v33 = vpop.xlane.xlu0 %850  ;;  %v853_v38 = vpop.xlane.xlu1 %852 }
 0x20d   : > { %v1507_v39 = vpop.eup %1506  ;;  %1516 = vpow2.f32 %v942_v27  ;;  %v2087_v41 = vsub.f32 %v1922_v30, %v851_v33  ;;  %v2090_v24 = vsub.f32 %v1926_v31, %v853_v38 }
 0x20e   : > { %1518 = vpow2.f32 %v944_v32 }
 0x20f   : > { %v1509_v25 = vpop.eup %1508  ;;  %v946_v44 = vmul.f32 1.442695, %v2087_v41  ;;  %v948_v45 = vmul.f32 1.442695, %v2090_v24 }
 0x210   : > { %996 = vadd.xlane.f32.xlu1 %v1507_v39  ;;  %998 = vadd.xlane.f32.xlu0 %v1509_v25  ;;  %v855_v57 = vpop.xlane.xlu0 %854  ;;  %v857_v62 = vpop.xlane.xlu1 %856 }
 0x211   : > { %v1511_v51 = vpop.eup %1510  ;;  %1520 = vpow2.f32 %v946_v44  ;;  %v2095_v63 = vsub.f32 %v1934_v36, %v855_v57  ;;  %v2098_v30 = vsub.f32 %v1938_v37, %v857_v62 }
 0x212   : > { %1522 = vpow2.f32 %v948_v45 }
 0x213   : > { %v1513_v31 = vpop.eup %1512  ;;  %v950_v52 = vmul.f32 1.442695, %v2095_v63  ;;  %v952_v0 = vmul.f32 1.442695, %v2098_v30 }
 0x214   : > { %1000 = vadd.xlane.f32.xlu1 %v1511_v51  ;;  %1002 = vadd.xlane.f32.xlu0 %v1513_v31  ;;  %v859_v1 = vpop.xlane.xlu0 %858  ;;  %v861_v58 = vpop.xlane.xlu1 %860 }
 0x215   : > { %v1515_v59 = vpop.eup %1514  ;;  %1524 = vpow2.f32 %v950_v52  ;;  %v2103_v4 = vsub.f32 %v1946_v42, %v859_v1  ;;  %v2106_v36 = vsub.f32 %v1950_v43, %v861_v58 }
 0x216   : > { %1526 = vpow2.f32 %v952_v0 }
 0x217   : > { %v1517_v37 = vpop.eup %1516  ;;  %v954_v6 = vmul.f32 1.442695, %v2103_v4  ;;  %v956_v7 = vmul.f32 1.442695, %v2106_v36 }
 0x218   : > { %1004 = vadd.xlane.f32.xlu1 %v1515_v59  ;;  %1006 = vadd.xlane.f32.xlu0 %v1517_v37  ;;  %v863_v5 = vpop.xlane.xlu0 %862  ;;  %v865_v8 = vpop.xlane.xlu1 %864 }
 0x219   : > { %v1519_v9 = vpop.eup %1518  ;;  %1528 = vpow2.f32 %v954_v6  ;;  %v2111_v15 = vsub.f32 %v1958_v48, %v863_v5  ;;  %v2114_v42 = vsub.f32 %v1962_v49, %v865_v8 }
 0x21a   : > { %1530 = vpow2.f32 %v956_v7 }
 0x21b   : > { %v1521_v43 = vpop.eup %1520  ;;  %v958_v13 = vmul.f32 1.442695, %v2111_v15  ;;  %v960_v16 = vmul.f32 1.442695, %v2114_v42 }
 0x21c   : > { %1008 = vadd.xlane.f32.xlu1 %v1519_v9  ;;  %1010 = vadd.xlane.f32.xlu0 %v1521_v43  ;;  %v867_v17 = vpop.xlane.xlu0 %866  ;;  %v869_v22 = vpop.xlane.xlu1 %868 }
 0x21d   : > { %v1523_v23 = vpop.eup %1522  ;;  %1532 = vpow2.f32 %v958_v13  ;;  %v2119_v19 = vsub.f32 %v1970_v55, %v867_v17  ;;  %v2122_v48 = vsub.f32 %v1974_v56, %v869_v22 }
 0x21e   : > { %1534 = vpow2.f32 %v960_v16 }
 0x21f   : > { %v1525_v49 = vpop.eup %1524  ;;  %v962_v27 = vmul.f32 1.442695, %v2119_v19  ;;  %v964_v32 = vmul.f32 1.442695, %v2122_v48 }
 0x220   : > { %1012 = vadd.xlane.f32.xlu1 %v1523_v23  ;;  %1014 = vadd.xlane.f32.xlu0 %v1525_v49  ;;  %v871_v33 = vpop.xlane.xlu0 %870  ;;  %v873_v38 = vpop.xlane.xlu1 %872 }
 0x221   : > { %v1527_v39 = vpop.eup %1526  ;;  %1536 = vpow2.f32 %v962_v27  ;;  %v2127_v25 = vsub.f32 %v1982_v2, %v871_v33  ;;  %v2130_v55 = vsub.f32 %v1986_v3, %v873_v38 }
 0x222   : > { %1538 = vpow2.f32 %v964_v32 }
 0x223   : > { %v1529_v56 = vpop.eup %1528  ;;  %v966_v44 = vmul.f32 1.442695, %v2127_v25  ;;  %v968_v45 = vmul.f32 1.442695, %v2130_v55 }
 0x224   : > { %1016 = vadd.xlane.f32.xlu1 %v1527_v39  ;;  %1018 = vadd.xlane.f32.xlu0 %v1529_v56  ;;  %v875_v57 = vpop.xlane.xlu0 %874  ;;  %v877_v62 = vpop.xlane.xlu1 %876 }
 0x225   : > { %v1531_v51 = vpop.eup %1530  ;;  %1540 = vpow2.f32 %v966_v44  ;;  %v2135_v31 = vsub.f32 %v1994_v10, %v875_v57  ;;  %v2138_v2 = vsub.f32 %v1998_v11, %v877_v62 }
 0x226   : > { %1542 = vpow2.f32 %v968_v45 }
 0x227   : > { %v1533_v3 = vpop.eup %1532  ;;  %v970_v52 = vmul.f32 1.442695, %v2135_v31  ;;  %v972_v0 = vmul.f32 1.442695, %v2138_v2 }
 0x228   : > { %1020 = vadd.xlane.f32.xlu1 %v1531_v51  ;;  %1022 = vadd.xlane.f32.xlu0 %v1533_v3  ;;  %v879_v1 = vpop.xlane.xlu0 %878  ;;  %v881_v58 = vpop.xlane.xlu1 %880 }
 0x229   : > { %v1535_v59 = vpop.eup %1534  ;;  %1544 = vpow2.f32 %v970_v52  ;;  %v2143_v37 = vsub.f32 %v2006_v20, %v879_v1  ;;  %v2146_v10 = vsub.f32 %v2010_v21, %v881_v58 }
 0x22a   : > { %1546 = vpow2.f32 %v972_v0 }
 0x22b   : > { %v1537_v11 = vpop.eup %1536  ;;  %v974_v6 = vmul.f32 1.442695, %v2143_v37  ;;  %v976_v7 = vmul.f32 1.442695, %v2146_v10 }
 0x22c   : > { %1024 = vadd.xlane.f32.xlu1 %v1535_v59  ;;  %1026 = vadd.xlane.f32.xlu0 %v1537_v11  ;;  %v883_v5 = vpop.xlane.xlu0 %882  ;;  %v885_v8 = vpop.xlane.xlu1 %884 }
 0x22d   : > { %v1539_v9 = vpop.eup %1538  ;;  %1548 = vpow2.f32 %v974_v6  ;;  %v2151_v43 = vsub.f32 %v2018_v28, %v883_v5  ;;  %v2154_v20 = vsub.f32 %v2022_v29, %v885_v8 }
 0x22e   : > { %1550 = vpow2.f32 %v976_v7 }
 0x22f   : > { %v1541_v21 = vpop.eup %1540  ;;  %v978_v13 = vmul.f32 1.442695, %v2151_v43  ;;  %v980_v16 = vmul.f32 1.442695, %v2154_v20 }
 0x230   : > { %1028 = vadd.xlane.f32.xlu1 %v1539_v9  ;;  %1030 = vadd.xlane.f32.xlu0 %v1541_v21  ;;  %v887_v17 = vpop.xlane.xlu0 %886  ;;  %v889_v22 = vpop.xlane.xlu1 %888 }
 0x231   : > { %v1543_v23 = vpop.eup %1542  ;;  %1552 = vpow2.f32 %v978_v13  ;;  %v2159_v49 = vsub.f32 %v2030_v34, %v887_v17  ;;  %v2162_v28 = vsub.f32 %v2034_v35, %v889_v22 }
 0x232   : > { %1554 = vpow2.f32 %v980_v16 }
 0x233   : > { %v1545_v29 = vpop.eup %1544  ;;  %v982_v27 = vmul.f32 1.442695, %v2159_v49  ;;  %v984_v32 = vmul.f32 1.442695, %v2162_v28 }
 0x234   : > { %1032 = vadd.xlane.f32.xlu1 %v1543_v23  ;;  %1034 = vadd.xlane.f32.xlu0 %v1545_v29  ;;  %v1547_v33 = vpop.eup %1546 }
 0x235   : > { %1556 = vpow2.f32 %v982_v27 }
 0x236   : > { %1558 = vpow2.f32 %v984_v32 }
 0x237   : > { %v1549_v38 = vpop.eup %1548 }
 0x238   : > { %1036 = vadd.xlane.f32.xlu1 %v1547_v33  ;;  %1038 = vadd.xlane.f32.xlu0 %v1549_v38  ;;  %v1551_v39 = vpop.eup %1550 }
 0x23b   : > { %v1553_v34 = vpop.eup %1552 }
 0x23c   : > { %1040 = vadd.xlane.f32.xlu1 %v1551_v39  ;;  %1042 = vadd.xlane.f32.xlu0 %v1553_v34  ;;  %v1555_v35 = vpop.eup %1554 }
 0x23f   : > { %v1557_v56 = vpop.eup %1556 }
 0x240   : > { %1044 = vadd.xlane.f32.xlu1 %v1555_v35  ;;  %1046 = vadd.xlane.f32.xlu0 %v1557_v56  ;;  %v1559_v44 = vpop.eup %1558 }
 0x244   : > { %1048 = vadd.xlane.f32.xlu1 %v1559_v44 }
 0x291   : > { %v987_v45 = vpop.xlane.xlu0 %986 }
 0x292   : > { %1560 = vlog2.f32 %v987_v45 }
 0x295   : > { %v989_v57 = vpop.xlane.xlu1 %988  ;;  %v991_v62 = vpop.xlane.xlu0 %990 }
 0x296   : > { %1562 = vlog2.f32 %v989_v57 }
 0x297   : > { %1564 = vlog2.f32 %v991_v62 }
 0x299   : > { %v993_v51 = vpop.xlane.xlu1 %992  ;;  %v995_v3 = vpop.xlane.xlu0 %994 }
 0x29a   : > { %1566 = vlog2.f32 %v993_v51 }
 0x29b   : > { %1568 = vlog2.f32 %v995_v3 }
 0x29c   : > { %v1561_v52 = vpop.eup %1560 }
 0x29d   : > { %v1051_v0 = vmul.f32 0.6931472, %v1561_v52  ;;  %v997_v1 = vpop.xlane.xlu1 %996  ;;  %v999_v58 = vpop.xlane.xlu0 %998 }
 0x29e   : > { %1570 = vlog2.f32 %v997_v1 }
 0x29f   : > { %v1114_v59 = vsub.f32 %v2039_v50, %v1051_v0  ;;  %1572 = vlog2.f32 %v999_v58 }
 0x2a0   : > { %v1563_v11 = vpop.eup %1562 }
 0x2a1   : > { %v1565_v6 = vpop.eup %1564  ;;  %1147 = vst.msk [vmem:[%s1786_s24] sm:$0xff] %vm1146_vm1, %v1114_v59  ;;  %v1053_v7 = vmul.f32 0.6931472, %v1563_v11  ;;  %v1001_v5 = vpop.xlane.xlu1 %1000 }
 0x2a2   : > { %v1003_v8 = vpop.xlane.xlu0 %1002  ;;  %v1055_v9 = vmul.f32 0.6931472, %v1565_v6  ;;  %1574 = vlog2.f32 %v1001_v5 }
 0x2a3   : > { %v1115_v21 = vsub.f32 %v2047_v46, %v1053_v7  ;;  %1576 = vlog2.f32 %v1003_v8 }
 0x2a4   : > { %v1567_v13 = vpop.eup %1566  ;;  %v1116_v16 = vsub.f32 %v2042_v40, %v1055_v9 }
 0x2a5   : > { %v1569_v17 = vpop.eup %1568  ;;  %1148 = vst.msk [vmem:[%s1786_s24 + $0x8] sm:$0xff] %vm1146_vm1, %v1115_v21  ;;  %v1057_v50 = vmul.f32 0.6931472, %v1567_v13  ;;  %v1005_v22 = vpop.xlane.xlu1 %1004 }
 0x2a6   : > { %v1007_v23 = vpop.xlane.xlu0 %1006  ;;  %1149 = vst.msk [vmem:[%s1786_s24 + $0x10] sm:$0xff] %vm1146_vm1, %v1116_v16  ;;  %v1059_v29 = vmul.f32 0.6931472, %v1569_v17  ;;  %1578 = vlog2.f32 %v1005_v22 }
 0x2a7   : > { %v1117_v27 = vsub.f32 %v2050_v47, %v1057_v50  ;;  %1580 = vlog2.f32 %v1007_v23 }
 0x2a8   : > { %v1571_v46 = vpop.eup %1570  ;;  %v1118_v32 = vsub.f32 %v2055_v53, %v1059_v29 }
 0x2a9   : > { %v1573_v33 = vpop.eup %1572  ;;  %1150 = vst.msk [vmem:[%s1786_s24 + $0x18] sm:$0xff] %vm1146_vm1, %v1117_v27  ;;  %v1061_v40 = vmul.f32 0.6931472, %v1571_v46  ;;  %v1009_v38 = vpop.xlane.xlu1 %1008 }
 0x2aa   : > { %v1011_v39 = vpop.xlane.xlu0 %1010  ;;  %1151 = vst.msk [vmem:[%s1786_s24 + $0x20] sm:$0xff] %vm1146_vm1, %v1118_v32  ;;  %v1063_v34 = vmul.f32 0.6931472, %v1573_v33  ;;  %1582 = vlog2.f32 %v1009_v38 }
 0x2ab   : > { %v1119_v35 = vsub.f32 %v2058_v54, %v1061_v40  ;;  %1584 = vlog2.f32 %v1011_v39 }
 0x2ac   : > { %v1575_v47 = vpop.eup %1574  ;;  %v1120_v56 = vsub.f32 %v2063_v60, %v1063_v34 }
 0x2ad   : > { %v1577_v44 = vpop.eup %1576  ;;  %1152 = vst.msk [vmem:[%s1786_s24 + $0x28] sm:$0xff] %vm1146_vm1, %v1119_v35  ;;  %v1065_v53 = vmul.f32 0.6931472, %v1575_v47  ;;  %v1013_v45 = vpop.xlane.xlu1 %1012 }
 0x2ae   : > { %v1015_v57 = vpop.xlane.xlu0 %1014  ;;  %1153 = vst.msk [vmem:[%s1786_s24 + $0x30] sm:$0xff] %vm1146_vm1, %v1120_v56  ;;  %v1067_v62 = vmul.f32 0.6931472, %v1577_v44  ;;  %1586 = vlog2.f32 %v1013_v45 }
 0x2af   : > { %v1121_v51 = vsub.f32 %v2066_v61, %v1065_v53  ;;  %1588 = vlog2.f32 %v1015_v57 }
 0x2b0   : > { %v1579_v54 = vpop.eup %1578  ;;  %v1122_v3 = vsub.f32 %v2071_v14, %v1067_v62 }
 0x2b1   : > { %v1581_v52 = vpop.eup %1580  ;;  %1154 = vst.msk [vmem:[%s1786_s24 + $0x38] sm:$0xff] %vm1146_vm1, %v1121_v51  ;;  %v1069_v60 = vmul.f32 0.6931472, %v1579_v54  ;;  %v1017_v0 = vpop.xlane.xlu1 %1016 }
 0x2b2   : > { %v1019_v1 = vpop.xlane.xlu0 %1018  ;;  %1155 = vst.msk [vmem:[%s1786_s24 + $0x40] sm:$0xff] %vm1146_vm1, %v1122_v3  ;;  %v1071_v58 = vmul.f32 0.6931472, %v1581_v52  ;;  %1590 = vlog2.f32 %v1017_v0 }
 0x2b3   : > { %v1123_v59 = vsub.f32 %v2074_v12, %v1069_v60  ;;  %1592 = vlog2.f32 %v1019_v1 }
 0x2b4   : > { %v1583_v61 = vpop.eup %1582  ;;  %v1124_v11 = vsub.f32 %v2079_v26, %v1071_v58 }
 0x2b5   : > { %v1585_v6 = vpop.eup %1584  ;;  %1156 = vst.msk [vmem:[%s1786_s24 + $0x48] sm:$0xff] %vm1146_vm1, %v1123_v59  ;;  %v1073_v14 = vmul.f32 0.6931472, %v1583_v61  ;;  %v1021_v7 = vpop.xlane.xlu1 %1020 }
 0x2b6   : > { %v1023_v5 = vpop.xlane.xlu0 %1022  ;;  %1157 = vst.msk [vmem:[%s1786_s24 + $0x50] sm:$0xff] %vm1146_vm1, %v1124_v11  ;;  %v1075_v8 = vmul.f32 0.6931472, %v1585_v6  ;;  %1594 = vlog2.f32 %v1021_v7 }
 0x2b7   : > { %v1125_v9 = vsub.f32 %v2082_v18, %v1073_v14  ;;  %1596 = vlog2.f32 %v1023_v5 }
 0x2b8   : > { %v1587_v12 = vpop.eup %1586  ;;  %v1126_v21 = vsub.f32 %v2087_v41, %v1075_v8 }
 0x2b9   : > { %v1589_v13 = vpop.eup %1588  ;;  %1158 = vst.msk [vmem:[%s1786_s24 + $0x58] sm:$0xff] %vm1146_vm1, %v1125_v9  ;;  %v1077_v26 = vmul.f32 0.6931472, %v1587_v12  ;;  %v1025_v16 = vpop.xlane.xlu1 %1024 }
 0x2ba   : > { %v1027_v17 = vpop.xlane.xlu0 %1026  ;;  %1159 = vst.msk [vmem:[%s1786_s24 + $0x60] sm:$0xff] %vm1146_vm1, %v1126_v21  ;;  %v1079_v50 = vmul.f32 0.6931472, %v1589_v13  ;;  %1598 = vlog2.f32 %v1025_v16 }
 0x2bb   : > { %v1127_v22 = vsub.f32 %v2090_v24, %v1077_v26  ;;  %1600 = vlog2.f32 %v1027_v17 }
 0x2bc   : > { %v1591_v18 = vpop.eup %1590  ;;  %v1128_v23 = vsub.f32 %v2095_v63, %v1079_v50 }
 0x2bd   : > { %v1593_v29 = vpop.eup %1592  ;;  %1160 = vst.msk [vmem:[%s1786_s24 + $0x68] sm:$0xff] %vm1146_vm1, %v1127_v22  ;;  %v1081_v41 = vmul.f32 0.6931472, %v1591_v18  ;;  %v1029_v27 = vpop.xlane.xlu1 %1028 }
 0x2be   : > { %v1031_v46 = vpop.xlane.xlu0 %1030  ;;  %1161 = vst.msk [vmem:[%s1786_s24 + $0x70] sm:$0xff] %vm1146_vm1, %v1128_v23  ;;  %v1083_v32 = vmul.f32 0.6931472, %v1593_v29  ;;  %1602 = vlog2.f32 %v1029_v27 }
 0x2bf   : > { %v1129_v33 = vsub.f32 %v2098_v30, %v1081_v41  ;;  %1604 = vlog2.f32 %v1031_v46 }
 0x2c0   : > { %v1595_v24 = vpop.eup %1594  ;;  %v1130_v40 = vsub.f32 %v2103_v4, %v1083_v32 }
 0x2c1   : > { %v1597_v38 = vpop.eup %1596  ;;  %1162 = vst.msk [vmem:[%s1786_s24 + $0x78] sm:$0xff] %vm1146_vm1, %v1129_v33  ;;  %v1085_v63 = vmul.f32 0.6931472, %v1595_v24  ;;  %v1033_v39 = vpop.xlane.xlu1 %1032 }
 0x2c2   : > { %v1035_v34 = vpop.xlane.xlu0 %1034  ;;  %1163 = vst.msk [vmem:[%s1786_s24 + $0x80] sm:$0xff] %vm1146_vm1, %v1130_v40  ;;  %v1087_v35 = vmul.f32 0.6931472, %v1597_v38  ;;  %1606 = vlog2.f32 %v1033_v39 }
 0x2c3   : > { %v1131_v47 = vsub.f32 %v2106_v36, %v1085_v63  ;;  %1608 = vlog2.f32 %v1035_v34 }
 0x2c4   : > { %v1599_v30 = vpop.eup %1598  ;;  %v1132_v56 = vsub.f32 %v2111_v15, %v1087_v35 }
 0x2c5   : > { %v1601_v44 = vpop.eup %1600  ;;  %1164 = vst.msk [vmem:[%s1786_s24 + $0x88] sm:$0xff] %vm1146_vm1, %v1131_v47  ;;  %v1089_v4 = vmul.f32 0.6931472, %v1599_v30  ;;  %v1037_v53 = vpop.xlane.xlu1 %1036 }
 0x2c6   : > { %v1039_v45 = vpop.xlane.xlu0 %1038  ;;  %1165 = vst.msk [vmem:[%s1786_s24 + $0x90] sm:$0xff] %vm1146_vm1, %v1132_v56  ;;  %v1091_v57 = vmul.f32 0.6931472, %v1601_v44  ;;  %1610 = vlog2.f32 %v1037_v53 }
 0x2c7   : > { %v1133_v62 = vsub.f32 %v2114_v42, %v1089_v4  ;;  %1612 = vlog2.f32 %v1039_v45 }
 0x2c8   : > { %v1603_v36 = vpop.eup %1602  ;;  %v1134_v51 = vsub.f32 %v2119_v19, %v1091_v57 }
 0x2c9   : > { %v1605_v54 = vpop.eup %1604  ;;  %1166 = vst.msk [vmem:[%s1786_s24 + $0x98] sm:$0xff] %vm1146_vm1, %v1133_v62  ;;  %v1093_v15 = vmul.f32 0.6931472, %v1603_v36  ;;  %v1041_v3 = vpop.xlane.xlu1 %1040 }
 0x2ca   : > { %v1043_v52 = vpop.xlane.xlu0 %1042  ;;  %1167 = vst.msk [vmem:[%s1786_s24 + $0xa0] sm:$0xff] %vm1146_vm1, %v1134_v51  ;;  %v1095_v60 = vmul.f32 0.6931472, %v1605_v54  ;;  %1614 = vlog2.f32 %v1041_v3 }
 0x2cb   : > { %v1135_v0 = vsub.f32 %v2122_v48, %v1093_v15  ;;  %1616 = vlog2.f32 %v1043_v52 }
 0x2cc   : > { %v1607_v42 = vpop.eup %1606  ;;  %v1136_v1 = vsub.f32 %v2127_v25, %v1095_v60 }
 0x2cd   : > { %v1609_v58 = vpop.eup %1608  ;;  %1168 = vst.msk [vmem:[%s1786_s24 + $0xa8] sm:$0xff] %vm1146_vm1, %v1135_v0  ;;  %v1097_v19 = vmul.f32 0.6931472, %v1607_v42  ;;  %v1045_v59 = vpop.xlane.xlu1 %1044 }
 0x2ce   : > { %v1047_v61 = vpop.xlane.xlu0 %1046  ;;  %1169 = vst.msk [vmem:[%s1786_s24 + $0xb0] sm:$0xff] %vm1146_vm1, %v1136_v1  ;;  %v1099_v11 = vmul.f32 0.6931472, %v1609_v58  ;;  %1618 = vlog2.f32 %v1045_v59 }
 0x2cf   : > { %v1137_v6 = vsub.f32 %v2130_v55, %v1097_v19  ;;  %1620 = vlog2.f32 %v1047_v61 }
 0x2d0   : > { %v1611_v48 = vpop.eup %1610  ;;  %v1138_v14 = vsub.f32 %v2135_v31, %v1099_v11 }
 0x2d1   : > { %v1613_v25 = vpop.eup %1612  ;;  %1170 = vst.msk [vmem:[%s1786_s24 + $0xb8] sm:$0xff] %vm1146_vm1, %v1137_v6  ;;  %v1101_v7 = vmul.f32 0.6931472, %v1611_v48  ;;  %v1049_v5 = vpop.xlane.xlu1 %1048 }
 0x2d2   : > { %1171 = vst.msk [vmem:[%s1786_s24 + $0xc0] sm:$0xff] %vm1146_vm1, %v1138_v14  ;;  %v1103_v8 = vmul.f32 0.6931472, %v1613_v25  ;;  %1622 = vlog2.f32 %v1049_v5 }
 0x2d3   : > { %v1139_v9 = vsub.f32 %v2138_v2, %v1101_v7 }
 0x2d4   : > { %v1615_v12 = vpop.eup %1614  ;;  %v1140_v55 = vsub.f32 %v2143_v37, %v1103_v8 }
 0x2d5   : > { %v1617_v21 = vpop.eup %1616  ;;  %1172 = vst.msk [vmem:[%s1786_s24 + $0xc8] sm:$0xff] %vm1146_vm1, %v1139_v9  ;;  %v1105_v31 = vmul.f32 0.6931472, %v1615_v12 }
 0x2d6   : > { %1173 = vst.msk [vmem:[%s1786_s24 + $0xd0] sm:$0xff] %vm1146_vm1, %v1140_v55  ;;  %v1107_v13 = vmul.f32 0.6931472, %v1617_v21 }
 0x2d7   : > { %v1141_v26 = vsub.f32 %v2146_v10, %v1105_v31 }
 0x2d8   : > { %v1619_v16 = vpop.eup %1618  ;;  %v1142_v17 = vsub.f32 %v2151_v43, %v1107_v13 }
 0x2d9   : > { %v1621_v50 = vpop.eup %1620  ;;  %1174 = vst.msk [vmem:[%s1786_s24 + $0xd8] sm:$0xff] %vm1146_vm1, %v1141_v26  ;;  %v1109_v2 = vmul.f32 0.6931472, %v1619_v16 }
 0x2da   : > { %1175 = vst.msk [vmem:[%s1786_s24 + $0xe0] sm:$0xff] %vm1146_vm1, %v1142_v17  ;;  %v1111_v37 = vmul.f32 0.6931472, %v1621_v50 }
 0x2db   : > { %v1143_v22 = vsub.f32 %v2154_v20, %v1109_v2 }
 0x2dc   : > { %v1623_v18 = vpop.eup %1622  ;;  %v1144_v23 = vsub.f32 %v2159_v49, %v1111_v37 }
 0x2dd   : > { %1176 = vst.msk [vmem:[%s1786_s24 + $0xe8] sm:$0xff] %vm1146_vm1, %v1143_v22  ;;  %v1113_v29 = vmul.f32 0.6931472, %v1623_v18 }
 0x2de   : > { %1177 = vst.msk [vmem:[%s1786_s24 + $0xf0] sm:$0xff] %vm1146_vm1, %v1144_v23 }
 0x2df   : > { %v1145_v10 = vsub.f32 %v2162_v28, %v1113_v29 }
 0x2e1   : > { %1178 = vst.msk [vmem:[%s1786_s24 + $0xf8] sm:$0xff] %vm1146_vm1, %v1145_v10 }
 0x2e2 PF: > { %s13_s18 = sadd.s32 1, %s1678_s18   ;;  %s2287_s12 = smov %s1658_s13 }
 0x2e3   : > { %p10_p13 = scmp.ge.s32.totalorder %s13_s18, 6   ;;  %s2288_s13 = smov %s1752_s25 }
 0x2e4   : > { %s2289_s14 = smov %s1670_s16  ;;  %s2290_s15 = smov %s1674_s17 }
 0x2e5   : > { %s2291_s16 = smov %s2294_s19  ;;  %s2292_s17 = smov %s2298_s20 }
 0x2e6   :  { %12 = sbr.rel (!%p10_p13) target bundleno = 4 (0x4), region = 99 }

</bundles_post_ra>
